<compile_context>
chip_gen: v7x
topology: tpu7x:2x2x1
jax: 0.10.0
libtpu: 0.0.40
codegen_flags: <defaults>
</compile_context>

<pallas_src>
import functools

import jax
import jax.numpy as jnp
from jax import lax
from jax.experimental import pallas as pl
from jax.experimental.pallas import tpu as pltpu


# --------------------------------------------------------------------------
# Fused Pallas kernel (whole forward pass)
# --------------------------------------------------------------------------

def _gnn_kernel(S, batch, n1, H, C,
                h0_ref, mask_ref, badd_ref, erow_ref, ejcol_ref, lastrow_ref,
                wp_ref, bp_ref,
                wfg_ref, w2_ref, b2_ref, wgru_ref, bgru_ref,
                wb1_ref, bb1_ref, wb2_ref, bb2_ref, wb3_ref, bb3_ref,
                wta1_ref, bta1_ref, wta2_ref, bta2_ref, vfin_ref, cfin_ref,
                px_ref, pa_ref):
    f32 = jnp.float32
    bf16 = jnp.bfloat16
    N = batch * n1          # total node rows
    NE = N * n1             # dense edge count (adjacency mask folded in later)

    def fdot(a, b):         # f32 MXU matmul (GRU / heads)
        return jnp.dot(a, b, preferred_element_type=f32)

    def bdot(a, b):         # bf16 MXU matmul, f32 accumulate (wide per-edge matmuls)
        return jnp.dot(a.astype(bf16), b.astype(bf16), preferred_element_type=f32)

    # ---- 0/+-1 selectors rebuilt in-kernel (never DMA'd; exact in bf16) ----------
    # Dsel[e, m] = (m == e//n1) - (m == e%n1)      -> per-edge hidden difference
    mN = lax.broadcasted_iota(jnp.int32, (NE, N), 1)
    Dsel = ((erow_ref[...] == mN).astype(f32)
            - (ejcol_ref[...] == mN).astype(f32)).astype(bf16)            # (NE, N)
    # Rsel[r, e] = (e // n1 == r)                  -> scatter_add over edges
    rI = lax.broadcasted_iota(jnp.int32, (N, NE), 0)
    eI = lax.broadcasted_iota(jnp.int32, (N, NE), 1)
    te = eI - rI * n1
    Rsel = jnp.logical_and(te >= 0, te < n1).astype(f32).astype(bf16)     # (N, NE)

    mask = mask_ref[...]          # (NE, 1)  adjacency mask (0/1)
    b2 = b2_ref[...]              # (1, 2H)
    bgru = bgru_ref[...]          # (1, 4H)

    # ---- initial node projection -------------------------------------------------
    h = fdot(h0_ref[...], wp_ref[...]) + bp_ref[...]                      # (N, H) f32

    # ---- S message-passing steps, h never leaves the chip ------------------------
    for _ in range(S):
        # reassociated f/g layer-1: (h[r]-h[j]) @ [wf1|wg1h] == Dsel @ (h @ [wf1|wg1h])
        hw = bdot(h, wfg_ref[...])                                        # (N, C)
        diffw = bdot(Dsel, hw)                                            # (NE, C)
        # badd = [bf1 | nfd@wg1m + bg1] is step-invariant (precomputed per call)
        act = jnp.maximum(diffw + badd_ref[...], 0.0)                     # (NE, C)
        # fused f/g layer-2 (block-diag [wf2 0; 0 wg2]) -> [msgs | alpha_pre]
        o2 = bdot(act, w2_ref[...]) + b2                                  # (NE, 2H)
        att = jax.nn.sigmoid(o2[:, H:]) * o2[:, :H] * mask                # (NE, H)
        # scatter_add over edges == Rsel @ att
        merge = bdot(Rsel, att)                                           # (N, H)
        # fused GRU: [merge | h] @ [[wir wiz win 0],[whr whz 0 whn]]  (f32 state update)
        x = jnp.concatenate([merge, h], axis=1)                           # (N, 2H)
        g = fdot(x, wgru_ref[...]) + bgru                                 # (N, 4H)
        r = jax.nn.sigmoid(g[:, :H])
        z = jax.nn.sigmoid(g[:, H:2 * H])
        c = jnp.tanh(g[:, 2 * H:3 * H] + r * g[:, 3 * H:])
        h = (1.0 - z) * c + z * h

    # ---- P_X = softmax(MLP_beta(h_last)) ------------------------------------------
    bI = lax.broadcasted_iota(jnp.int32, (batch, N), 0)
    mB = lax.broadcasted_iota(jnp.int32, (batch, N), 1)
    lsel = (mB == bI * n1 + (n1 - 1)).astype(f32)                         # (batch, N)
    h_last = fdot(lsel, h)                                                # (batch, H)
    t = jnp.maximum(fdot(h_last, wb1_ref[...]) + bb1_ref[...], 0.0)
    t = jnp.maximum(fdot(t, wb2_ref[...]) + bb2_ref[...], 0.0)
    logits = fdot(t, wb3_ref[...]) + bb3_ref[...]                         # (batch, d_node)
    e = jnp.exp(logits - jnp.max(logits, axis=-1, keepdims=True))
    px_ref[...] = e / jnp.sum(e, axis=-1, keepdims=True)                  # exact softmax

    # ---- P_A: fused theta/alpha MLPs, K-wide sum collapsed to one vector ----------
    rNN = lax.broadcasted_iota(jnp.int32, (N, N), 0)
    mNN = lax.broadcasted_iota(jnp.int32, (N, N), 1)
    Dd = (mNN == lastrow_ref[...]).astype(f32) - (mNN == rNN).astype(f32)  # (N, N)
    dd = fdot(Dd, h)                                                       # h_last(b) - h_j
    u1 = jnp.maximum(fdot(dd, wta1_ref[...]) + bta1_ref[...], 0.0)         # (N, 2H)
    u2 = jnp.maximum(fdot(u1, wta2_ref[...]) + bta2_ref[...], 0.0)         # (N, 2H)
    prob = fdot(u2, vfin_ref[...]) + cfin_ref[...]                         # (N, 1)
    pa_ref[...] = jax.nn.sigmoid(prob)


# --------------------------------------------------------------------------
# One-time parameter packing (hoisted out of the jitted forward)
# --------------------------------------------------------------------------

def pack_params(p):
    f32 = jnp.float32
    bf16 = jnp.bfloat16
    H = p['wf1'].shape[0]
    HM = p['wg1h'].shape[1]
    pk = {}
    # f32 passthrough (projection + heads)
    for k in ('wp', 'bp', 'bf1', 'wb1', 'bb1', 'wb2', 'bb2', 'wb3', 'bb3'):
        pk[k] = p[k].astype(f32)
    # f/g layer-1 fused [wf1 | wg1h]  (H, H+HM), bf16 for the MXU
    pk['wfg'] = jnp.concatenate([p['wf1'], p['wg1h']], axis=1).astype(bf16)
    # f/g layer-2 block-diag [[wf2, 0], [0, wg2]]  (H+HM, 2H)
    w2 = jnp.concatenate(
        [jnp.concatenate([p['wf2'], jnp.zeros((H, H), f32)], axis=1),
         jnp.concatenate([jnp.zeros((HM, H), f32), p['wg2']], axis=1)], axis=0)
    pk['w2'] = w2.astype(bf16)
    pk['b2'] = jnp.concatenate([p['bf2'], p['bg2']], axis=1)
    # fused GRU block weight (2H, 4H) and bias (1, 4H); gates r/z get pre-summed biases
    zH = jnp.zeros((H, H), f32)
    wgru = jnp.concatenate(
        [jnp.concatenate([p['wir'], p['wiz'], p['win'], zH], axis=1),
         jnp.concatenate([p['whr'], p['whz'], zH, p['whn']], axis=1)], axis=0)
    pk['wgru'] = wgru.astype(f32)
    pk['bgru'] = jnp.concatenate(
        [p['bir'] + p['bhr'], p['biz'] + p['bhz'], p['bin'], p['bhn']], axis=1)
    # g-branch node-feature pair table: gpair[i, j] = wg1m[i] - wg1m[j] + bg1
    pk['gpair'] = (p['wg1m'][:, None, :] - p['wg1m'][None, :, :] + p['bg1']).astype(f32)
    # P_A head: theta/alpha fused, final K-wide projection + sum collapsed
    pk['wta1'] = jnp.concatenate([p['wt1'], p['wa1']], axis=1)
    pk['bta1'] = jnp.concatenate([p['bt1'], p['ba1']], axis=1)
    pk['wta2'] = jnp.concatenate(
        [jnp.concatenate([p['wt2'], zH], axis=1),
         jnp.concatenate([zH, p['wa2']], axis=1)], axis=0)
    pk['bta2'] = jnp.concatenate([p['bt2'], p['ba2']], axis=1)
    onesK = jnp.ones((p['wt3'].shape[1], 1), f32)
    pk['vfin'] = jnp.concatenate([p['wt3'] @ onesK, p['wa3'] @ onesK], axis=0)
    pk['cfin'] = (jnp.sum(p['bt3']) + jnp.sum(p['ba3'])).reshape(1, 1)
    return pk


# --------------------------------------------------------------------------
# Wrapper
# --------------------------------------------------------------------------

@functools.partial(jax.jit, static_argnames=("d_node", "hidden", "S"))
def gnn_forward(nodes, adjs, pk, *, d_node, hidden, S):
    batch, n = nodes.shape
    n1 = n + 1
    N = batch * n1
    NE = N * n1
    H = hidden
    HM = pk['gpair'].shape[-1]
    C = H + HM

    # one-hot node features with the appended "new node" row
    oh = jax.nn.one_hot(nodes, d_node, dtype=jnp.float32)
    h0 = jnp.pad(oh, ((0, 0), (0, 1), (0, 0))).reshape(N, d_node)

    # adjacency mask, flattened to the dense-edge layout e = r*n1 + j
    maskflat = (adjs[:, :n1, :n1] != 0).astype(jnp.float32).reshape(NE, 1)

    # step-invariant per-edge bias slab [bf1 | wg1m[row]-wg1m[col]+bg1]  (NE, C)
    gp = pk['gpair'][:n1, :n1]
    gt = jnp.tile(gp[None], (batch, 1, 1, 1)).reshape(NE, HM)
    bf1b = jnp.broadcast_to(pk['bf1'], (NE, H))
    badd = jnp.concatenate([bf1b, gt], axis=-1)

    # tiny int32 index vectors; the big 0/+-1 selectors are rebuilt in-kernel from iota
    eid = jnp.arange(NE, dtype=jnp.int32)
    erow = (eid // n1).reshape(NE, 1)
    ejcol = (eid % n1).reshape(NE, 1)
    rid = jnp.arange(N, dtype=jnp.int32)
    lastrow = ((rid // n1) * n1 + (n1 - 1)).reshape(N, 1)

    operands = (h0, maskflat, badd, erow, ejcol, lastrow,
                pk['wp'], pk['bp'],
                pk['wfg'], pk['w2'], pk['b2'], pk['wgru'], pk['bgru'],
                pk['wb1'], pk['bb1'], pk['wb2'], pk['bb2'], pk['wb3'], pk['bb3'],
                pk['wta1'], pk['bta1'], pk['wta2'], pk['bta2'], pk['vfin'], pk['cfin'])

    mm_flops = 2 * S * (N * H * C + NE * N * C + NE * C * 2 * H
                        + N * NE * H + N * 2 * H * 4 * H)
    head_flops = 2 * (batch * N * H + 2 * batch * H * H + batch * H * d_node
                      + N * N * H + N * H * 2 * H + N * 2 * H * 2 * H + N * 2 * H)
    transcendentals = S * (NE * H + 3 * N * H) + batch * d_node + N
    bytes_accessed = (sum(int(x.size) * x.dtype.itemsize for x in operands)
                      + (batch * d_node + N) * 4)

    kernel = functools.partial(_gnn_kernel, S, batch, n1, H, C)

    px, pa = pl.pallas_call(
        kernel,
        out_shape=(jax.ShapeDtypeStruct((batch, d_node), jnp.float32),
                   jax.ShapeDtypeStruct((N, 1), jnp.float32)),
        compiler_params=pltpu.CompilerParams(vmem_limit_bytes=32 * 1024 * 1024),
        cost_estimate=pl.CostEstimate(flops=int(mm_flops + head_flops),
                                      transcendentals=int(transcendentals),
                                      bytes_accessed=int(bytes_accessed)),
    )(*operands)

    return pa.reshape(batch, n1), px


# --------------------------------------------------------------------------
# Deterministic parameter initialization (synthetic weights)
# --------------------------------------------------------------------------

def init_params(key, node_num, d_node, hidden, K):
    HM = hidden + node_num

    def dense(k, fan_in, fan_out):
        kw, kb = jax.random.split(k)
        w = jax.random.normal(kw, (fan_in, fan_out), jnp.float32) / jnp.sqrt(float(fan_in))
        b = jax.random.normal(kb, (1, fan_out), jnp.float32) * 0.05
        return w, b

    keys = jax.random.split(key, 20)
    p = {}
    p['wp'], p['bp'] = dense(keys[0], d_node, hidden)
    p['wf1'], p['bf1'] = dense(keys[1], hidden, hidden)
    p['wf2'], p['bf2'] = dense(keys[2], hidden, hidden)
    wg1, p['bg1'] = dense(keys[3], HM, HM)
    p['wg1h'], p['wg1m'] = wg1[:hidden], wg1[hidden:]
    p['wg2'], p['bg2'] = dense(keys[4], HM, hidden)
    p['wir'], p['bir'] = dense(keys[5], hidden, hidden)
    p['whr'], p['bhr'] = dense(keys[6], hidden, hidden)
    p['wiz'], p['biz'] = dense(keys[7], hidden, hidden)
    p['whz'], p['bhz'] = dense(keys[8], hidden, hidden)
    p['win'], p['bin'] = dense(keys[9], hidden, hidden)
    p['whn'], p['bhn'] = dense(keys[10], hidden, hidden)
    p['wb1'], p['bb1'] = dense(keys[11], hidden, hidden)
    p['wb2'], p['bb2'] = dense(keys[12], hidden, hidden)
    p['wb3'], p['bb3'] = dense(keys[13], hidden, d_node)
    p['wt1'], p['bt1'] = dense(keys[14], hidden, hidden)
    p['wt2'], p['bt2'] = dense(keys[15], hidden, hidden)
    p['wt3'], p['bt3'] = dense(keys[16], hidden, K)
    p['wa1'], p['ba1'] = dense(keys[17], hidden, hidden)
    p['wa2'], p['ba2'] = dense(keys[18], hidden, hidden)
    p['wa3'], p['ba3'] = dense(keys[19], hidden, K)
    return p


# --------------------------------------------------------------------------
# Pure-JAX reference (mirrors the PyTorch forward semantics exactly, f32)
# --------------------------------------------------------------------------

def ref_forward(nodes, adjs, p, *, node_num, d_node, hidden, S):
    batch, n = nodes.shape
    oh = jax.nn.one_hot(nodes, d_node, dtype=jnp.float32)
    oh = jnp.pad(oh, ((0, 0), (0, 1), (0, 0)))
    h = oh.reshape(-1, d_node) @ p['wp'] + p['bp']
    eye = jnp.eye(node_num, dtype=jnp.float32)[:n + 1]
    nf = jnp.tile(eye[None], (batch, 1, 1)).reshape(-1, node_num)
    mask = (adjs[:, :n + 1, :n + 1].reshape(-1, n + 1) != 0).astype(jnp.float32)

    for _ in range(S):
        diff = h[:, None, :] - h[None, :n + 1, :]
        nfd = nf[:, None, :] - nf[None, :n + 1, :]
        t = jax.nn.relu(diff @ p['wf1'] + p['bf1'])
        msgs = t @ p['wf2'] + p['bf2']
        u = jax.nn.relu(diff @ p['wg1h'] + nfd @ p['wg1m'] + p['bg1'])
        alphas = jax.nn.sigmoid(u @ p['wg2'] + p['bg2'])
        merge = jnp.sum(mask[:, :, None] * (alphas * msgs), axis=1)
        r = jax.nn.sigmoid(merge @ p['wir'] + p['bir'] + h @ p['whr'] + p['bhr'])
        z = jax.nn.sigmoid(merge @ p['wiz'] + p['biz'] + h @ p['whz'] + p['bhz'])
        c = jnp.tanh(merge @ p['win'] + p['bin'] + r * (h @ p['whn'] + p['bhn']))
        h = (1.0 - z) * c + z * h

    h3 = h.reshape(batch, n + 1, hidden)

    def mlp(x, w1, b1, w2, b2, w3, b3):
        t = jax.nn.relu(x @ w1 + b1)
        t = jax.nn.relu(t @ w2 + b2)
        return t @ w3 + b3

    P_X = jax.nn.softmax(
        mlp(h3[:, n, :], p['wb1'], p['bb1'], p['wb2'], p['bb2'], p['wb3'], p['bb3']),
        axis=-1)
    diff = h3[:, n:n + 1, :] - h3
    prob = (mlp(diff, p['wa1'], p['ba1'], p['wa2'], p['ba2'], p['wa3'], p['ba3'])
            + mlp(diff, p['wt1'], p['bt1'], p['wt2'], p['bt2'], p['wt3'], p['bt3'])).sum(-1)
    return jax.nn.sigmoid(prob), P_X


# --------------------------------------------------------------------------

if __name__ == "__main__":
    batch, n = 2, 7
    node_num, d_node, hidden, K, S = 8, 4, 32, 2, 3
    # pass_steps is unused by the reference forward pass.

    key = jax.random.PRNGKey(0)
    k_nodes, k_adj, k_par = jax.random.split(key, 3)
    nodes = jax.random.randint(k_nodes, (batch, n), 0, d_node)
    adjs = jax.random.bernoulli(k_adj, 0.5, (batch, n + 1, n + 1)).astype(jnp.float32)
    params = init_params(k_par, node_num, d_node, hidden, K)
    packed = pack_params(params)   # one-time weight repacking (not per-call)

    P_A, P_X = gnn_forward(nodes, adjs, packed, d_node=d_node, hidden=hidden, S=S)
    P_A, P_X = jax.block_until_ready((P_A, P_X))

    P_A_ref, P_X_ref = ref_forward(nodes, adjs, params, node_num=node_num,
                                   d_node=d_node, hidden=hidden, S=S)
    assert P_A.shape == (batch, n + 1) and P_X.shape == (batch, d_node)
    assert jnp.allclose(P_A, P_A_ref, atol=2e-2, rtol=2e-2)
    assert jnp.allclose(P_X, P_X_ref, atol=2e-2, rtol=2e-2)

    print("KERNEL_OK")
</pallas_src>

<mosaic_0001>
module attributes {stable_mosaic.version = 11 : i64} {
  func.func @_gnn_kernel(%arg0: memref<16x4xf32, #tpu.memory_space<vmem>>, %arg1: memref<128x1xf32, #tpu.memory_space<vmem>>, %arg2: memref<128x72xf32, #tpu.memory_space<vmem>>, %arg3: memref<128x1xi32, #tpu.memory_space<vmem>>, %arg4: memref<128x1xi32, #tpu.memory_space<vmem>>, %arg5: memref<16x1xi32, #tpu.memory_space<vmem>>, %arg6: memref<4x32xf32, #tpu.memory_space<vmem>>, %arg7: memref<1x32xf32, #tpu.memory_space<vmem>>, %arg8: memref<32x72xbf16, #tpu.memory_space<vmem>>, %arg9: memref<72x64xbf16, #tpu.memory_space<vmem>>, %arg10: memref<1x64xf32, #tpu.memory_space<vmem>>, %arg11: memref<64x128xf32, #tpu.memory_space<vmem>>, %arg12: memref<1x128xf32, #tpu.memory_space<vmem>>, %arg13: memref<32x32xf32, #tpu.memory_space<vmem>>, %arg14: memref<1x32xf32, #tpu.memory_space<vmem>>, %arg15: memref<32x32xf32, #tpu.memory_space<vmem>>, %arg16: memref<1x32xf32, #tpu.memory_space<vmem>>, %arg17: memref<32x4xf32, #tpu.memory_space<vmem>>, %arg18: memref<1x4xf32, #tpu.memory_space<vmem>>, %arg19: memref<32x64xf32, #tpu.memory_space<vmem>>, %arg20: memref<1x64xf32, #tpu.memory_space<vmem>>, %arg21: memref<64x64xf32, #tpu.memory_space<vmem>>, %arg22: memref<1x64xf32, #tpu.memory_space<vmem>>, %arg23: memref<64x1xf32, #tpu.memory_space<vmem>>, %arg24: memref<1x1xf32, #tpu.memory_space<vmem>>, %arg25: memref<2x4xf32, #tpu.memory_space<vmem>>, %arg26: memref<16x1xf32, #tpu.memory_space<vmem>>) attributes {dimension_semantics = [], scalar_prefetch = 0 : i64, scratch_operands = 0 : i64, tpu.core_type = #tpu.core_type<tc>} {
    %0 = tpu.iota {dimensions = array<i32: 1>} : vector<128x16xi32>
    %c0 = arith.constant 0 : index
    %c0_0 = arith.constant 0 : index
    %1 = vector.load %arg3[%c0, %c0_0] : memref<128x1xi32, #tpu.memory_space<vmem>>, vector<128x1xi32>
    %2 = vector.broadcast %1 : vector<128x1xi32> to vector<128x16xi32>
    %3 = arith.cmpi eq, %2, %0 : vector<128x16xi32>
    %4 = arith.extui %3 : vector<128x16xi1> to vector<128x16xi32>
    %5 = arith.sitofp %4 : vector<128x16xi32> to vector<128x16xf32>
    %c0_1 = arith.constant 0 : index
    %c0_2 = arith.constant 0 : index
    %6 = vector.load %arg4[%c0_1, %c0_2] : memref<128x1xi32, #tpu.memory_space<vmem>>, vector<128x1xi32>
    %7 = vector.broadcast %6 : vector<128x1xi32> to vector<128x16xi32>
    %8 = arith.cmpi eq, %7, %0 : vector<128x16xi32>
    %9 = arith.extui %8 : vector<128x16xi1> to vector<128x16xi32>
    %10 = arith.sitofp %9 : vector<128x16xi32> to vector<128x16xf32>
    %11 = arith.subf %5, %10 : vector<128x16xf32>
    %12 = arith.truncf %11 : vector<128x16xf32> to vector<128x16xbf16>
    %13 = tpu.iota {dimensions = array<i32: 0>} : vector<16x128xi32>
    %14 = tpu.iota {dimensions = array<i32: 1>} : vector<16x128xi32>
    %c8_i32 = arith.constant 8 : i32
    %15 = vector.broadcast %c8_i32 : i32 to vector<16x128xi32>
    %16 = arith.muli %13, %15 : vector<16x128xi32>
    %17 = arith.subi %14, %16 : vector<16x128xi32>
    %c0_i32 = arith.constant 0 : i32
    %18 = vector.broadcast %c0_i32 : i32 to vector<16x128xi32>
    %19 = arith.cmpi sge, %17, %18 : vector<16x128xi32>
    %c8_i32_3 = arith.constant 8 : i32
    %20 = vector.broadcast %c8_i32_3 : i32 to vector<16x128xi32>
    %21 = arith.cmpi slt, %17, %20 : vector<16x128xi32>
    %22 = arith.andi %19, %21 : vector<16x128xi1>
    %23 = arith.extui %22 : vector<16x128xi1> to vector<16x128xi32>
    %24 = arith.sitofp %23 : vector<16x128xi32> to vector<16x128xf32>
    %25 = arith.truncf %24 : vector<16x128xf32> to vector<16x128xbf16>
    %c0_4 = arith.constant 0 : index
    %c0_5 = arith.constant 0 : index
    %26 = vector.load %arg1[%c0_4, %c0_5] : memref<128x1xf32, #tpu.memory_space<vmem>>, vector<128x1xf32>
    %c0_6 = arith.constant 0 : index
    %c0_7 = arith.constant 0 : index
    %27 = vector.load %arg10[%c0_6, %c0_7] : memref<1x64xf32, #tpu.memory_space<vmem>>, vector<1x64xf32>
    %c0_8 = arith.constant 0 : index
    %c0_9 = arith.constant 0 : index
    %28 = vector.load %arg12[%c0_8, %c0_9] : memref<1x128xf32, #tpu.memory_space<vmem>>, vector<1x128xf32>
    %c0_10 = arith.constant 0 : index
    %c0_11 = arith.constant 0 : index
    %29 = vector.load %arg0[%c0_10, %c0_11] : memref<16x4xf32, #tpu.memory_space<vmem>>, vector<16x4xf32>
    %c0_12 = arith.constant 0 : index
    %c0_13 = arith.constant 0 : index
    %30 = vector.load %arg6[%c0_12, %c0_13] : memref<4x32xf32, #tpu.memory_space<vmem>>, vector<4x32xf32>
    %cst = arith.constant dense<0.000000e+00> : vector<16x32xf32>
    %31 = tpu.matmul %29, %30, %cst {dimension_numbers = #tpu.dot_dimension_numbers<[1], [0], [0], [1], [0, 0, 1, 1], [], []>} : vector<16x4xf32>, vector<4x32xf32>, vector<16x32xf32> -> vector<16x32xf32>
    %c0_14 = arith.constant 0 : index
    %c0_15 = arith.constant 0 : index
    %32 = vector.load %arg7[%c0_14, %c0_15] : memref<1x32xf32, #tpu.memory_space<vmem>>, vector<1x32xf32>
    %33 = vector.broadcast %32 : vector<1x32xf32> to vector<16x32xf32>
    %34 = arith.addf %31, %33 : vector<16x32xf32>
    %c0_16 = arith.constant 0 : index
    %c0_17 = arith.constant 0 : index
    %35 = vector.load %arg8[%c0_16, %c0_17] : memref<32x72xbf16, #tpu.memory_space<vmem>>, vector<32x72xbf16>
    %36 = arith.truncf %34 : vector<16x32xf32> to vector<16x32xbf16>
    %cst_18 = arith.constant dense<0.000000e+00> : vector<16x72xf32>
    %37 = tpu.matmul %36, %35, %cst_18 {dimension_numbers = #tpu.dot_dimension_numbers<[1], [0], [0], [1], [0, 0, 1, 1], [], []>} : vector<16x32xbf16>, vector<32x72xbf16>, vector<16x72xf32> -> vector<16x72xf32>
    %38 = arith.truncf %37 : vector<16x72xf32> to vector<16x72xbf16>
    %cst_19 = arith.constant dense<0.000000e+00> : vector<128x72xf32>
    %39 = tpu.matmul %12, %38, %cst_19 {dimension_numbers = #tpu.dot_dimension_numbers<[1], [0], [0], [1], [0, 0, 1, 1], [], []>} : vector<128x16xbf16>, vector<16x72xbf16>, vector<128x72xf32> -> vector<128x72xf32>
    %c0_20 = arith.constant 0 : index
    %c0_21 = arith.constant 0 : index
    %40 = vector.load %arg2[%c0_20, %c0_21] : memref<128x72xf32, #tpu.memory_space<vmem>>, vector<128x72xf32>
    %41 = arith.addf %39, %40 : vector<128x72xf32>
    %cst_22 = arith.constant 0.000000e+00 : f32
    %42 = vector.broadcast %cst_22 : f32 to vector<128x72xf32>
    %43 = arith.maximumf %41, %42 : vector<128x72xf32>
    %c0_23 = arith.constant 0 : index
    %c0_24 = arith.constant 0 : index
    %44 = vector.load %arg9[%c0_23, %c0_24] : memref<72x64xbf16, #tpu.memory_space<vmem>>, vector<72x64xbf16>
    %45 = arith.truncf %43 : vector<128x72xf32> to vector<128x72xbf16>
    %cst_25 = arith.constant dense<0.000000e+00> : vector<128x64xf32>
    %46 = tpu.matmul %45, %44, %cst_25 {dimension_numbers = #tpu.dot_dimension_numbers<[1], [0], [0], [1], [0, 0, 1, 1], [], []>} : vector<128x72xbf16>, vector<72x64xbf16>, vector<128x64xf32> -> vector<128x64xf32>
    %47 = vector.broadcast %27 : vector<1x64xf32> to vector<128x64xf32>
    %48 = arith.addf %46, %47 : vector<128x64xf32>
    %49 = vector.extract_strided_slice %48 {offsets = [0, 32], sizes = [128, 32], strides = [1, 1]} : vector<128x64xf32> to vector<128x32xf32>
    %50 = arith.negf %49 : vector<128x32xf32>
    %51 = math.exp %50 : vector<128x32xf32>
    %cst_26 = arith.constant 1.000000e+00 : f32
    %52 = vector.broadcast %cst_26 : f32 to vector<128x32xf32>
    %53 = arith.addf %52, %51 : vector<128x32xf32>
    %54 = arith.divf %52, %53 : vector<128x32xf32>
    %55 = vector.extract_strided_slice %48 {offsets = [0, 0], sizes = [128, 32], strides = [1, 1]} : vector<128x64xf32> to vector<128x32xf32>
    %56 = arith.mulf %54, %55 : vector<128x32xf32>
    %57 = vector.broadcast %26 : vector<128x1xf32> to vector<128x32xf32>
    %58 = arith.mulf %56, %57 : vector<128x32xf32>
    %59 = arith.truncf %58 : vector<128x32xf32> to vector<128x32xbf16>
    %cst_27 = arith.constant dense<0.000000e+00> : vector<16x32xf32>
    %60 = tpu.matmul %25, %59, %cst_27 {dimension_numbers = #tpu.dot_dimension_numbers<[1], [0], [0], [1], [0, 0, 1, 1], [], []>} : vector<16x128xbf16>, vector<128x32xbf16>, vector<16x32xf32> -> vector<16x32xf32>
    %61 = tpu.concatenate %60, %34 in 1 : vector<16x32xf32>, vector<16x32xf32> -> vector<16x64xf32>
    %c0_28 = arith.constant 0 : index
    %c0_29 = arith.constant 0 : index
    %62 = vector.load %arg11[%c0_28, %c0_29] : memref<64x128xf32, #tpu.memory_space<vmem>>, vector<64x128xf32>
    %cst_30 = arith.constant dense<0.000000e+00> : vector<16x128xf32>
    %63 = tpu.matmul %61, %62, %cst_30 {dimension_numbers = #tpu.dot_dimension_numbers<[1], [0], [0], [1], [0, 0, 1, 1], [], []>} : vector<16x64xf32>, vector<64x128xf32>, vector<16x128xf32> -> vector<16x128xf32>
    %64 = vector.broadcast %28 : vector<1x128xf32> to vector<16x128xf32>
    %65 = arith.addf %63, %64 : vector<16x128xf32>
    %66 = vector.extract_strided_slice %65 {offsets = [0, 0], sizes = [16, 32], strides = [1, 1]} : vector<16x128xf32> to vector<16x32xf32>
    %67 = arith.negf %66 : vector<16x32xf32>
    %68 = math.exp %67 : vector<16x32xf32>
    %cst_31 = arith.constant 1.000000e+00 : f32
    %69 = vector.broadcast %cst_31 : f32 to vector<16x32xf32>
    %70 = arith.addf %69, %68 : vector<16x32xf32>
    %71 = arith.divf %69, %70 : vector<16x32xf32>
    %72 = vector.extract_strided_slice %65 {offsets = [0, 32], sizes = [16, 32], strides = [1, 1]} : vector<16x128xf32> to vector<16x32xf32>
    %73 = arith.negf %72 : vector<16x32xf32>
    %74 = math.exp %73 : vector<16x32xf32>
    %cst_32 = arith.constant 1.000000e+00 : f32
    %75 = vector.broadcast %cst_32 : f32 to vector<16x32xf32>
    %76 = arith.addf %75, %74 : vector<16x32xf32>
    %77 = arith.divf %75, %76 : vector<16x32xf32>
    %78 = vector.extract_strided_slice %65 {offsets = [0, 64], sizes = [16, 32], strides = [1, 1]} : vector<16x128xf32> to vector<16x32xf32>
    %79 = vector.extract_strided_slice %65 {offsets = [0, 96], sizes = [16, 32], strides = [1, 1]} : vector<16x128xf32> to vector<16x32xf32>
    %80 = arith.mulf %71, %79 : vector<16x32xf32>
    %81 = arith.addf %78, %80 : vector<16x32xf32>
    %82 = math.tanh %81 : vector<16x32xf32>
    %cst_33 = arith.constant 1.000000e+00 : f32
    %83 = vector.broadcast %cst_33 : f32 to vector<16x32xf32>
    %84 = arith.subf %83, %77 : vector<16x32xf32>
    %85 = arith.mulf %84, %82 : vector<16x32xf32>
    %86 = arith.mulf %77, %34 : vector<16x32xf32>
    %87 = arith.addf %85, %86 : vector<16x32xf32>
    %c0_34 = arith.constant 0 : index
    %c0_35 = arith.constant 0 : index
    %88 = vector.load %arg8[%c0_34, %c0_35] : memref<32x72xbf16, #tpu.memory_space<vmem>>, vector<32x72xbf16>
    %89 = arith.truncf %87 : vector<16x32xf32> to vector<16x32xbf16>
    %cst_36 = arith.constant dense<0.000000e+00> : vector<16x72xf32>
    %90 = tpu.matmul %89, %88, %cst_36 {dimension_numbers = #tpu.dot_dimension_numbers<[1], [0], [0], [1], [0, 0, 1, 1], [], []>} : vector<16x32xbf16>, vector<32x72xbf16>, vector<16x72xf32> -> vector<16x72xf32>
    %91 = arith.truncf %90 : vector<16x72xf32> to vector<16x72xbf16>
    %cst_37 = arith.constant dense<0.000000e+00> : vector<128x72xf32>
    %92 = tpu.matmul %12, %91, %cst_37 {dimension_numbers = #tpu.dot_dimension_numbers<[1], [0], [0], [1], [0, 0, 1, 1], [], []>} : vector<128x16xbf16>, vector<16x72xbf16>, vector<128x72xf32> -> vector<128x72xf32>
    %c0_38 = arith.constant 0 : index
    %c0_39 = arith.constant 0 : index
    %93 = vector.load %arg2[%c0_38, %c0_39] : memref<128x72xf32, #tpu.memory_space<vmem>>, vector<128x72xf32>
    %94 = arith.addf %92, %93 : vector<128x72xf32>
    %cst_40 = arith.constant 0.000000e+00 : f32
    %95 = vector.broadcast %cst_40 : f32 to vector<128x72xf32>
    %96 = arith.maximumf %94, %95 : vector<128x72xf32>
    %c0_41 = arith.constant 0 : index
    %c0_42 = arith.constant 0 : index
    %97 = vector.load %arg9[%c0_41, %c0_42] : memref<72x64xbf16, #tpu.memory_space<vmem>>, vector<72x64xbf16>
    %98 = arith.truncf %96 : vector<128x72xf32> to vector<128x72xbf16>
    %cst_43 = arith.constant dense<0.000000e+00> : vector<128x64xf32>
    %99 = tpu.matmul %98, %97, %cst_43 {dimension_numbers = #tpu.dot_dimension_numbers<[1], [0], [0], [1], [0, 0, 1, 1], [], []>} : vector<128x72xbf16>, vector<72x64xbf16>, vector<128x64xf32> -> vector<128x64xf32>
    %100 = vector.broadcast %27 : vector<1x64xf32> to vector<128x64xf32>
    %101 = arith.addf %99, %100 : vector<128x64xf32>
    %102 = vector.extract_strided_slice %101 {offsets = [0, 32], sizes = [128, 32], strides = [1, 1]} : vector<128x64xf32> to vector<128x32xf32>
    %103 = arith.negf %102 : vector<128x32xf32>
    %104 = math.exp %103 : vector<128x32xf32>
    %cst_44 = arith.constant 1.000000e+00 : f32
    %105 = vector.broadcast %cst_44 : f32 to vector<128x32xf32>
    %106 = arith.addf %105, %104 : vector<128x32xf32>
    %107 = arith.divf %105, %106 : vector<128x32xf32>
    %108 = vector.extract_strided_slice %101 {offsets = [0, 0], sizes = [128, 32], strides = [1, 1]} : vector<128x64xf32> to vector<128x32xf32>
    %109 = arith.mulf %107, %108 : vector<128x32xf32>
    %110 = vector.broadcast %26 : vector<128x1xf32> to vector<128x32xf32>
    %111 = arith.mulf %109, %110 : vector<128x32xf32>
    %112 = arith.truncf %111 : vector<128x32xf32> to vector<128x32xbf16>
    %cst_45 = arith.constant dense<0.000000e+00> : vector<16x32xf32>
    %113 = tpu.matmul %25, %112, %cst_45 {dimension_numbers = #tpu.dot_dimension_numbers<[1], [0], [0], [1], [0, 0, 1, 1], [], []>} : vector<16x128xbf16>, vector<128x32xbf16>, vector<16x32xf32> -> vector<16x32xf32>
    %114 = tpu.concatenate %113, %87 in 1 : vector<16x32xf32>, vector<16x32xf32> -> vector<16x64xf32>
    %c0_46 = arith.constant 0 : index
    %c0_47 = arith.constant 0 : index
    %115 = vector.load %arg11[%c0_46, %c0_47] : memref<64x128xf32, #tpu.memory_space<vmem>>, vector<64x128xf32>
    %cst_48 = arith.constant dense<0.000000e+00> : vector<16x128xf32>
    %116 = tpu.matmul %114, %115, %cst_48 {dimension_numbers = #tpu.dot_dimension_numbers<[1], [0], [0], [1], [0, 0, 1, 1], [], []>} : vector<16x64xf32>, vector<64x128xf32>, vector<16x128xf32> -> vector<16x128xf32>
    %117 = vector.broadcast %28 : vector<1x128xf32> to vector<16x128xf32>
    %118 = arith.addf %116, %117 : vector<16x128xf32>
    %119 = vector.extract_strided_slice %118 {offsets = [0, 0], sizes = [16, 32], strides = [1, 1]} : vector<16x128xf32> to vector<16x32xf32>
    %120 = arith.negf %119 : vector<16x32xf32>
    %121 = math.exp %120 : vector<16x32xf32>
    %cst_49 = arith.constant 1.000000e+00 : f32
    %122 = vector.broadcast %cst_49 : f32 to vector<16x32xf32>
    %123 = arith.addf %122, %121 : vector<16x32xf32>
    %124 = arith.divf %122, %123 : vector<16x32xf32>
    %125 = vector.extract_strided_slice %118 {offsets = [0, 32], sizes = [16, 32], strides = [1, 1]} : vector<16x128xf32> to vector<16x32xf32>
    %126 = arith.negf %125 : vector<16x32xf32>
    %127 = math.exp %126 : vector<16x32xf32>
    %cst_50 = arith.constant 1.000000e+00 : f32
    %128 = vector.broadcast %cst_50 : f32 to vector<16x32xf32>
    %129 = arith.addf %128, %127 : vector<16x32xf32>
    %130 = arith.divf %128, %129 : vector<16x32xf32>
    %131 = vector.extract_strided_slice %118 {offsets = [0, 64], sizes = [16, 32], strides = [1, 1]} : vector<16x128xf32> to vector<16x32xf32>
    %132 = vector.extract_strided_slice %118 {offsets = [0, 96], sizes = [16, 32], strides = [1, 1]} : vector<16x128xf32> to vector<16x32xf32>
    %133 = arith.mulf %124, %132 : vector<16x32xf32>
    %134 = arith.addf %131, %133 : vector<16x32xf32>
    %135 = math.tanh %134 : vector<16x32xf32>
    %cst_51 = arith.constant 1.000000e+00 : f32
    %136 = vector.broadcast %cst_51 : f32 to vector<16x32xf32>
    %137 = arith.subf %136, %130 : vector<16x32xf32>
    %138 = arith.mulf %137, %135 : vector<16x32xf32>
    %139 = arith.mulf %130, %87 : vector<16x32xf32>
    %140 = arith.addf %138, %139 : vector<16x32xf32>
    %c0_52 = arith.constant 0 : index
    %c0_53 = arith.constant 0 : index
    %141 = vector.load %arg8[%c0_52, %c0_53] : memref<32x72xbf16, #tpu.memory_space<vmem>>, vector<32x72xbf16>
    %142 = arith.truncf %140 : vector<16x32xf32> to vector<16x32xbf16>
    %cst_54 = arith.constant dense<0.000000e+00> : vector<16x72xf32>
    %143 = tpu.matmul %142, %141, %cst_54 {dimension_numbers = #tpu.dot_dimension_numbers<[1], [0], [0], [1], [0, 0, 1, 1], [], []>} : vector<16x32xbf16>, vector<32x72xbf16>, vector<16x72xf32> -> vector<16x72xf32>
    %144 = arith.truncf %143 : vector<16x72xf32> to vector<16x72xbf16>
    %cst_55 = arith.constant dense<0.000000e+00> : vector<128x72xf32>
    %145 = tpu.matmul %12, %144, %cst_55 {dimension_numbers = #tpu.dot_dimension_numbers<[1], [0], [0], [1], [0, 0, 1, 1], [], []>} : vector<128x16xbf16>, vector<16x72xbf16>, vector<128x72xf32> -> vector<128x72xf32>
    %c0_56 = arith.constant 0 : index
    %c0_57 = arith.constant 0 : index
    %146 = vector.load %arg2[%c0_56, %c0_57] : memref<128x72xf32, #tpu.memory_space<vmem>>, vector<128x72xf32>
    %147 = arith.addf %145, %146 : vector<128x72xf32>
    %cst_58 = arith.constant 0.000000e+00 : f32
    %148 = vector.broadcast %cst_58 : f32 to vector<128x72xf32>
    %149 = arith.maximumf %147, %148 : vector<128x72xf32>
    %c0_59 = arith.constant 0 : index
    %c0_60 = arith.constant 0 : index
    %150 = vector.load %arg9[%c0_59, %c0_60] : memref<72x64xbf16, #tpu.memory_space<vmem>>, vector<72x64xbf16>
    %151 = arith.truncf %149 : vector<128x72xf32> to vector<128x72xbf16>
    %cst_61 = arith.constant dense<0.000000e+00> : vector<128x64xf32>
    %152 = tpu.matmul %151, %150, %cst_61 {dimension_numbers = #tpu.dot_dimension_numbers<[1], [0], [0], [1], [0, 0, 1, 1], [], []>} : vector<128x72xbf16>, vector<72x64xbf16>, vector<128x64xf32> -> vector<128x64xf32>
    %153 = vector.broadcast %27 : vector<1x64xf32> to vector<128x64xf32>
    %154 = arith.addf %152, %153 : vector<128x64xf32>
    %155 = vector.extract_strided_slice %154 {offsets = [0, 32], sizes = [128, 32], strides = [1, 1]} : vector<128x64xf32> to vector<128x32xf32>
    %156 = arith.negf %155 : vector<128x32xf32>
    %157 = math.exp %156 : vector<128x32xf32>
    %cst_62 = arith.constant 1.000000e+00 : f32
    %158 = vector.broadcast %cst_62 : f32 to vector<128x32xf32>
    %159 = arith.addf %158, %157 : vector<128x32xf32>
    %160 = arith.divf %158, %159 : vector<128x32xf32>
    %161 = vector.extract_strided_slice %154 {offsets = [0, 0], sizes = [128, 32], strides = [1, 1]} : vector<128x64xf32> to vector<128x32xf32>
    %162 = arith.mulf %160, %161 : vector<128x32xf32>
    %163 = vector.broadcast %26 : vector<128x1xf32> to vector<128x32xf32>
    %164 = arith.mulf %162, %163 : vector<128x32xf32>
    %165 = arith.truncf %164 : vector<128x32xf32> to vector<128x32xbf16>
    %cst_63 = arith.constant dense<0.000000e+00> : vector<16x32xf32>
    %166 = tpu.matmul %25, %165, %cst_63 {dimension_numbers = #tpu.dot_dimension_numbers<[1], [0], [0], [1], [0, 0, 1, 1], [], []>} : vector<16x128xbf16>, vector<128x32xbf16>, vector<16x32xf32> -> vector<16x32xf32>
    %167 = tpu.concatenate %166, %140 in 1 : vector<16x32xf32>, vector<16x32xf32> -> vector<16x64xf32>
    %c0_64 = arith.constant 0 : index
    %c0_65 = arith.constant 0 : index
    %168 = vector.load %arg11[%c0_64, %c0_65] : memref<64x128xf32, #tpu.memory_space<vmem>>, vector<64x128xf32>
    %cst_66 = arith.constant dense<0.000000e+00> : vector<16x128xf32>
    %169 = tpu.matmul %167, %168, %cst_66 {dimension_numbers = #tpu.dot_dimension_numbers<[1], [0], [0], [1], [0, 0, 1, 1], [], []>} : vector<16x64xf32>, vector<64x128xf32>, vector<16x128xf32> -> vector<16x128xf32>
    %170 = vector.broadcast %28 : vector<1x128xf32> to vector<16x128xf32>
    %171 = arith.addf %169, %170 : vector<16x128xf32>
    %172 = vector.extract_strided_slice %171 {offsets = [0, 0], sizes = [16, 32], strides = [1, 1]} : vector<16x128xf32> to vector<16x32xf32>
    %173 = arith.negf %172 : vector<16x32xf32>
    %174 = math.exp %173 : vector<16x32xf32>
    %cst_67 = arith.constant 1.000000e+00 : f32
    %175 = vector.broadcast %cst_67 : f32 to vector<16x32xf32>
    %176 = arith.addf %175, %174 : vector<16x32xf32>
    %177 = arith.divf %175, %176 : vector<16x32xf32>
    %178 = vector.extract_strided_slice %171 {offsets = [0, 32], sizes = [16, 32], strides = [1, 1]} : vector<16x128xf32> to vector<16x32xf32>
    %179 = arith.negf %178 : vector<16x32xf32>
    %180 = math.exp %179 : vector<16x32xf32>
    %cst_68 = arith.constant 1.000000e+00 : f32
    %181 = vector.broadcast %cst_68 : f32 to vector<16x32xf32>
    %182 = arith.addf %181, %180 : vector<16x32xf32>
    %183 = arith.divf %181, %182 : vector<16x32xf32>
    %184 = vector.extract_strided_slice %171 {offsets = [0, 64], sizes = [16, 32], strides = [1, 1]} : vector<16x128xf32> to vector<16x32xf32>
    %185 = vector.extract_strided_slice %171 {offsets = [0, 96], sizes = [16, 32], strides = [1, 1]} : vector<16x128xf32> to vector<16x32xf32>
    %186 = arith.mulf %177, %185 : vector<16x32xf32>
    %187 = arith.addf %184, %186 : vector<16x32xf32>
    %188 = math.tanh %187 : vector<16x32xf32>
    %cst_69 = arith.constant 1.000000e+00 : f32
    %189 = vector.broadcast %cst_69 : f32 to vector<16x32xf32>
    %190 = arith.subf %189, %183 : vector<16x32xf32>
    %191 = arith.mulf %190, %188 : vector<16x32xf32>
    %192 = arith.mulf %183, %140 : vector<16x32xf32>
    %193 = arith.addf %191, %192 : vector<16x32xf32>
    %194 = tpu.iota {dimensions = array<i32: 0>} : vector<2x16xi32>
    %195 = tpu.iota {dimensions = array<i32: 1>} : vector<2x16xi32>
    %c8_i32_70 = arith.constant 8 : i32
    %196 = vector.broadcast %c8_i32_70 : i32 to vector<2x16xi32>
    %197 = arith.muli %194, %196 : vector<2x16xi32>
    %c7_i32 = arith.constant 7 : i32
    %198 = vector.broadcast %c7_i32 : i32 to vector<2x16xi32>
    %199 = arith.addi %197, %198 : vector<2x16xi32>
    %200 = arith.cmpi eq, %195, %199 : vector<2x16xi32>
    %201 = arith.extui %200 : vector<2x16xi1> to vector<2x16xi32>
    %202 = arith.sitofp %201 : vector<2x16xi32> to vector<2x16xf32>
    %cst_71 = arith.constant dense<0.000000e+00> : vector<2x32xf32>
    %203 = tpu.matmul %202, %193, %cst_71 {dimension_numbers = #tpu.dot_dimension_numbers<[1], [0], [0], [1], [0, 0, 1, 1], [], []>} : vector<2x16xf32>, vector<16x32xf32>, vector<2x32xf32> -> vector<2x32xf32>
    %c0_72 = arith.constant 0 : index
    %c0_73 = arith.constant 0 : index
    %204 = vector.load %arg13[%c0_72, %c0_73] : memref<32x32xf32, #tpu.memory_space<vmem>>, vector<32x32xf32>
    %cst_74 = arith.constant dense<0.000000e+00> : vector<2x32xf32>
    %205 = tpu.matmul %203, %204, %cst_74 {dimension_numbers = #tpu.dot_dimension_numbers<[1], [0], [0], [1], [0, 0, 1, 1], [], []>} : vector<2x32xf32>, vector<32x32xf32>, vector<2x32xf32> -> vector<2x32xf32>
    %c0_75 = arith.constant 0 : index
    %c0_76 = arith.constant 0 : index
    %206 = vector.load %arg14[%c0_75, %c0_76] : memref<1x32xf32, #tpu.memory_space<vmem>>, vector<1x32xf32>
    %207 = vector.broadcast %206 : vector<1x32xf32> to vector<2x32xf32>
    %208 = arith.addf %205, %207 : vector<2x32xf32>
    %cst_77 = arith.constant 0.000000e+00 : f32
    %209 = vector.broadcast %cst_77 : f32 to vector<2x32xf32>
    %210 = arith.maximumf %208, %209 : vector<2x32xf32>
    %c0_78 = arith.constant 0 : index
    %c0_79 = arith.constant 0 : index
    %211 = vector.load %arg15[%c0_78, %c0_79] : memref<32x32xf32, #tpu.memory_space<vmem>>, vector<32x32xf32>
    %cst_80 = arith.constant dense<0.000000e+00> : vector<2x32xf32>
    %212 = tpu.matmul %210, %211, %cst_80 {dimension_numbers = #tpu.dot_dimension_numbers<[1], [0], [0], [1], [0, 0, 1, 1], [], []>} : vector<2x32xf32>, vector<32x32xf32>, vector<2x32xf32> -> vector<2x32xf32>
    %c0_81 = arith.constant 0 : index
    %c0_82 = arith.constant 0 : index
    %213 = vector.load %arg16[%c0_81, %c0_82] : memref<1x32xf32, #tpu.memory_space<vmem>>, vector<1x32xf32>
    %214 = vector.broadcast %213 : vector<1x32xf32> to vector<2x32xf32>
    %215 = arith.addf %212, %214 : vector<2x32xf32>
    %cst_83 = arith.constant 0.000000e+00 : f32
    %216 = vector.broadcast %cst_83 : f32 to vector<2x32xf32>
    %217 = arith.maximumf %215, %216 : vector<2x32xf32>
    %c0_84 = arith.constant 0 : index
    %c0_85 = arith.constant 0 : index
    %218 = vector.load %arg17[%c0_84, %c0_85] : memref<32x4xf32, #tpu.memory_space<vmem>>, vector<32x4xf32>
    %cst_86 = arith.constant dense<0.000000e+00> : vector<2x4xf32>
    %219 = tpu.matmul %217, %218, %cst_86 {dimension_numbers = #tpu.dot_dimension_numbers<[1], [0], [0], [1], [0, 0, 1, 1], [], []>} : vector<2x32xf32>, vector<32x4xf32>, vector<2x4xf32> -> vector<2x4xf32>
    %c0_87 = arith.constant 0 : index
    %c0_88 = arith.constant 0 : index
    %220 = vector.load %arg18[%c0_87, %c0_88] : memref<1x4xf32, #tpu.memory_space<vmem>>, vector<1x4xf32>
    %221 = vector.broadcast %220 : vector<1x4xf32> to vector<2x4xf32>
    %222 = arith.addf %219, %221 : vector<2x4xf32>
    %cst_89 = arith.constant dense<0xFF800000> : vector<2xf32>
    %223 = vector.multi_reduction <maximumf>, %222, %cst_89 [1] : vector<2x4xf32> to vector<2xf32>
    %224 = vector.shape_cast %223 : vector<2xf32> to vector<2x1xf32>
    %225 = vector.broadcast %224 : vector<2x1xf32> to vector<2x4xf32>
    %226 = arith.subf %222, %225 : vector<2x4xf32>
    %227 = math.exp %226 : vector<2x4xf32>
    %cst_90 = arith.constant dense<0.000000e+00> : vector<2xf32>
    %228 = vector.multi_reduction <add>, %227, %cst_90 [1] : vector<2x4xf32> to vector<2xf32>
    %229 = vector.shape_cast %228 : vector<2xf32> to vector<2x1xf32>
    %230 = vector.broadcast %229 : vector<2x1xf32> to vector<2x4xf32>
    %231 = arith.divf %227, %230 : vector<2x4xf32>
    %c0_91 = arith.constant 0 : index
    %c0_92 = arith.constant 0 : index
    %232 = vector.load %arg25[%c0_91, %c0_92] : memref<2x4xf32, #tpu.memory_space<vmem>>, vector<2x4xf32>
    tpu.vector_store %arg25[%c0_91, %c0_92], %231 {strides = array<i32>} : memref<2x4xf32, #tpu.memory_space<vmem>>, vector<2x4xf32>,
    %233 = tpu.iota {dimensions = array<i32: 0>} : vector<16x16xi32>
    %234 = tpu.iota {dimensions = array<i32: 1>} : vector<16x16xi32>
    %c0_93 = arith.constant 0 : index
    %c0_94 = arith.constant 0 : index
    %235 = vector.load %arg5[%c0_93, %c0_94] : memref<16x1xi32, #tpu.memory_space<vmem>>, vector<16x1xi32>
    %236 = vector.broadcast %235 : vector<16x1xi32> to vector<16x16xi32>
    %237 = arith.cmpi eq, %234, %236 : vector<16x16xi32>
    %238 = arith.extui %237 : vector<16x16xi1> to vector<16x16xi32>
    %239 = arith.sitofp %238 : vector<16x16xi32> to vector<16x16xf32>
    %240 = arith.cmpi eq, %234, %233 : vector<16x16xi32>
    %241 = arith.extui %240 : vector<16x16xi1> to vector<16x16xi32>
    %242 = arith.sitofp %241 : vector<16x16xi32> to vector<16x16xf32>
    %243 = arith.subf %239, %242 : vector<16x16xf32>
    %cst_95 = arith.constant dense<0.000000e+00> : vector<16x32xf32>
    %244 = tpu.matmul %243, %193, %cst_95 {dimension_numbers = #tpu.dot_dimension_numbers<[1], [0], [0], [1], [0, 0, 1, 1], [], []>} : vector<16x16xf32>, vector<16x32xf32>, vector<16x32xf32> -> vector<16x32xf32>
    %c0_96 = arith.constant 0 : index
    %c0_97 = arith.constant 0 : index
    %245 = vector.load %arg19[%c0_96, %c0_97] : memref<32x64xf32, #tpu.memory_space<vmem>>, vector<32x64xf32>
    %cst_98 = arith.constant dense<0.000000e+00> : vector<16x64xf32>
    %246 = tpu.matmul %244, %245, %cst_98 {dimension_numbers = #tpu.dot_dimension_numbers<[1], [0], [0], [1], [0, 0, 1, 1], [], []>} : vector<16x32xf32>, vector<32x64xf32>, vector<16x64xf32> -> vector<16x64xf32>
    %c0_99 = arith.constant 0 : index
    %c0_100 = arith.constant 0 : index
    %247 = vector.load %arg20[%c0_99, %c0_100] : memref<1x64xf32, #tpu.memory_space<vmem>>, vector<1x64xf32>
    %248 = vector.broadcast %247 : vector<1x64xf32> to vector<16x64xf32>
    %249 = arith.addf %246, %248 : vector<16x64xf32>
    %cst_101 = arith.constant 0.000000e+00 : f32
    %250 = vector.broadcast %cst_101 : f32 to vector<16x64xf32>
    %251 = arith.maximumf %249, %250 : vector<16x64xf32>
    %c0_102 = arith.constant 0 : index
    %c0_103 = arith.constant 0 : index
    %252 = vector.load %arg21[%c0_102, %c0_103] : memref<64x64xf32, #tpu.memory_space<vmem>>, vector<64x64xf32>
    %cst_104 = arith.constant dense<0.000000e+00> : vector<16x64xf32>
    %253 = tpu.matmul %251, %252, %cst_104 {dimension_numbers = #tpu.dot_dimension_numbers<[1], [0], [0], [1], [0, 0, 1, 1], [], []>} : vector<16x64xf32>, vector<64x64xf32>, vector<16x64xf32> -> vector<16x64xf32>
    %c0_105 = arith.constant 0 : index
    %c0_106 = arith.constant 0 : index
    %254 = vector.load %arg22[%c0_105, %c0_106] : memref<1x64xf32, #tpu.memory_space<vmem>>, vector<1x64xf32>
    %255 = vector.broadcast %254 : vector<1x64xf32> to vector<16x64xf32>
    %256 = arith.addf %253, %255 : vector<16x64xf32>
    %cst_107 = arith.constant 0.000000e+00 : f32
    %257 = vector.broadcast %cst_107 : f32 to vector<16x64xf32>
    %258 = arith.maximumf %256, %257 : vector<16x64xf32>
    %c0_108 = arith.constant 0 : index
    %c0_109 = arith.constant 0 : index
    %259 = vector.load %arg23[%c0_108, %c0_109] : memref<64x1xf32, #tpu.memory_space<vmem>>, vector<64x1xf32>
    %cst_110 = arith.constant dense<0.000000e+00> : vector<16x1xf32>
    %260 = tpu.matmul %258, %259, %cst_110 {dimension_numbers = #tpu.dot_dimension_numbers<[1], [0], [0], [1], [0, 0, 1, 1], [], []>} : vector<16x64xf32>, vector<64x1xf32>, vector<16x1xf32> -> vector<16x1xf32>
    %c0_111 = arith.constant 0 : index
    %c0_112 = arith.constant 0 : index
    %261 = vector.load %arg24[%c0_111, %c0_112] : memref<1x1xf32, #tpu.memory_space<vmem>>, vector<1x1xf32>
    %262 = vector.broadcast %261 : vector<1x1xf32> to vector<16x1xf32>
    %263 = arith.addf %260, %262 : vector<16x1xf32>
    %264 = arith.negf %263 : vector<16x1xf32>
    %265 = math.exp %264 : vector<16x1xf32>
    %cst_113 = arith.constant 1.000000e+00 : f32
    %266 = vector.broadcast %cst_113 : f32 to vector<16x1xf32>
    %267 = arith.addf %266, %265 : vector<16x1xf32>
    %268 = arith.divf %266, %267 : vector<16x1xf32>
    %c0_114 = arith.constant 0 : index
    %c0_115 = arith.constant 0 : index
    %269 = vector.load %arg26[%c0_114, %c0_115] : memref<16x1xf32, #tpu.memory_space<vmem>>, vector<16x1xf32>
    tpu.vector_store %arg26[%c0_114, %c0_115], %268 {strides = array<i32>} : memref<16x1xf32, #tpu.memory_space<vmem>>, vector<16x1xf32>,
    return
  }
}

</mosaic_0001>

<bundles_post_ra>
// kernel: gnn_forward.1
= control target key start
LH: loop header
LB: loop body
LE: loop exit
PB: predicated region body
PF: predicated region fallthrough
CT: control target
= control target key end

     0   :  { %s6018_s0 = inlined_call_operand.vmem [shape: f32[16,4], index: 0, kind: input, shape index: {}]   ;;  %s6019_s1 = inlined_call_operand.vmem [shape: f32[128,1], index: 1, kind: input, shape index: {}]   ;;  %s6020_s2 = inlined_call_operand.vmem [shape: f32[128,72], index: 2, kind: input, shape index: {}]   ;;  %s6021_s3 = inlined_call_operand.vmem [shape: s32[128,1], index: 3, kind: input, shape index: {}]   ;;  %s6022_s4 = inlined_call_operand.vmem [shape: s32[128,1], index: 4, kind: input, shape index: {}]   ;;  %s6023_s5 = inlined_call_operand.vmem [shape: s32[16,1], index: 5, kind: input, shape index: {}]   ;;  %s6024_s6 = inlined_call_operand.vmem [shape: f32[4,32], index: 6, kind: input, shape index: {}]   ;;  %s6025_s7 = inlined_call_operand.vmem [shape: f32[1,32], index: 7, kind: input, shape index: {}]   ;;  %s6026_s8 = inlined_call_operand.vmem [shape: bf16[32,72], index: 8, kind: input, shape index: {}]   ;;  %s6027_s9 = inlined_call_operand.vmem [shape: bf16[72,64], index: 9, kind: input, shape index: {}]   ;;  %s6028_s10 = inlined_call_operand.vmem [shape: f32[1,64], index: 10, kind: input, shape index: {}]   ;;  %s6029_s11 = inlined_call_operand.vmem [shape: f32[64,128], index: 11, kind: input, shape index: {}]   ;;  %s6030_s12 = inlined_call_operand.vmem [shape: f32[1,128], index: 12, kind: input, shape index: {}]   ;;  %s6031_s13 = inlined_call_operand.vmem [shape: f32[32,32], index: 13, kind: input, shape index: {}]   ;;  %s6032_s14 = inlined_call_operand.vmem [shape: f32[1,32], index: 14, kind: input, shape index: {}]   ;;  %s6033_s15 = inlined_call_operand.vmem [shape: f32[32,32], index: 15, kind: input, shape index: {}]   ;;  %s6034_s16 = inlined_call_operand.vmem [shape: f32[1,32], index: 16, kind: input, shape index: {}]   ;;  %s6035_s17 = inlined_call_operand.vmem [shape: f32[32,4], index: 17, kind: input, shape index: {}]   ;;  %s6036_s18 = inlined_call_operand.vmem [shape: f32[1,4], index: 18, kind: input, shape index: {}]   ;;  %s6037_s19 = inlined_call_operand.vmem [shape: f32[32,64], index: 19, kind: input, shape index: {}]   ;;  %s6038_s20 = inlined_call_operand.vmem [shape: f32[1,64], index: 20, kind: input, shape index: {}]   ;;  %s6039_s21 = inlined_call_operand.vmem [shape: f32[64,64], index: 21, kind: input, shape index: {}]   ;;  %s6040_s22 = inlined_call_operand.vmem [shape: f32[1,64], index: 22, kind: input, shape index: {}]   ;;  %s6041_s23 = inlined_call_operand.vmem [shape: f32[64,1], index: 23, kind: input, shape index: {}]   ;;  %s6042_s24 = inlined_call_operand.<no memory space> [shape: f32[1,1], index: 24, kind: input, shape index: {}]   ;;  %s6043_s25 = inlined_call_operand.hbm [shape: f32[2,4], index: 25, kind: output, shape index: {0}]   ;;  %s6044_s26 = inlined_call_operand.vmem [shape: f32[16,1], index: 26, kind: output, shape index: {1}]  }
   0x1   :  { %6076 = sst [smem:[#allocation18_spill]] %s6018_s0  ;;  %v32_v0 = vstv %s6042_s24 }
   0x2   :  { %6077 = sst [smem:[#allocation19_spill]] %s6019_s1  ;;  %33 = vst [vmem:[#allocation2] sm:$0x1] %v32_v0 }
   0x3   :  { %6078 = sst [smem:[#allocation20_spill]] %s6020_s2 }
   0x4   :  { %6079 = sst [smem:[#allocation21_spill]] %s6021_s3 }
   0x5   :  { %6080 = sst [smem:[#allocation22_spill]] %s6022_s4 }
   0x6   :  { %6081 = sst [smem:[#allocation23_spill]] %s6023_s5 }
   0x7   :  { %6082 = sst [smem:[#allocation24_spill]] %s6024_s6 }
   0x8   :  { %6083 = sst [smem:[#allocation25_spill]] %s6025_s7 }
   0x9   :  { %6084 = sst [smem:[#allocation26_spill]] %s6026_s8 }
   0xa   :  { %6085 = sst [smem:[#allocation27_spill]] %s6027_s9 }
   0xb   :  { %6086 = sst [smem:[#allocation28_spill]] %s6028_s10 }
   0xc   :  { %s6087_s8 = sld [smem:[#allocation24_spill]]  ;;  %vm389_vm0 = vcmask 1043456   ;;  %s6088_s0 = sld [smem:[#allocation18_spill]]  ;;  %vm382_vm1 = vcmask 31744   ;;  %v4713_v6 = vmov 0   ;;  %v6055_v9 = vmov 0.0  }
   0xd   :  { %s6089_s5 = sld [smem:[#allocation22_spill]]  ;;  %s6090_s1 = sld [smem:[#allocation21_spill]]  ;;  %4411 = vset.pattern.permute.xlu1 %v4713_v6  ;;  %4410 = vset.pattern.permute.xlu0 %v4713_v6 }
   0xe   :  { %3916 = vmatprep.subr.bf16.mxu1 %v6055_v9  ;;  %s6091_s29 = sld [smem:[#allocation26_spill]] }
  0x12   :  { %v374_v1 = vld [vmem:[%s6087_s8] sm:$0xf]  ;;  %v373_v3 = vld [vmem:[%s6088_s0 + $0x8] sm:$0xff] }
  0x13   :  { %v372_v2 = vld [vmem:[%s6088_s0] sm:$0xff]  ;;  %3911 = vmatprep.subr.msk.mxu0 %vm389_vm0, %v374_v1  ;;  %v201_v7 = vld [vmem:[%s6089_s5 + $0x8] sm:$0xff]  ;;  %v91_v11 = vld [vmem:[%s6090_s1 + $0x18] sm:$0xff] }
  0x14   :  { %3913 = vmatprep.mubr.msk.f32.mxu0 %vm382_vm1, %v372_v2  ;;  %v200_v4 = vld [vmem:[%s6089_s5] sm:$0xff]  ;;  %3912 = vmatpush3.msk.msra.mxu0 %vm389_vm0, %v374_v1  ;;  %v89_v8 = vld [vmem:[%s6090_s1 + $0x8] sm:$0xff]  ;;  %v90_v12 = vld [vmem:[%s6090_s1 + $0x10] sm:$0xff] }
  0x15   :  { %v88_v5 = vld [vmem:[%s6090_s1] sm:$0xff]  ;;  %3914 = vmatmul.mubr.msk.f32.vlgmr.msra.gmra.mrb[0].mxu0 %vm382_vm1, %v373_v3  ;;  %217 = vperm.xlu1 %4411, %v200_v4  }
  0x16   :  { %105 = vperm.xlu0 %4410, %v88_v5   ;;  %v4887_v10 = vld [vmem:[%s6091_s29] sm:$0xff]  }
  0x17   :  { %3917 = vmatpush3.bf16.msra.mxu1 %v4887_v10 }
  0x18   :  { %3918 = vmatprep.subr.bf16.mxu1 %v6055_v9 }
  0x19   :  { %220 = vperm.xlu1 %4411, %v201_v7  }
  0x1a   :  { %108 = vperm.xlu0 %4410, %v89_v8  }
  0x1b   :  { %34 = vsyncpa [#allocation4], 0  ;;  %v203_v13 = vld [vmem:[%s6089_s5 + $0x18] sm:$0xff]  ;;  %v202_v14 = vld [vmem:[%s6089_s5 + $0x10] sm:$0xff]  ;;  %vm4715_vm2 = vmmov 0   ;;  %s6092_s3 = sld [smem:[#allocation19_spill]]  ;;  %v6054_v44 = vlaneseq }
  0x1c   :  { %v93_v15 = vld [vmem:[%s6090_s1 + $0x28] sm:$0xff]  ;;  %v92_v16 = vld [vmem:[%s6090_s1 + $0x20] sm:$0xff]  ;;  %v95_v19 = vld [vmem:[%s6090_s1 + $0x38] sm:$0xff]  ;;  %3920 = vmatprep.mubr.msk.bf16.mxu1 %vm4715_vm2, %v6055_v9  ;;  %vm547_vm7 = vcmask 130048   ;;  %s6094_s7 = sld [smem:[#allocation25_spill]]  ;;  %vm485_vm8 = vcmask 261120  }
  0x1d   :  { %114 = vperm.xlu1 %4411, %v91_v11   ;;  %v205_v17 = vld [vmem:[%s6089_s5 + $0x28] sm:$0xff]  ;;  %v204_v18 = vld [vmem:[%s6089_s5 + $0x20] sm:$0xff]  ;;  %v94_v20 = vld [vmem:[%s6090_s1 + $0x30] sm:$0xff]  ;;  %v5002_v49 = vand.u32 127, %v6054_v44  ;;  %s6095_s8 = sld [smem:[#allocation27_spill]]  ;;  %s6104_s24 = sld [smem:[#allocation28_spill]] }
  0x1e   :  { %111 = vperm.xlu0 %4410, %v90_v12   ;;  %v4924_v21 = vld [vmem:[%s6091_s29 + $0x8] sm:$0xff]   ;;  %v207_v22 = vld [vmem:[%s6089_s5 + $0x38] sm:$0xff]  ;;  %v206_v23 = vld [vmem:[%s6089_s5 + $0x30] sm:$0xff]  ;;  %s4716_s10 = smov 32   ;;  %s4719_s27 = smov 64  }
  0x1f   :  { %3919 = vmatpush3.bf16.msra.mxu1 %v4924_v21  ;;  %v97_v24 = vld [vmem:[%s6090_s1 + $0x48] sm:$0xff]  ;;  %v96_v25 = vld [vmem:[%s6090_s1 + $0x40] sm:$0xff]  ;;  %v99_v28 = vld [vmem:[%s6090_s1 + $0x58] sm:$0xff]  ;;  %6093 = vst [vmem:[#allocation6_spill] sm:$0xff] %v5002_v49 }
  0x20   :  { %v209_v26 = vld [vmem:[%s6089_s5 + $0x48] sm:$0xff]  ;;  %v208_v27 = vld [vmem:[%s6089_s5 + $0x40] sm:$0xff]  ;;  %v98_v29 = vld [vmem:[%s6090_s1 + $0x50] sm:$0xff] }
  0x21   :  { %226 = vperm.xlu1 %4411, %v203_v13   ;;  %v211_v30 = vld [vmem:[%s6089_s5 + $0x58] sm:$0xff]  ;;  %v210_v31 = vld [vmem:[%s6089_s5 + $0x50] sm:$0xff]  ;;  %v101_v32 = vld [vmem:[%s6090_s1 + $0x68] sm:$0xff] }
  0x22   :  { %223 = vperm.xlu0 %4410, %v202_v14   ;;  %v100_v33 = vld [vmem:[%s6090_s1 + $0x60] sm:$0xff]  ;;  %v213_v34 = vld [vmem:[%s6089_s5 + $0x68] sm:$0xff]  ;;  %v103_v36 = vld [vmem:[%s6090_s1 + $0x78] sm:$0xff] }
  0x23   :  { %v212_v35 = vld [vmem:[%s6089_s5 + $0x60] sm:$0xff]  ;;  %v102_v37 = vld [vmem:[%s6090_s1 + $0x70] sm:$0xff]  ;;  %v215_v38 = vld [vmem:[%s6089_s5 + $0x78] sm:$0xff]  ;;  %s6123_s1 = sld [smem:[#allocation23_spill]] }
  0x24   :  { %v214_v39 = vld [vmem:[%s6089_s5 + $0x70] sm:$0xff]  ;;  %v355_v40 = vld [vmem:[%s6092_s3 + $0x8] sm:$0xff]  ;;  %v354_v41 = vld [vmem:[%s6092_s3] sm:$0xff] }
  0x25   :  { %120 = vperm.xlu1 %4411, %v93_v15   ;;  %v357_v42 = vld [vmem:[%s6092_s3 + $0x18] sm:$0xff]  ;;  %v356_v43 = vld [vmem:[%s6092_s3 + $0x10] sm:$0xff]  ;;  %v359_v45 = vld [vmem:[%s6092_s3 + $0x28] sm:$0xff] }
  0x26   :  { %117 = vperm.xlu0 %4410, %v92_v16   ;;  %v358_v46 = vld [vmem:[%s6092_s3 + $0x20] sm:$0xff]  ;;  %v361_v50 = vld [vmem:[%s6092_s3 + $0x38] sm:$0xff]  ;;  %v360_v51 = vld [vmem:[%s6092_s3 + $0x30] sm:$0xff] }
  0x27   :  { %v363_v54 = vld [vmem:[%s6092_s3 + $0x48] sm:$0xff]  ;;  %v362_v55 = vld [vmem:[%s6092_s3 + $0x40] sm:$0xff]  ;;  %v365_v60 = vld [vmem:[%s6092_s3 + $0x58] sm:$0xff] }
  0x28   :  { %v364_v61 = vld [vmem:[%s6092_s3 + $0x50] sm:$0xff]  ;;  %v367_v0 = vld [vmem:[%s6092_s3 + $0x68] sm:$0xff]  ;;  %v366_v1 = vld [vmem:[%s6092_s3 + $0x60] sm:$0xff] }
  0x29   :  { %232 = vperm.xlu1 %4411, %v205_v17   ;;  %v3573_v3 = vld [vmem:[%s6094_s7] ss:$0 sm:$0xff]  ;;  %v4420_v12 = vld [vmem:[%s6095_s8 + $0x8] sm:$0xff]   ;;  %v4421_v13 = vld [vmem:[%s6095_s8 + $0x10] sm:$0xff]   ;;  %s6097_s7 = sld [smem:[#allocation20_spill]] }
  0x2a   :  { %229 = vperm.xlu0 %4410, %v204_v18   ;;  %v5053_v11 = vld [vmem:[%s6095_s8] sm:$0xff]  }
  0x2b   :  { %3942 = vmatprep.subr.bf16.mxu1 %v5053_v11 }
  0x2d   :  { %126 = vperm.xlu1 %4411, %v95_v19  }
  0x2e   :  { %123 = vperm.xlu0 %4410, %v94_v20  }
  0x31   :  { %238 = vperm.xlu1 %4411, %v207_v22  }
  0x32   :  { %235 = vperm.xlu0 %4410, %v206_v23  }
  0x35   :  { %132 = vperm.xlu1 %4411, %v97_v24  }
  0x36   :  { %129 = vperm.xlu0 %4410, %v96_v25  }
  0x39   :  { %244 = vperm.xlu1 %4411, %v209_v26  }
  0x3a   :  { %241 = vperm.xlu0 %4410, %v208_v27  }
  0x3d   :  { %138 = vperm.xlu1 %4411, %v99_v28  }
  0x3e   :  { %135 = vperm.xlu0 %4410, %v98_v29  }
  0x41   :  { %250 = vperm.xlu1 %4411, %v211_v30  }
  0x42   :  { %247 = vperm.xlu0 %4410, %v210_v31  }
  0x45   :  { %144 = vperm.xlu1 %4411, %v101_v32  }
  0x46   :  { %141 = vperm.xlu0 %4410, %v100_v33  }
  0x49   :  { %256 = vperm.xlu1 %4411, %v213_v34  }
  0x4a   :  { %253 = vperm.xlu0 %4410, %v212_v35  }
  0x4d   :  { %150 = vperm.xlu1 %4411, %v103_v36  }
  0x4e   :  { %147 = vperm.xlu0 %4410, %v102_v37  }
  0x51   :  { %262 = vperm.xlu1 %4411, %v215_v38  }
  0x52   :  { %259 = vperm.xlu0 %4410, %v214_v39  }
  0x55   :  { %1043 = vperm.xlu1 %4411, %v355_v40  }
  0x56   :  { %1038 = vperm.xlu0 %4410, %v354_v41  }
  0x59   :  { %1053 = vperm.xlu1 %4411, %v357_v42  }
  0x5a   :  { %1048 = vperm.xlu0 %4410, %v356_v43  }
  0x5d   :  { %1063 = vperm.xlu1 %4411, %v359_v45  }
  0x5e   :  { %1058 = vperm.xlu0 %4410, %v358_v46  }
  0x61   :  { %1073 = vperm.xlu1 %4411, %v361_v50  }
  0x62   :  { %1068 = vperm.xlu0 %4410, %v360_v51  }
  0x65   :  { %1083 = vperm.xlu1 %4411, %v363_v54  }
  0x66   :  { %1078 = vperm.xlu0 %4410, %v362_v55  }
  0x69   :  { %1093 = vperm.xlu1 %4411, %v365_v60  }
  0x6a   :  { %1088 = vperm.xlu0 %4410, %v364_v61  }
  0x6d   :  { %1103 = vperm.xlu1 %4411, %v367_v0  }
  0x6e   :  { %1098 = vperm.xlu0 %4410, %v366_v1  }
  0x94   :  { %v218_v47 = vpop.permute.xlu1 %217 }
  0x95   :  { %v106_v48 = vpop.permute.xlu0 %105  ;;  %vm264_vm3 = vcmp.eq.s32.totalorder %v218_v47, %v5002_v49 }
  0x96   :  { %vm152_vm4 = vcmp.eq.s32.totalorder %v106_v48, %v5002_v49  ;;  %v3555_v56 = vsel %vm264_vm3, 1.0, %v6055_v9 }
  0x97   :  { %v3539_v57 = vsel %vm152_vm4, 1.0, %v6055_v9 }
  0x98   :  { %v221_v52 = vpop.permute.xlu1 %220  ;;  %v312_v62 = vsub.f32 %v3539_v57, %v3555_v56 }
  0x99   :  { %v109_v53 = vpop.permute.xlu0 %108  ;;  %vm265_vm5 = vcmp.eq.s32.totalorder %v221_v52, %v5002_v49 }
  0x9a   :  { %vm153_vm6 = vcmp.eq.s32.totalorder %v109_v53, %v5002_v49  ;;  %v3556_v58 = vsel %vm265_vm5, 1.0, %v6055_v9 }
  0x9b   :  { %v3540_v59 = vsel %vm153_vm6, 1.0, %v6055_v9 }
  0x9c   :  { %v313_v63 = vsub.f32 %v3540_v59, %v3556_v58  ;;  %v115_v14 = vpop.permute.xlu1 %114 }
  0x9d   :  { %v112_v15 = vpop.permute.xlu0 %111  ;;  %vm155_vm9 = vcmp.eq.s32.totalorder %v115_v14, %v5002_v49 }
  0x9e   :  { %v5036_v2 = vpack.c.bf16 %v313_v63, %v312_v62  ;;  %vm154_vm10 = vcmp.eq.s32.totalorder %v112_v15, %v5002_v49  ;;  %v3542_v35 = vsel %vm155_vm9, 1.0, %v6055_v9 }
  0x9f   :  { %v3541_v36 = vsel %vm154_vm10, 1.0, %v6055_v9 }
  0xa0   :  { %3926 = vmatprep.mubr.msk.bf16.mxu0 %vm547_vm7, %v5036_v2  ;;  %v227_v16 = vpop.permute.xlu1 %226 }
  0xa1   :  { %v224_v17 = vpop.permute.xlu0 %223  ;;  %vm267_vm11 = vcmp.eq.s32.totalorder %v227_v16, %v5002_v49 }
  0xa2   :  { %vm266_vm12 = vcmp.eq.s32.totalorder %v224_v17, %v5002_v49  ;;  %v3558_v37 = vsel %vm267_vm11, 1.0, %v6055_v9 }
  0xa3   :  { %v3557_v38 = vsel %vm266_vm12, 1.0, %v6055_v9  ;;  %v315_v45 = vsub.f32 %v3542_v35, %v3558_v37 }
  0xa4   :  { %v121_v18 = vpop.permute.xlu1 %120  ;;  %v314_v46 = vsub.f32 %v3541_v36, %v3557_v38 }
  0xa5   :  { %v118_v19 = vpop.permute.xlu0 %117  ;;  %vm157_vm13 = vcmp.eq.s32.totalorder %v121_v18, %v5002_v49 }
  0xa6   :  { %vm156_vm14 = vcmp.eq.s32.totalorder %v118_v19, %v5002_v49  ;;  %v3544_v39 = vsel %vm157_vm13, 1.0, %v6055_v9  ;;  %v5095_v56 = vpack.c.bf16 %v315_v45, %v314_v46  ;;  %v5185_v46 = vld [vmem:[%s6097_s7 + $0x10] sm:$0xff] }
  0xa7   :  { %v3543_v40 = vsel %vm156_vm14, 1.0, %v6055_v9 }
  0xa8   :  { %v233_v20 = vpop.permute.xlu1 %232 }
  0xa9   :  { %v230_v22 = vpop.permute.xlu0 %229  ;;  %vm269_vm15 = vcmp.eq.s32.totalorder %v233_v20, %v5002_v49 }
  0xaa   :  { %vm268_vm1 = vcmp.eq.s32.totalorder %v230_v22, %v5002_v49  ;;  %v3560_v41 = vsel %vm269_vm15, 1.0, %v6055_v9 }
  0xab   :  { %v3559_v42 = vsel %vm268_vm1, 1.0, %v6055_v9  ;;  %v317_v50 = vsub.f32 %v3544_v39, %v3560_v41 }
  0xac   :  { %v127_v23 = vpop.permute.xlu1 %126  ;;  %v316_v51 = vsub.f32 %v3543_v40, %v3559_v42  ;;  %v5165_v42 = vld [vmem:[%s6095_s8 + $0x18] sm:$0xff]  }
  0xad   :  { %v124_v24 = vpop.permute.xlu0 %123  ;;  %vm159_vm3 = vcmp.eq.s32.totalorder %v127_v23, %v5002_v49 }
  0xae   :  { %vm158_vm4 = vcmp.eq.s32.totalorder %v124_v24, %v5002_v49  ;;  %v3546_v57 = vsel %vm159_vm3, 1.0, %v6055_v9  ;;  %v5106_v1 = vpack.c.bf16 %v317_v50, %v316_v51  ;;  %v5195_v50 = vld [vmem:[%s6097_s7 + $0x18] sm:$0xff] }
  0xaf   :  { %v3545_v58 = vsel %vm158_vm4, 1.0, %v6055_v9 }
  0xb0   :  { %v239_v25 = vpop.permute.xlu1 %238 }
  0xb1   :  { %v236_v26 = vpop.permute.xlu0 %235  ;;  %vm271_vm5 = vcmp.eq.s32.totalorder %v239_v25, %v5002_v49 }
  0xb2   :  { %vm270_vm6 = vcmp.eq.s32.totalorder %v236_v26, %v5002_v49  ;;  %v3562_v59 = vsel %vm271_vm5, 1.0, %v6055_v9 }
  0xb3   :  { %v3561_v60 = vsel %vm270_vm6, 1.0, %v6055_v9 }
  0xb4   :  { %v133_v27 = vpop.permute.xlu1 %132 }
  0xb5   :  { %v130_v28 = vpop.permute.xlu0 %129  ;;  %vm161_vm9 = vcmp.eq.s32.totalorder %v133_v27, %v5002_v49 }
  0xb6   :  { %vm160_vm10 = vcmp.eq.s32.totalorder %v130_v28, %v5002_v49  ;;  %v3548_v61 = vsel %vm161_vm9, 1.0, %v6055_v9 }
  0xb7   :  { %v3547_v62 = vsel %vm160_vm10, 1.0, %v6055_v9 }
  0xb8   :  { %v245_v29 = vpop.permute.xlu1 %244 }
  0xb9   :  { %v242_v30 = vpop.permute.xlu0 %241  ;;  %vm273_vm11 = vcmp.eq.s32.totalorder %v245_v29, %v5002_v49 }
  0xba   :  { %vm272_vm12 = vcmp.eq.s32.totalorder %v242_v30, %v5002_v49  ;;  %v3564_v63 = vsel %vm273_vm11, 1.0, %v6055_v9 }
  0xbb   :  { %v3563_v0 = vsel %vm272_vm12, 1.0, %v6055_v9 }
  0xbc   :  { %v5063_v31 = vpop.permute.xlu1 %138 }
  0xbd   :  { %v5065_v32 = vpop.permute.xlu0 %135  ;;  %vm163_vm13 = vcmp.eq.s32.totalorder %v5063_v31, %v5002_v49 }
  0xbe   :  { %vm162_vm14 = vcmp.eq.s32.totalorder %v5065_v32, %v5002_v49  ;;  %v3550_v18 = vsel %vm163_vm13, 1.0, %v6055_v9  ;;  %vm735_vm13 = vcmask 588800  }
  0xbf   :  { %v3549_v19 = vsel %vm162_vm14, 1.0, %v6055_v9 }
  0xc0   :  { %v5071_v33 = vpop.permute.xlu1 %250 }
  0xc1   :  { %v5077_v34 = vpop.permute.xlu0 %247  ;;  %vm275_vm15 = vcmp.eq.s32.totalorder %v5071_v33, %v5002_v49 }
  0xc2   :  { %vm274_vm1 = vcmp.eq.s32.totalorder %v5077_v34, %v5002_v49  ;;  %v3566_v20 = vsel %vm275_vm15, 1.0, %v6055_v9 }
  0xc3   :  { %v3565_v22 = vsel %vm274_vm1, 1.0, %v6055_v9  ;;  %v323_v27 = vsub.f32 %v3550_v18, %v3566_v20 }
  0xc4   :  { %v145_v47 = vpop.permute.xlu1 %144  ;;  %v322_v28 = vsub.f32 %v3549_v19, %v3565_v22 }
  0xc5   :  { %v142_v52 = vpop.permute.xlu0 %141  ;;  %vm165_vm3 = vcmp.eq.s32.totalorder %v145_v47, %v5002_v49  ;;  %v5190_v47 = vld [vmem:[%s6097_s7] sm:$0xff] }
  0xc6   :  { %vm164_vm4 = vcmp.eq.s32.totalorder %v142_v52, %v5002_v49  ;;  %v3552_v23 = vsel %vm165_vm3, 1.0, %v6055_v9  ;;  %v5144_v33 = vpack.c.bf16 %v323_v27, %v322_v28  ;;  %v5237_v28 = vld [vmem:[%s6097_s7 + $0x50] sm:$0xff] }
  0xc7   :  { %v3551_v24 = vsel %vm164_vm4, 1.0, %v6055_v9 }
  0xe8   :  { %v3915_v4 = vpop.f32.mrb[0].mxu0 }
  0xe9   :  { %v5043_v5 = vadd.f32 %v3915_v4, %v3573_v3  ;;  %v459_v6 = vpop.f32.mrb[1].mxu0  ;;  %v254_v4 = vpop.permute.xlu0 %253 }
  0xea   :  { %v5045_v7 = vadd.f32 %v3573_v3, %v459_v6  ;;  %v257_v3 = vpop.permute.xlu1 %256  ;;  %v319_v6 = vsub.f32 %v3546_v57, %v3562_v59  ;;  %vm276_vm6 = vcmp.eq.s32.totalorder %v254_v4, %v5002_v49  ;;  %v5214_v4 = vld [vmem:[%s6097_s7 + $0x20] sm:$0xff] }
  0xeb   :  { %vm277_vm5 = vcmp.eq.s32.totalorder %v257_v3, %v5002_v49  ;;  %v3567_v26 = vsel %vm276_vm6, 1.0, %v6055_v9 }
  0xec   :  { %v472_v8 = vpack.c.bf16 %v5043_v5, %v5045_v7  ;;  %v3568_v25 = vsel %vm277_vm5, 1.0, %v6055_v9  ;;  %v324_v30 = vsub.f32 %v3551_v24, %v3567_v26 }
  0xed   :  { %v148_v17 = vpop.permute.xlu0 %147  ;;  %v325_v29 = vsub.f32 %v3552_v23, %v3568_v25 }
  0xee   :  { %3921 = vmatmul.mubr.msk.bf16.vlgmr.msra.gmra.mrb[0].mxu1 %vm485_vm8, %v472_v8  ;;  %v318_v8 = vsub.f32 %v3545_v58, %v3561_v60  ;;  %v151_v16 = vpop.permute.xlu1 %150  ;;  %vm166_vm10 = vcmp.eq.s32.totalorder %v148_v17, %v5002_v49  ;;  %v5225_v17 = vld [vmem:[%s6097_s7 + $0x28] sm:$0xff] }
  0xef   :  { %3943 = vmatpush3.bf16.msra.mxu1 %v5053_v11  ;;  %vm167_vm9 = vcmp.eq.s32.totalorder %v151_v16, %v5002_v49  ;;  %v5146_v34 = vpack.c.bf16 %v325_v29, %v324_v30  ;;  %v3553_v36 = vsel %vm166_vm10, 1.0, %v6055_v9  ;;  %v5242_v30 = vld [vmem:[%s6097_s7 + $0x40] sm:$0xff] }
  0xf0   :  { %3944 = vmatprep.subr.bf16.mxu1 %v4420_v12  ;;  %v5124_v14 = vpack.c.bf16 %v319_v6, %v318_v8  ;;  %v3554_v35 = vsel %vm167_vm9, 1.0, %v6055_v9  ;;  %vm1237_vm9 = vcmask 523264  }
  0xf1   :  { %v260_v32 = vpop.permute.xlu0 %259 }
  0xf2   :  { %v263_v31 = vpop.permute.xlu1 %262  ;;  %vm278_vm12 = vcmp.eq.s32.totalorder %v260_v32, %v5002_v49 }
  0xf3   :  { %3945 = vmatpush3.bf16.msra.mxu1 %v4420_v12  ;;  %v321_v12 = vsub.f32 %v3548_v61, %v3564_v63  ;;  %vm279_vm11 = vcmp.eq.s32.totalorder %v263_v31, %v5002_v49  ;;  %v3569_v38 = vsel %vm278_vm12, 1.0, %v6055_v9 }
  0xf4   :  { %3946 = vmatprep.subr.bf16.mxu1 %v4421_v13  ;;  %v3570_v37 = vsel %vm279_vm11, 1.0, %v6055_v9  ;;  %v326_v40 = vsub.f32 %v3553_v36, %v3569_v38 }
  0xf5   :  { %v327_v39 = vsub.f32 %v3554_v35, %v3570_v37  ;;  %v5254_v37 = vld [vmem:[%s6097_s7 + $0x48] sm:$0xff] }
  0xf6   :  { %6099 = vst [vmem:[#allocation9_spill] sm:$0xff] %v5254_v37 }
  0xf7   :  { %3947 = vmatpush3.bf16.msra.mxu1 %v4421_v13  ;;  %v320_v13 = vsub.f32 %v3547_v62, %v3563_v0  ;;  %v5156_v41 = vpack.c.bf16 %v327_v39, %v326_v40  ;;  %v5209_v0 = vld [vmem:[%s6097_s7 + $0x30] sm:$0xff] }
  0xf8   :  { %3948 = vmatprep.subr.bf16.mxu1 %v5165_v42 }
  0xf9   :  { %v5126_v15 = vpack.c.bf16 %v321_v12, %v320_v13  ;;  %6096 = vst [vmem:[#allocation7_spill] sm:$0xff] %v5156_v41  ;;  %v5219_v12 = vld [vmem:[%s6097_s7 + $0x38] sm:$0xff] }
  0xfb   :  { %3949 = vmatpush3.bf16.msra.mxu1 %v5165_v42 }
 0x1c1   :  { %v523_v43 = vpop.f32.mrb[0].mxu1 }
 0x1c2   :  { %v3922_v48 = vpop.f32.mrb[1].mxu1 }
 0x1c3   :  { %v526_v53 = vpop.f32.mrb[2].mxu1 }
 0x1c4   :  { %v530_v54 = vpack.c.bf16 %v526_v53, %v523_v43  ;;  %v3923_v55 = vpop.f32.mrb[3].mxu1  ;;  %v5172_v43 = vld [vmem:[%s6095_s8 + $0x20] ss:$0 sps:$4 sm:$0xff]   ;;  %v5201_v53 = vld [vmem:[%s6097_s7 + $0x8] sm:$0xff] }
 0x1c5   :  { %4398 = vmatprep.subr.msk.bf16.mxu1 %vm389_vm0, %v5172_v43  ;;  %v5178_v45 = vsel %vm389_vm0, %v5172_v43, 0 }
 0x1c6   :  { %3924 = vmatprep.subr.bf16.mxu0 %v530_v54  ;;  %3951 = vmatpush3.bf16.msra.mxu1 %v5178_v45 }
 0x1c7   :  { %3925 = vmatpush3.bf16.msra.mxu0 %v530_v54  ;;  %4007 = vmatprep.subr.bf16.mxu1 %v6055_v9 }
 0x1c8   :  { %3968 = vmatprep.subr.bf16.mxu0 %v6055_v9 }
 0x1ca   :  { %3927 = vmatmul.mubr.msk.bf16.vlgmr.msra.gmra.mrb[4].mxu0 %vm547_vm7, %v5095_v56 }
 0x1cb   :  { %3930 = vmatprep.mubr.msk.bf16.mxu0 %vm547_vm7, %v5106_v1 }
 0x1d2   :  { %3931 = vmatmul.mubr.msk.bf16.gmra.mrb[8].mxu0 %vm547_vm7, %v5124_v14 }
 0x1d3   :  { %3934 = vmatprep.mubr.msk.bf16.mxu0 %vm547_vm7, %v5126_v15 }
 0x1da   :  { %3935 = vmatmul.mubr.msk.bf16.gmra.mrb[12].mxu0 %vm547_vm7, %v5144_v33 }
 0x1db   :  { %3938 = vmatprep.mubr.msk.bf16.mxu0 %vm547_vm7, %v5146_v34 }
 0x1e2   :  { %3939 = vmatmul.mubr.msk.bf16.gmra.mrb[16].mxu0 %vm547_vm7, %v5156_v41 }
 0x1e3   :  { %3984 = vmatprep.mubr.msk.bf16.mxu0 %vm4715_vm2, %v6055_v9 }
 0x29d   :  { %v3928_v48 = vpop.f32.mrb[4].mxu0 }
 0x29e   :  { %v615_v51 = vadd.f32 %v3928_v48, %v5185_v46  ;;  %v606_v52 = vpop.f32.mrb[5].mxu0 }
 0x29f   :  { %v607_v54 = vadd.f32 %v606_v52, %v5190_v47  ;;  %v3929_v55 = vpop.f32.mrb[6].mxu0 }
 0x2a0   :  { %v618_v57 = vadd.f32 %v3929_v55, %v5195_v50  ;;  %v609_v58 = vpop.f32.mrb[7].mxu0  ;;  %v671_v60 = vmax.f32 %v615_v51, 0.0 }
 0x2a1   :  { %v610_v59 = vadd.f32 %v609_v58, %v5201_v53  ;;  %v669_v62 = vmax.f32 %v607_v54, 0.0  ;;  %v5270_v58 = vld [vmem:[%s6097_s7 + $0x60] sm:$0xff] }
 0x2a2   :  { %v672_v61 = vmax.f32 %v618_v57, 0.0  ;;  %6101 = vst [vmem:[#allocation11_spill] sm:$0xff] %v5270_v58 }
 0x2a3   :  { %v670_v63 = vmax.f32 %v610_v59, 0.0 }
 0x2a4   :  { %v695_v3 = vpack.c.bf16 %v672_v61, %v671_v60  ;;  %v5275_v61 = vld [vmem:[%s6097_s7 + $0x78] sm:$0xff] }
 0x2a5   :  { %v694_v6 = vpack.c.bf16 %v670_v63, %v669_v62  ;;  %v3932_v8 = vpop.f32.mrb[8].mxu0  ;;  %6102 = vst [vmem:[#allocation12_spill] sm:$0xff] %v5275_v61 }
 0x2a6   :  { %v631_v13 = vadd.f32 %v3932_v8, %v5209_v0  ;;  %v622_v16 = vpop.f32.mrb[9].mxu0 }
 0x2a7   :  { %v623_v18 = vadd.f32 %v622_v16, %v5214_v4  ;;  %v3933_v19 = vpop.f32.mrb[10].mxu0  ;;  %3952 = vmatprep.mubr.msk.bf16.mxu1 %vm735_vm13, %v694_v6 }
 0x2a8   :  { %v634_v20 = vadd.f32 %v3933_v19, %v5219_v12  ;;  %v625_v22 = vpop.f32.mrb[11].mxu0  ;;  %3953 = vmatmul.mubr.msk.bf16.vlgmr.msra.gmra.mrb[4].mxu1 %vm735_vm13, %v695_v3  ;;  %v675_v24 = vmax.f32 %v631_v13, 0.0  ;;  %v5281_v3 = vld [vmem:[%s6097_s7 + $0x68] sm:$0xff] }
 0x2a9   :  { %v626_v23 = vadd.f32 %v625_v22, %v5225_v17  ;;  %4008 = vmatpush3.bf16.msra.mxu1 %v4887_v10  ;;  %v673_v26 = vmax.f32 %v623_v18, 0.0  ;;  %v5247_v10 = vld [vmem:[%s6097_s7 + $0x58] sm:$0xff]  ;;  %6103 = vst [vmem:[#allocation13_spill] sm:$0xff] %v5281_v3 }
 0x2aa   :  { %v676_v25 = vmax.f32 %v634_v20, 0.0  ;;  %4009 = vmatprep.subr.bf16.mxu1 %v6055_v9  ;;  %6098 = vst [vmem:[#allocation8_spill] sm:$0xff] %v5247_v10 }
 0x2ab   :  { %v674_v27 = vmax.f32 %v626_v23, 0.0 }
 0x2ac   :  { %v697_v29 = vpack.c.bf16 %v676_v25, %v675_v24 }
 0x2ad   :  { %v696_v31 = vpack.c.bf16 %v674_v27, %v673_v26  ;;  %v3936_v32 = vpop.f32.mrb[12].mxu0  ;;  %4010 = vmatpush3.bf16.msra.mxu1 %v4924_v21  ;;  %v5295_v26 = vld [vmem:[%s6104_s24] ss:$0 sm:$0xff] }
 0x2ae   :  { %v647_v35 = vadd.f32 %v3936_v32, %v5237_v28  ;;  %v638_v36 = vpop.f32.mrb[13].mxu0  ;;  %4033 = vmatprep.subr.bf16.mxu1 %v5053_v11  ;;  %v5265_v11 = vld [vmem:[%s6097_s7 + $0x70] sm:$0xff]  ;;  %6105 = vst [vmem:[#allocation14_spill] sm:$0xff] %v5295_v26 }
 0x2af   :  { %v639_v38 = vadd.f32 %v638_v36, %v5242_v30  ;;  %v3937_v39 = vpop.f32.mrb[14].mxu0  ;;  %3956 = vmatprep.mubr.msk.bf16.mxu1 %vm735_vm13, %v696_v31  ;;  %6100 = vst [vmem:[#allocation10_spill] sm:$0xff] %v5265_v11 }
 0x2b0   :  { %v650_v40 = vadd.f32 %v3937_v39, %v5247_v10  ;;  %v641_v48 = vpop.f32.mrb[15].mxu0  ;;  %3957 = vmatmul.mubr.msk.bf16.gmra.mrb[8].mxu1 %vm735_vm13, %v697_v29  ;;  %v679_v51 = vmax.f32 %v647_v35, 0.0 }
 0x2b1   :  { %v642_v21 = vadd.f32 %v641_v48, %v5254_v37  ;;  %v677_v54 = vmax.f32 %v639_v38, 0.0 }
 0x2b2   :  { %v680_v52 = vmax.f32 %v650_v40, 0.0 }
 0x2b3   :  { %v678_v55 = vmax.f32 %v642_v21, 0.0 }
 0x2b4   :  { %v699_v57 = vpack.c.bf16 %v680_v52, %v679_v51 }
 0x2b5   :  { %v698_v59 = vpack.c.bf16 %v678_v55, %v677_v54  ;;  %v3940_v60 = vpop.f32.mrb[16].mxu0 }
 0x2b6   :  { %v663_v62 = vadd.f32 %v3940_v60, %v5265_v11  ;;  %v654_v63 = vpop.f32.mrb[17].mxu0 }
 0x2b7   :  { %v655_v6 = vadd.f32 %v654_v63, %v5270_v58  ;;  %v3941_v8 = vpop.f32.mrb[18].mxu0  ;;  %3960 = vmatprep.mubr.msk.bf16.mxu1 %vm735_vm13, %v698_v59 }
 0x2b8   :  { %v666_v13 = vadd.f32 %v3941_v8, %v5275_v61  ;;  %v657_v16 = vpop.f32.mrb[19].mxu0  ;;  %3961 = vmatmul.mubr.msk.bf16.gmra.mrb[12].mxu1 %vm735_vm13, %v699_v57  ;;  %v683_v19 = vmax.f32 %v663_v62, 0.0 }
 0x2b9   :  { %v658_v18 = vadd.f32 %v657_v16, %v5281_v3  ;;  %v681_v22 = vmax.f32 %v655_v6, 0.0 }
 0x2ba   :  { %v684_v20 = vmax.f32 %v666_v13, 0.0 }
 0x2bb   :  { %v682_v23 = vmax.f32 %v658_v18, 0.0 }
 0x2bc   :  { %v701_v24 = vpack.c.bf16 %v684_v20, %v683_v19  ;;  %v368_v19 = vld [vmem:[%s6092_s3 + $0x70] sm:$0xff] }
 0x2bd   :  { %v700_v25 = vpack.c.bf16 %v682_v23, %v681_v22  ;;  %v369_v23 = vld [vmem:[%s6092_s3 + $0x78] sm:$0xff]  ;;  %s4717_s3 = smov 96  }
 0x2bf   :  { %3964 = vmatprep.mubr.msk.bf16.mxu1 %vm735_vm13, %v700_v25 }
 0x2c0   :  { %3965 = vmatmul.mubr.msk.bf16.gmra.mrb[16].mxu1 %vm735_vm13, %v701_v24 }
 0x2c1   :  { %4011 = vmatprep.mubr.msk.bf16.mxu1 %vm4715_vm2, %v6055_v9 }
 0x37b   :  { %v3954_v27 = vpop.f32.mrb[4].mxu1 }
 0x37c   :  { %v806_v29 = vadd.f32 %v3954_v27, %v5295_v26  ;;  %v797_v31 = vpop.f32.mrb[5].mxu1 }
 0x37d   :  { %v3955_v32 = vpop.f32.mrb[6].mxu1  ;;  %v798_v38 = vadd.f32 %v5295_v26, %v797_v31 }
 0x37e   :  { %v809_v35 = vadd.f32 %v3955_v32, %v5295_v26  ;;  %976 = vrot.lane.b32.xlu0 %v806_v29, %s4716_s10  ;;  %v800_v36 = vpop.f32.mrb[7].mxu1 }
 0x37f   :  { %v801_v39 = vadd.f32 %v5295_v26, %v800_v36  ;;  %v5347_v36 = vpop.permute.xlu0 %1038 }
 0x380   :  { %978 = vrot.lane.b32.xlu1 %v809_v35, %s4716_s10 }
 0x382   :  { %972 = vrot.lane.b32.xlu0 %v798_v38, %s4716_s10 }
 0x383   :  { %v3958_v40 = vpop.f32.mrb[8].mxu1 }
 0x384   :  { %v822_v48 = vadd.f32 %v3958_v40, %v5295_v26  ;;  %v813_v21 = vpop.f32.mrb[9].mxu1  ;;  %974 = vrot.lane.b32.xlu1 %v801_v39, %s4716_s10  ;;  %v5349_v40 = vpop.permute.xlu1 %1043 }
 0x385   :  { %v3959_v51 = vpop.f32.mrb[10].mxu1  ;;  %v814_v55 = vadd.f32 %v5295_v26, %v813_v21  ;;  %v5351_v21 = vpop.permute.xlu0 %1048 }
 0x386   :  { %v825_v52 = vadd.f32 %v3959_v51, %v5295_v26  ;;  %v816_v54 = vpop.f32.mrb[11].mxu1  ;;  %984 = vrot.lane.b32.xlu0 %v822_v48, %s4716_s10 }
 0x387   :  { %v817_v57 = vadd.f32 %v5295_v26, %v816_v54  ;;  %v3604_v54 = vmul.f32 -1.442695, %v806_v29 }
 0x388   :  { %986 = vrot.lane.b32.xlu1 %v825_v52, %s4716_s10  ;;  %v5353_v51 = vpop.permute.xlu1 %1053 }
 0x389   :  { %4424 = vpow2.f32 %v3604_v54 }
 0x38a   :  { %980 = vrot.lane.b32.xlu0 %v814_v55, %s4716_s10 }
 0x38b   :  { %v3962_v59 = vpop.f32.mrb[12].mxu1 }
 0x38c   :  { %v838_v60 = vadd.f32 %v3962_v59, %v5295_v26  ;;  %v829_v62 = vpop.f32.mrb[13].mxu1  ;;  %982 = vrot.lane.b32.xlu1 %v817_v57, %s4716_s10  ;;  %v3605_v59 = vmul.f32 -1.442695, %v809_v35  ;;  %v3607_v35 = vmul.f32 -1.442695, %v817_v57 }
 0x38d   :  { %v3963_v63 = vpop.f32.mrb[14].mxu1  ;;  %v830_v13 = vadd.f32 %v5295_v26, %v829_v62  ;;  %v5355_v62 = vpop.permute.xlu0 %1058 }
 0x38e   :  { %v841_v6 = vadd.f32 %v3963_v63, %v5295_v26  ;;  %v832_v8 = vpop.f32.mrb[15].mxu1  ;;  %992 = vrot.lane.b32.xlu0 %v838_v60, %s4716_s10  ;;  %v3602_v63 = vmul.f32 -1.442695, %v798_v38  ;;  %4426 = vpow2.f32 %v3605_v59  ;;  %v3612_v54 = vmul.f32 -1.442695, %v838_v60 }
 0x38f   :  { %v833_v16 = vadd.f32 %v5295_v26, %v832_v8  ;;  %v5357_v8 = vpop.permute.xlu1 %1063  ;;  %v3610_v9 = vmul.f32 -1.442695, %v830_v13 }
 0x390   :  { %994 = vrot.lane.b32.xlu1 %v841_v6, %s4716_s10  ;;  %4428 = vpow2.f32 %v3602_v63  ;;  %v3613_v63 = vmul.f32 -1.442695, %v841_v6 }
 0x392   :  { %988 = vrot.lane.b32.xlu0 %v830_v13, %s4716_s10 }
 0x393   :  { %v3966_v18 = vpop.f32.mrb[16].mxu1  ;;  %v4425_v29 = vpop.eup %4424 }
 0x394   :  { %v845_v20 = vpop.f32.mrb[17].mxu1  ;;  %990 = vrot.lane.b32.xlu1 %v833_v16, %s4716_s10  ;;  %v5336_v31 = vadd.f32 %v3966_v18, %v5295_v26  ;;  %v3603_v18 = vmul.f32 -1.442695, %v801_v39  ;;  %v910_v39 = vadd.f32 1.0, %v4425_v29 }
 0x395   :  { %v3967_v22 = vpop.f32.mrb[18].mxu1  ;;  %v5328_v25 = vadd.f32 %v5295_v26, %v845_v20  ;;  %v5359_v20 = vpop.permute.xlu0 %1068 }
 0x396   :  { %v848_v24 = vpop.f32.mrb[19].mxu1  ;;  %1108 = vperm.xlu0 %4410, %v368_v19   ;;  %v5341_v32 = vadd.f32 %v3967_v22, %v5295_v26  ;;  %v3608_v19 = vmul.f32 -1.442695, %v822_v48  ;;  %4430 = vpow2.f32 %v3603_v18  ;;  %v3609_v22 = vmul.f32 -1.442695, %v825_v52 }
 0x397   :  { %v5331_v27 = vadd.f32 %v5295_v26, %v848_v24  ;;  %v3606_v24 = vmul.f32 -1.442695, %v814_v55 }
 0x398   :  { %1113 = vperm.xlu1 %4411, %v369_v23   ;;  %v5361_v23 = vpop.permute.xlu1 %1073  ;;  %4432 = vpow2.f32 %v3608_v19  ;;  %v4427_v38 = vpop.eup %4426 }
 0x399   :  { %4434 = vpow2.f32 %v3609_v22  ;;  %v5363_v44 = vpop.permute.xlu0 %1078  ;;  %v911_v18 = vadd.f32 1.0, %v4427_v38  ;;  %v3611_v22 = vmul.f32 -1.442695, %v833_v16 }
 0x39a   :  { %996 = vrot.lane.b32.xlu0 %v5328_v25, %s4716_s10  ;;  %4436 = vpow2.f32 %v3606_v24  ;;  %v4429_v48 = vpop.eup %4428 }
 0x39b   :  { %4438 = vpow2.f32 %v3607_v35  ;;  %v908_v55 = vadd.f32 1.0, %v4429_v48 }
 0x39c   :  { %998 = vrot.lane.b32.xlu1 %v5331_v27, %s4716_s10  ;;  %v5365_v59 = vpop.permute.xlu1 %1083  ;;  %4440 = vpow2.f32 %v3612_v54 }
 0x39d   :  { %v5367_v19 = vpop.permute.xlu0 %1088  ;;  %4442 = vrcp.f32 %v910_v39 }
 0x39e   :  { %1000 = vrot.lane.b32.xlu0 %v5336_v31, %s4716_s10  ;;  %4444 = vpow2.f32 %v3613_v63 }
 0x39f   :  { %4446 = vrcp.f32 %v911_v18 }
 0x3a0   :  { %1002 = vrot.lane.b32.xlu1 %v5341_v32, %s4716_s10  ;;  %v4431_v52 = vpop.eup %4430  ;;  %v5369_v26 = vpop.permute.xlu1 %1093  ;;  %4448 = vpow2.f32 %v3610_v9 }
 0x3a1   :  { %v909_v60 = vadd.f32 1.0, %v4431_v52  ;;  %4450 = vrcp.f32 %v908_v55  ;;  %v5371_v35 = vpop.permute.xlu0 %1098 }
 0x3a2   :  { %v4433_v57 = vpop.eup %4432  ;;  %4452 = vpow2.f32 %v3611_v22 }
 0x3a3   :  { %v4435_v24 = vpop.eup %4434  ;;  %v914_v29 = vadd.f32 1.0, %v4433_v57  ;;  %4454 = vrcp.f32 %v909_v60 }
 0x3a4   :  { %v4437_v6 = vpop.eup %4436  ;;  %v915_v13 = vadd.f32 1.0, %v4435_v24  ;;  %v5373_v54 = vpop.permute.xlu1 %1103 }
 0x3a5   :  { %v4439_v38 = vpop.eup %4438  ;;  %4456 = vrcp.f32 %v914_v29  ;;  %v912_v39 = vadd.f32 1.0, %v4437_v6 }
 0x3a6   :  { %v4441_v16 = vpop.eup %4440  ;;  %4458 = vrcp.f32 %v915_v13  ;;  %v913_v63 = vadd.f32 1.0, %v4439_v38 }
 0x3a7   :  { %v4443_v48 = vpop.eup %4442  ;;  %4460 = vrcp.f32 %v912_v39  ;;  %v918_v57 = vadd.f32 1.0, %v4441_v16 }
 0x3a8   :  { %v4445_v52 = vpop.eup %4444  ;;  %4462 = vrcp.f32 %v913_v63 }
 0x3a9   :  { %v4447_v55 = vpop.eup %4446  ;;  %v919_v24 = vadd.f32 1.0, %v4445_v52  ;;  %4464 = vrcp.f32 %v918_v57 }
 0x3aa   :  { %v4449_v3 = vpop.eup %4448 }
 0x3ab   :  { %v4451_v60 = vpop.eup %4450  ;;  %v916_v37 = vadd.f32 1.0, %v4449_v3  ;;  %4466 = vrcp.f32 %v919_v24 }
 0x3ac   :  { %v4453_v11 = vpop.eup %4452 }
 0x3ad   :  { %v4455_v38 = vpop.eup %4454  ;;  %v917_v10 = vadd.f32 1.0, %v4453_v11  ;;  %4468 = vrcp.f32 %v916_v37  ;;  %v3615_v11 = vmul.f32 -1.442695, %v5331_v27  ;;  %v3616_v37 = vmul.f32 -1.442695, %v5336_v31 }
 0x3af   :  { %v4457_v16 = vpop.eup %4456  ;;  %4470 = vrcp.f32 %v917_v10  ;;  %v3617_v10 = vmul.f32 -1.442695, %v5341_v32 }
 0x3f0   :  { %v977_v18 = vpop.permute.xlu0 %976 }
 0x3f1   :  { %v1022_v9 = vmul.f32 %v4443_v48, %v977_v18 }
 0x3f2   :  { %v979_v22 = vpop.permute.xlu1 %978 }
 0x3f3   :  { %v1023_v61 = vmul.f32 %v4447_v55, %v979_v22  ;;  %v1118_v29 = vmul.f32 %v5351_v21, %v1022_v9 }
 0x3f4   :  { %v973_v58 = vpop.permute.xlu0 %972 }
 0x3f5   :  { %v1119_v6 = vmul.f32 %v5353_v51, %v1023_v61  ;;  %v1020_v13 = vmul.f32 %v4451_v60, %v973_v58  ;;  %v4459_v61 = vpop.eup %4458  ;;  %v3614_v58 = vmul.f32 -1.442695, %v5328_v25 }
 0x3f6   :  { %v975_v48 = vpop.permute.xlu1 %974  ;;  %v4461_v60 = vpop.eup %4460 }
 0x3f7   :  { %v1021_v18 = vmul.f32 %v4455_v38, %v975_v48  ;;  %v1133_v39 = vpack.c.bf16 %v1119_v6, %v1118_v29  ;;  %v1116_v63 = vmul.f32 %v5347_v36, %v1020_v13  ;;  %v4463_v38 = vpop.eup %4462  ;;  %4472 = vpow2.f32 %v3614_v58 }
 0x3f8   :  { %v985_v55 = vpop.permute.xlu0 %984  ;;  %4474 = vpow2.f32 %v3615_v11 }
 0x3f9   :  { %v1117_v52 = vmul.f32 %v5349_v40, %v1021_v18  ;;  %v1026_v22 = vmul.f32 %v4457_v16, %v985_v55  ;;  %1150 = vrot.lane.b32.xlu1 %v1133_v39, %s4717_s3  ;;  %v4465_v39 = vpop.eup %4464  ;;  %4476 = vpow2.f32 %v3616_v37 }
 0x3fa   :  { %v987_v3 = vpop.permute.xlu1 %986  ;;  %4478 = vpow2.f32 %v3617_v10 }
 0x3fb   :  { %v1027_v9 = vmul.f32 %v4459_v61, %v987_v3  ;;  %v1132_v57 = vpack.c.bf16 %v1117_v52, %v1116_v63  ;;  %v1122_v29 = vmul.f32 %v5359_v20, %v1026_v22  ;;  %v4467_v52 = vpop.eup %4466 }
 0x3fc   :  { %v981_v24 = vpop.permute.xlu0 %980  ;;  %v4469_v58 = vpop.eup %4468 }
 0x3fd   :  { %v1123_v6 = vmul.f32 %v5361_v23, %v1027_v9  ;;  %v1024_v13 = vmul.f32 %v4461_v60, %v981_v24  ;;  %1148 = vrot.lane.b32.xlu0 %v1132_v57, %s4717_s3  ;;  %v4471_v60 = vpop.eup %4470 }
 0x3fe   :  { %v983_v25 = vpop.permute.xlu1 %982 }
 0x3ff   :  { %v1025_v48 = vmul.f32 %v4463_v38, %v983_v25  ;;  %v1135_v18 = vpack.c.bf16 %v1123_v6, %v1122_v29  ;;  %v1120_v16 = vmul.f32 %v5355_v62, %v1024_v13 }
 0x400   :  { %v993_v27 = vpop.permute.xlu0 %992 }
 0x401   :  { %v1121_v55 = vmul.f32 %v5357_v8, %v1025_v48  ;;  %v1030_v63 = vmul.f32 %v4465_v39, %v993_v27  ;;  %1154 = vrot.lane.b32.xlu1 %v1135_v18, %s4717_s3  ;;  %v4473_v6 = vpop.eup %4472 }
 0x402   :  { %v995_v22 = vpop.permute.xlu1 %994  ;;  %v4475_v37 = vpop.eup %4474  ;;  %v920_v25 = vadd.f32 1.0, %v4473_v6 }
 0x403   :  { %v1031_v31 = vmul.f32 %v4467_v52, %v995_v22  ;;  %v1134_v61 = vpack.c.bf16 %v1121_v55, %v1120_v16  ;;  %v1126_v9 = vmul.f32 %v5367_v19, %v1030_v63  ;;  %v4477_v18 = vpop.eup %4476  ;;  %v921_v39 = vadd.f32 1.0, %v4475_v37 }
 0x404   :  { %v989_v3 = vpop.permute.xlu0 %988  ;;  %v4479_v10 = vpop.eup %4478  ;;  %v922_v27 = vadd.f32 1.0, %v4477_v18  ;;  %4480 = vrcp.f32 %v920_v25  ;;  %v6106_v18 = vmov 0.0  }
 0x405   :  { %v1127_v32 = vmul.f32 %v5369_v26, %v1031_v31  ;;  %v1028_v57 = vmul.f32 %v4469_v58, %v989_v3  ;;  %1152 = vrot.lane.b32.xlu0 %v1134_v61, %s4717_s3  ;;  %v923_v16 = vadd.f32 1.0, %v4479_v10  ;;  %4482 = vrcp.f32 %v921_v39 }
 0x406   :  { %v991_v11 = vpop.permute.xlu1 %990  ;;  %4484 = vrcp.f32 %v922_v27 }
 0x407   :  { %v1029_v24 = vmul.f32 %v4471_v60, %v991_v11  ;;  %v1137_v29 = vpack.c.bf16 %v1127_v32, %v1126_v9  ;;  %v1124_v13 = vmul.f32 %v5363_v44, %v1028_v57  ;;  %4486 = vrcp.f32 %v923_v16 }
 0x408   :  { %v6107_v16 = vlaneseq }
 0x409   :  { %v1125_v38 = vmul.f32 %v5365_v59, %v1029_v24  ;;  %1158 = vrot.lane.b32.xlu1 %v1137_v29, %s4717_s3 }
 0x40b   :  { %v1136_v48 = vpack.c.bf16 %v1125_v38, %v1124_v13 }
 0x40d   :  { %1156 = vrot.lane.b32.xlu0 %v1136_v48, %s4717_s3 }
 0x40e   :  { %v4481_v52 = vpop.eup %4480 }
 0x40f   :  { %v4483_v61 = vpop.eup %4482 }
 0x410   :  { %v4485_v9 = vpop.eup %4484 }
 0x411   :  { %v4487_v24 = vpop.eup %4486 }
 0x415   :  { %v5397_v55 = vpop.permute.xlu0 %1108 }
 0x417   :  { %v5399_v63 = vpop.permute.xlu1 %1113 }
 0x419   :  { %v997_v22 = vpop.permute.xlu0 %996 }
 0x41a   :  { %v1032_v31 = vmul.f32 %v4481_v52, %v997_v22  ;;  %v5417_v52 = vshrl.u32 %v6107_v16, 7 }
 0x41b   :  { %v999_v58 = vpop.permute.xlu1 %998 }
 0x41c   :  { %v1033_v3 = vmul.f32 %v4483_v61, %v999_v58  ;;  %v1128_v57 = vmul.f32 %v5371_v35, %v1032_v31  ;;  %6108 = vst [vmem:[#allocation15_spill] sm:$0xff] %v5417_v52  ;;  %v5421_v22 = vadd.s32 8, %v5417_v52  ;;  %v6065_v31 = vmul.u32 8, %v5417_v52 }
 0x41d   :  { %v1001_v32 = vpop.permute.xlu0 %1000 }
 0x41e   :  { %v1129_v60 = vmul.f32 %v5373_v54, %v1033_v3  ;;  %v1034_v11 = vmul.f32 %v4485_v9, %v1001_v32  ;;  %6109 = vst [vmem:[#allocation16_spill] sm:$0xff] %v5421_v22  ;;  %v340_v61 = vmul.u32 8, %v5421_v22  ;;  %v341_v58 = vsub.s32 %v5002_v49, %v6065_v31  ;;  %v1223_v9 = vld [vmem:[%s6029_s11] sm:$0xff]  ;;  %v1224_v32 = vld [vmem:[%s6029_s11 + $0x8] sm:$0xff] }
 0x41f   :  { %v1003_v29 = vpop.permute.xlu1 %1002 }
 0x420   :  { %v1035_v6 = vmul.f32 %v4487_v24, %v1003_v29  ;;  %v1138_v13 = vpack.c.bf16 %v1129_v60, %v1128_v57  ;;  %v1130_v38 = vmul.f32 %v5397_v55, %v1034_v11  ;;  %v342_v3 = vsub.s32 %v5002_v49, %v340_v61  ;;  %v1225_v11 = vld [vmem:[%s6029_s11 + $0x10] sm:$0xff]  ;;  %v1226_v24 = vld [vmem:[%s6029_s11 + $0x18] sm:$0xff] }
 0x421   :  { %vm343_vm14 = vcmp.ge.s32.totalorder %v341_v58, 0  ;;  %vm345_vm15 = vcmp.lt.s32.totalorder %v341_v58, 8  ;;  %v5436_v60 = vpack.c.bf16 %v1224_v32, %v1223_v9 }
 0x422   :  { %v1131_v37 = vmul.f32 %v5399_v63, %v1035_v6  ;;  %1160 = vrot.lane.b32.xlu0 %v1138_v13, %s4717_s3  ;;  %vm344_vm1 = vcmp.ge.s32.totalorder %v342_v3, 0  ;;  %vm346_vm3 = vcmp.lt.s32.totalorder %v342_v3, 8  ;;  %vm347_vm4 = vmand %vm343_vm14, %vm345_vm15  ;;  %v5449_v13 = vpack.c.bf16 %v1226_v24, %v1225_v11 }
 0x423   :  { %vm348_vm5 = vmand %vm344_vm1, %vm346_vm3 }
 0x424   :  { %v1139_v25 = vpack.c.bf16 %v1131_v37, %v1130_v38  ;;  %vm5444_vm6 = vmpackc.low %vm348_vm5, %vm347_vm4  ;;  %v1227_v38 = vld [vmem:[%s6029_s11 + $0x20] sm:$0xff]  ;;  %v1228_v37 = vld [vmem:[%s6029_s11 + $0x28] sm:$0xff] }
 0x426   :  { %1162 = vrot.lane.b32.xlu1 %v1139_v25, %s4717_s3  ;;  %1215 = vrot.lane.b32.xlu0 %v5045_v7, %s4716_s10  ;;  %v6066_v25 = vmov 1.0|1.0  }
 0x42a   :  { %1217 = vrot.lane.b32.xlu1 %v5043_v5, %s4716_s10 }
 0x46b   :  { %v1151_v39 = vpop.permute.xlu1 %1150 }
 0x46f   :  { %v1149_v48 = vpop.permute.xlu0 %1148 }
 0x470   :  { %3969 = vmatpush3.bf16.msra.mxu0 %v1149_v48  ;;  %v5462_v48 = vpack.c.bf16 %v1228_v37, %v1227_v38 }
 0x471   :  { %3970 = vmatprep.subr.bf16.mxu0 %v6106_v18 }
 0x473   :  { %v1155_v27 = vpop.permute.xlu1 %1154 }
 0x474   :  { %3971 = vmatpush3.bf16.msra.mxu0 %v1151_v39  ;;  %v1229_v39 = vld [vmem:[%s6029_s11 + $0x30] sm:$0xff] }
 0x475   :  { %3972 = vmatprep.subr.bf16.mxu0 %v6106_v18 }
 0x477   :  { %v1153_v10 = vpop.permute.xlu0 %1152 }
 0x478   :  { %3973 = vmatpush3.bf16.msra.mxu0 %v1153_v10  ;;  %v1230_v10 = vld [vmem:[%s6029_s11 + $0x38] sm:$0xff] }
 0x479   :  { %3974 = vmatprep.subr.bf16.mxu0 %v6106_v18 }
 0x47b   :  { %v1159_v5 = vpop.permute.xlu1 %1158 }
 0x47c   :  { %3975 = vmatpush3.bf16.msra.mxu0 %v1155_v27  ;;  %v5473_v27 = vpack.c.bf16 %v1230_v10, %v1229_v39 }
 0x47d   :  { %3976 = vmatprep.subr.bf16.mxu0 %v6106_v18 }
 0x47f   :  { %v1157_v7 = vpop.permute.xlu0 %1156 }
 0x480   :  { %3977 = vmatpush3.bf16.msra.mxu0 %v1157_v7 }
 0x481   :  { %3978 = vmatprep.subr.bf16.mxu0 %v6106_v18 }
 0x484   :  { %3979 = vmatpush3.bf16.msra.mxu0 %v1159_v5 }
 0x485   :  { %3980 = vmatprep.subr.bf16.mxu0 %v6106_v18 }
 0x494   :  { %v1161_v57 = vpop.permute.xlu0 %1160 }
 0x495   :  { %3981 = vmatpush3.bf16.msra.mxu0 %v1161_v57  ;;  %v5486_v57 = vld [vmem:[%s6030_s12] ss:$0 sm:$0xff] }
 0x496   :  { %3982 = vmatprep.subr.bf16.mxu0 %v6106_v18  ;;  %6112 = vst [vmem:[#allocation17_spill] sm:$0xff] %v5486_v57 }
 0x498   :  { %v1163_v29 = vpop.permute.xlu1 %1162  ;;  %v1216_v7 = vpop.permute.xlu0 %1215 }
 0x499   :  { %3983 = vmatpush3.bf16.msra.mxu0 %v1163_v29 }
 0x49a   :  { %4286 = vmatprep.subr.bf16.mxu0 %v5436_v60 }
 0x49c   :  { %3985 = vmatmul.mubr.msk.bf16.vlgmr.msra.gmra.mrb[20].mxu0 %vm5444_vm6, %v6066_v25  ;;  %v1218_v58 = vpop.permute.xlu1 %1217 }
 0x49d   :  { %4288 = vmatpush3.bf16.msra.mxu0 %v5436_v60 }
 0x49e   :  { %4290 = vmatprep.subr.bf16.mxu0 %v5449_v13 }
 0x4a1   :  { %4292 = vmatpush3.bf16.msra.mxu0 %v5449_v13 }
 0x4a2   :  { %4294 = vmatprep.subr.bf16.mxu0 %v5462_v48 }
 0x4a5   :  { %4296 = vmatpush3.bf16.msra.mxu0 %v5462_v48 }
 0x4a6   :  { %4298 = vmatprep.subr.bf16.mxu0 %v5473_v27 }
 0x4a9   :  { %4300 = vmatpush3.bf16.msra.mxu0 %v5473_v27 }
 0x56f   :  { %v1206_v5 = vpop.f32.mrb[20].mxu0 }
 0x570   :  { %v1221_v16 = vsel %vm485_vm8, %v1206_v5, %v1216_v7  ;;  %v3986_v61 = vpop.f32.mrb[21].mxu0 }
 0x571   :  { %v1209_v3 = vpop.f32.mrb[22].mxu0  ;;  %4004 = vmatprep.mubr.msk.f32.mxu0 %vm1237_vm9, %v1221_v16 }
 0x572   :  { %v1222_v9 = vsel %vm485_vm8, %v1209_v3, %v1218_v58  ;;  %v3987_v32 = vpop.f32.mrb[23].mxu0 }
 0x573   :  { %4005 = vmatmul.mubr.msk.f32.vlgmr.msra.gmra.mrb[2].mxu0 %vm1237_vm9, %v1222_v9 }
 0x574   :  { %4017 = vmatprep.mubr.msk.bf16.mxu0 %vm547_vm7, %v5036_v2 }
 0x646   :  { %v4006_v11 = vpop.f32.mrb[2].mxu0 }
 0x647   :  { %v1316_v24 = vadd.f32 %v4006_v11, %v5486_v57  ;;  %v1310_v29 = vpop.f32.mrb[3].mxu0 }
 0x648   :  { %v1311_v38 = vadd.f32 %v5486_v57, %v1310_v29 }
 0x649   :  { %1335 = vrot.lane.b32.xlu1 %v1316_v24, %s4716_s10  ;;  %v3624_v37 = vmul.f32 -1.442695, %v1316_v24 }
 0x64a   :  { %1333 = vrot.lane.b32.xlu0 %v1311_v38, %s4716_s10  ;;  %v3623_v39 = vmul.f32 -1.442695, %v1311_v38 }
 0x64b   :  { %4488 = vpow2.f32 %v3624_v37 }
 0x64c   :  { %4490 = vpow2.f32 %v3623_v39 }
 0x655   :  { %v4489_v10 = vpop.eup %4488 }
 0x656   :  { %v4491_v5 = vpop.eup %4490  ;;  %v1326_v16 = vadd.f32 1.0, %v4489_v10 }
 0x657   :  { %v1325_v61 = vadd.f32 1.0, %v4491_v5 }
 0x658   :  { %4492 = vrcp.f32 %v1326_v16 }
 0x659   :  { %4494 = vrcp.f32 %v1325_v61 }
 0x662   :  { %v4493_v3 = vpop.eup %4492 }
 0x663   :  { %v4495_v32 = vpop.eup %4494  ;;  %v1354_v16 = vsub.f32 1.0, %v4493_v3 }
 0x664   :  { %v1365_v52 = vmul.f32 %v4495_v32, %v1216_v7 }
 0x6bb   :  { %v1336_v9 = vpop.permute.xlu1 %1335 }
 0x6bc   :  { %v1340_v11 = vmul.f32 %v4493_v3, %v1336_v9  ;;  %v1334_v31 = vpop.permute.xlu0 %1333  ;;  %v1366_v9 = vmul.f32 %v4493_v3, %v1218_v58  ;;  %v5507_v58 = vld [vmem:[%s6095_s8] sm:$0xff]  }
 0x6bd   :  { %v1339_v29 = vmul.f32 %v4495_v32, %v1334_v31  ;;  %v1353_v31 = vsub.f32 1.0, %v4495_v32 }
 0x6be   :  { %1345 = vrot.lane.b32.xlu1 %v1340_v11, %s4719_s27 }
 0x6bf   :  { %1343 = vrot.lane.b32.xlu0 %v1339_v29, %s4719_s27 }
 0x730   :  { %v1346_v25 = vpop.permute.xlu1 %1345 }
 0x731   :  { %v1350_v37 = vadd.f32 %v1346_v25, %v1316_v24  ;;  %v1344_v39 = vpop.permute.xlu0 %1343 }
 0x732   :  { %v1349_v22 = vadd.f32 %v1344_v39, %v1311_v38 }
 0x733   :  { %4496 = vtanh.f32 %v1350_v37 }
 0x734   :  { %4498 = vtanh.f32 %v1349_v22 }
 0x73d   :  { %v4497_v10 = vpop.eup %4496 }
 0x73e   :  { %v4499_v5 = vpop.eup %4498  ;;  %1359 = vrot.lane.b32.xlu1 %v4497_v10, %s4717_s3 }
 0x73f   :  { %1357 = vrot.lane.b32.xlu0 %v4499_v5, %s4717_s3 }
 0x7b0   :  { %v1360_v61 = vpop.permute.xlu1 %1359 }
 0x7b1   :  { %v1364_v49 = vmul.f32 %v1360_v61, %v1354_v16  ;;  %v1358_v11 = vpop.permute.xlu0 %1357 }
 0x7b2   :  { %v1363_v29 = vmul.f32 %v1358_v11, %v1353_v31 }
 0x7b3   :  { %v5496_v57 = vadd.f32 %v1366_v9, %v1364_v49  ;;  %v5513_v49 = vld [vmem:[%s6095_s8 + $0x8] sm:$0xff]  }
 0x7b4   :  { %v5498_v25 = vadd.f32 %v1365_v52, %v1363_v29  ;;  %v5520_v52 = vld [vmem:[%s6095_s8 + $0x10] sm:$0xff]  }
 0x7b6   :  { %v1369_v22 = vpack.c.bf16 %v5496_v57, %v5498_v25 }
 0x7b8   :  { %1371 = vrot.lane.b32.xlu0 %v1369_v22, %s4717_s3 }
 0x82a   :  { %v1372_v24 = vpop.permute.xlu0 %1371 }
 0x82b   :  { %4012 = vmatmul.mubr.msk.bf16.vlgmr.msra.gmra.mrb[20].mxu1 %vm485_vm8, %v1372_v24 }
 0x82c   :  { %4034 = vmatpush3.bf16.msra.mxu1 %v5507_v58 }
 0x82d   :  { %4035 = vmatprep.subr.bf16.mxu1 %v5513_v49 }
 0x830   :  { %4036 = vmatpush3.bf16.msra.mxu1 %v5513_v49 }
 0x831   :  { %4037 = vmatprep.subr.bf16.mxu1 %v5520_v52 }
 0x834   :  { %4038 = vmatpush3.bf16.msra.mxu1 %v5520_v52 }
 0x835   :  { %4039 = vmatprep.subr.bf16.mxu1 %v5165_v42 }
 0x838   :  { %4040 = vmatpush3.bf16.msra.mxu1 %v5165_v42 }
 0x839   :  { %4399 = vmatprep.subr.msk.bf16.mxu1 %vm389_vm0, %v5172_v43 }
 0x83c   :  { %4042 = vmatpush3.bf16.msra.mxu1 %v5178_v45 }
 0x83d   :  { %4098 = vmatprep.subr.bf16.mxu1 %v6106_v18 }
 0x8fe   :  { %v1410_v7 = vpop.f32.mrb[20].mxu1 }
 0x8ff   :  { %v4013_v38 = vpop.f32.mrb[21].mxu1 }
 0x900   :  { %v1413_v3 = vpop.f32.mrb[22].mxu1 }
 0x901   :  { %v1417_v32 = vpack.c.bf16 %v1413_v3, %v1410_v7  ;;  %v4014_v37 = vpop.f32.mrb[23].mxu1 }
 0x903   :  { %4015 = vmatprep.subr.bf16.mxu0 %v1417_v32 }
 0x904   :  { %4016 = vmatpush3.bf16.msra.mxu0 %v1417_v32 }
 0x905   :  { %4059 = vmatprep.subr.bf16.mxu0 %v6106_v18 }
 0x907   :  { %4018 = vmatmul.mubr.msk.bf16.vlgmr.msra.gmra.mrb[24].mxu0 %vm547_vm7, %v5095_v56 }
 0x908   :  { %4021 = vmatprep.mubr.msk.bf16.mxu0 %vm547_vm7, %v5106_v1 }
 0x90f   :  { %4022 = vmatmul.mubr.msk.bf16.gmra.mrb[28].mxu0 %vm547_vm7, %v5124_v14 }
 0x910   :  { %4025 = vmatprep.mubr.msk.bf16.mxu0 %vm547_vm7, %v5126_v15 }
 0x917   :  { %4026 = vmatmul.mubr.msk.bf16.gmra.mrb[32].mxu0 %vm547_vm7, %v5144_v33 }
 0x918   :  { %4029 = vmatprep.mubr.msk.bf16.mxu0 %vm547_vm7, %v5146_v34 }
 0x91f   :  { %4030 = vmatmul.mubr.msk.bf16.gmra.mrb[36].mxu0 %vm547_vm7, %v5156_v41 }
 0x920   :  { %4075 = vmatprep.mubr.msk.bf16.mxu0 %vm4715_vm2, %v6106_v18 }
 0x9da   :  { %v4019_v42 = vpop.f32.mrb[24].mxu0 }
 0x9db   :  { %v1461_v43 = vadd.f32 %v4019_v42, %v5185_v46  ;;  %v1452_v39 = vpop.f32.mrb[25].mxu0  ;;  %v4667_v42 = vld [vmem:[%s6091_s29] sm:$0xff]  }
 0x9dc   :  { %v1453_v10 = vadd.f32 %v1452_v39, %v5190_v47  ;;  %v4020_v5 = vpop.f32.mrb[26].mxu0 }
 0x9dd   :  { %v1464_v16 = vadd.f32 %v4020_v5, %v5195_v50  ;;  %v1455_v61 = vpop.f32.mrb[27].mxu0  ;;  %v1517_v9 = vmax.f32 %v1461_v43, 0.0 }
 0x9de   :  { %v1456_v31 = vadd.f32 %v1455_v61, %v5201_v53  ;;  %v1515_v29 = vmax.f32 %v1453_v10, 0.0 }
 0x9df   :  { %v1518_v11 = vmax.f32 %v1464_v16, 0.0 }
 0x9e0   :  { %v1516_v22 = vmax.f32 %v1456_v31, 0.0 }
 0x9e1   :  { %v1532_v24 = vpack.c.bf16 %v1518_v11, %v1517_v9  ;;  %v6113_v11 = vld [vmem:[#allocation8_spill] sm:$0xff] }
 0x9e2   :  { %v1531_v7 = vpack.c.bf16 %v1516_v22, %v1515_v29  ;;  %v4023_v38 = vpop.f32.mrb[28].mxu0 }
 0x9e3   :  { %v1477_v3 = vadd.f32 %v4023_v38, %v5209_v0  ;;  %v1468_v32 = vpop.f32.mrb[29].mxu0 }
 0x9e4   :  { %v1469_v46 = vadd.f32 %v1468_v32, %v5214_v4  ;;  %v4024_v37 = vpop.f32.mrb[30].mxu0  ;;  %4043 = vmatprep.mubr.msk.bf16.mxu1 %vm735_vm13, %v1531_v7 }
 0x9e5   :  { %v1480_v47 = vadd.f32 %v4024_v37, %v5219_v12  ;;  %v1471_v50 = vpop.f32.mrb[31].mxu0  ;;  %4044 = vmatmul.mubr.msk.bf16.vlgmr.msra.gmra.mrb[24].mxu1 %vm735_vm13, %v1532_v24  ;;  %v1521_v43 = vmax.f32 %v1477_v3, 0.0  ;;  %v4668_v12 = vld [vmem:[%s6091_s29 + $0x8] sm:$0xff]   ;;  %v6114_v24 = vld [vmem:[#allocation9_spill] sm:$0xff] }
 0x9e6   :  { %v1472_v53 = vadd.f32 %v1471_v50, %v5225_v17  ;;  %4099 = vmatpush3.bf16.msra.mxu1 %v4667_v42  ;;  %v1519_v4 = vmax.f32 %v1469_v46, 0.0  ;;  %v6115_v50 = vld [vmem:[#allocation10_spill] sm:$0xff]  ;;  %v6116_v42 = vld [vmem:[#allocation11_spill] sm:$0xff] }
 0x9e7   :  { %v1522_v0 = vmax.f32 %v1480_v47, 0.0  ;;  %4100 = vmatprep.subr.bf16.mxu1 %v6106_v18 }
 0x9e8   :  { %v1520_v39 = vmax.f32 %v1472_v53, 0.0 }
 0x9e9   :  { %v1534_v10 = vpack.c.bf16 %v1522_v0, %v1521_v43 }
 0x9ea   :  { %v1533_v5 = vpack.c.bf16 %v1520_v39, %v1519_v4  ;;  %v4027_v16 = vpop.f32.mrb[32].mxu0  ;;  %4101 = vmatpush3.bf16.msra.mxu1 %v4668_v12  ;;  %v6117_v4 = vld [vmem:[#allocation12_spill] sm:$0xff] }
 0x9eb   :  { %v1493_v17 = vadd.f32 %v4027_v16, %v5237_v28  ;;  %v1484_v61 = vpop.f32.mrb[33].mxu0  ;;  %4124 = vmatprep.subr.bf16.mxu1 %v5507_v58 }
 0x9ec   :  { %v1485_v31 = vadd.f32 %v1484_v61, %v5242_v30  ;;  %v4028_v9 = vpop.f32.mrb[34].mxu0  ;;  %4047 = vmatprep.mubr.msk.bf16.mxu1 %vm735_vm13, %v1533_v5  ;;  %v6118_v5 = vld [vmem:[#allocation13_spill] sm:$0xff] }
 0x9ed   :  { %v1496_v29 = vadd.f32 %v4028_v9, %v6113_v11  ;;  %v1487_v22 = vpop.f32.mrb[35].mxu0  ;;  %4048 = vmatmul.mubr.msk.bf16.gmra.mrb[28].mxu1 %vm735_vm13, %v1534_v10  ;;  %v1525_v38 = vmax.f32 %v1493_v17, 0.0 }
 0x9ee   :  { %v1488_v7 = vadd.f32 %v1487_v22, %v6114_v24  ;;  %v1523_v32 = vmax.f32 %v1485_v31, 0.0  ;;  %v6119_v24 = vld [vmem:[#allocation14_spill] sm:$0xff] }
 0x9ef   :  { %v1526_v3 = vmax.f32 %v1496_v29, 0.0 }
 0x9f0   :  { %v1524_v46 = vmax.f32 %v1488_v7, 0.0 }
 0x9f1   :  { %v1536_v28 = vpack.c.bf16 %v1526_v3, %v1525_v38 }
 0x9f2   :  { %v1535_v37 = vpack.c.bf16 %v1524_v46, %v1523_v32  ;;  %v4031_v47 = vpop.f32.mrb[36].mxu0 }
 0x9f3   :  { %v1509_v53 = vadd.f32 %v4031_v47, %v6115_v50  ;;  %v1500_v30 = vpop.f32.mrb[37].mxu0 }
 0x9f4   :  { %v1501_v43 = vadd.f32 %v1500_v30, %v6116_v42  ;;  %v4032_v0 = vpop.f32.mrb[38].mxu0  ;;  %4051 = vmatprep.mubr.msk.bf16.mxu1 %vm735_vm13, %v1535_v37 }
 0x9f5   :  { %v1512_v39 = vadd.f32 %v4032_v0, %v6117_v4  ;;  %v1503_v10 = vpop.f32.mrb[39].mxu0  ;;  %4052 = vmatmul.mubr.msk.bf16.gmra.mrb[32].mxu1 %vm735_vm13, %v1536_v28  ;;  %v1529_v12 = vmax.f32 %v1509_v53, 0.0 }
 0x9f6   :  { %v1504_v16 = vadd.f32 %v1503_v10, %v6118_v5  ;;  %v1527_v61 = vmax.f32 %v1501_v43, 0.0 }
 0x9f7   :  { %v1530_v17 = vmax.f32 %v1512_v39, 0.0 }
 0x9f8   :  { %v1528_v31 = vmax.f32 %v1504_v16, 0.0 }
 0x9f9   :  { %v1538_v9 = vpack.c.bf16 %v1530_v17, %v1529_v12 }
 0x9fa   :  { %v1537_v11 = vpack.c.bf16 %v1528_v31, %v1527_v61 }
 0x9fc   :  { %4055 = vmatprep.mubr.msk.bf16.mxu1 %vm735_vm13, %v1537_v11 }
 0x9fd   :  { %4056 = vmatmul.mubr.msk.bf16.gmra.mrb[36].mxu1 %vm735_vm13, %v1538_v9 }
 0x9fe   :  { %4102 = vmatprep.mubr.msk.bf16.mxu1 %vm4715_vm2, %v6106_v18 }
 0xab8   :  { %v4045_v29 = vpop.f32.mrb[24].mxu1 }
 0xab9   :  { %v1597_v22 = vpop.f32.mrb[25].mxu1  ;;  %v1606_v46 = vadd.f32 %v4045_v29, %v6119_v24 }
 0xaba   :  { %v1598_v7 = vadd.f32 %v6119_v24, %v1597_v22  ;;  %v4046_v38 = vpop.f32.mrb[26].mxu1 }
 0xabb   :  { %v1600_v3 = vpop.f32.mrb[27].mxu1  ;;  %v1609_v28 = vadd.f32 %v4046_v38, %v6119_v24 }
 0xabc   :  { %v1601_v32 = vadd.f32 %v6119_v24, %v1600_v3  ;;  %1772 = vrot.lane.b32.xlu1 %v1598_v7, %s4716_s10 }
 0xabe   :  { %1774 = vrot.lane.b32.xlu0 %v1601_v32, %s4716_s10 }
 0xac0   :  { %v4049_v37 = vpop.f32.mrb[28].mxu1  ;;  %1776 = vrot.lane.b32.xlu1 %v1606_v46, %s4716_s10 }
 0xac1   :  { %v1613_v47 = vpop.f32.mrb[29].mxu1  ;;  %v1622_v43 = vadd.f32 %v4049_v37, %v6119_v24 }
 0xac2   :  { %v1614_v50 = vadd.f32 %v6119_v24, %v1613_v47  ;;  %v4050_v53 = vpop.f32.mrb[30].mxu1  ;;  %1778 = vrot.lane.b32.xlu0 %v1609_v28, %s4716_s10  ;;  %v3642_v47 = vmul.f32 -1.442695, %v1598_v7 }
 0xac3   :  { %v1616_v30 = vpop.f32.mrb[31].mxu1  ;;  %v1625_v0 = vadd.f32 %v4050_v53, %v6119_v24  ;;  %v3643_v53 = vmul.f32 -1.442695, %v1601_v32 }
 0xac4   :  { %v1617_v42 = vadd.f32 %v6119_v24, %v1616_v30  ;;  %1780 = vrot.lane.b32.xlu1 %v1614_v50, %s4716_s10  ;;  %v3644_v30 = vmul.f32 -1.442695, %v1606_v46  ;;  %4500 = vpow2.f32 %v3642_v47 }
 0xac5   :  { %4502 = vpow2.f32 %v3643_v53 }
 0xac6   :  { %1782 = vrot.lane.b32.xlu0 %v1617_v42, %s4716_s10  ;;  %4504 = vpow2.f32 %v3644_v30 }
 0xac8   :  { %v4053_v4 = vpop.f32.mrb[32].mxu1  ;;  %1784 = vrot.lane.b32.xlu1 %v1622_v43, %s4716_s10 }
 0xac9   :  { %v1629_v39 = vpop.f32.mrb[33].mxu1  ;;  %v1638_v17 = vadd.f32 %v4053_v4, %v6119_v24  ;;  %v3645_v4 = vmul.f32 -1.442695, %v1609_v28 }
 0xaca   :  { %v1630_v10 = vadd.f32 %v6119_v24, %v1629_v39  ;;  %v4054_v5 = vpop.f32.mrb[34].mxu1  ;;  %1786 = vrot.lane.b32.xlu0 %v1625_v0, %s4716_s10  ;;  %v3646_v39 = vmul.f32 -1.442695, %v1614_v50 }
 0xacb   :  { %v1632_v16 = vpop.f32.mrb[35].mxu1  ;;  %v1641_v61 = vadd.f32 %v4054_v5, %v6119_v24  ;;  %4506 = vpow2.f32 %v3645_v4  ;;  %v3647_v5 = vmul.f32 -1.442695, %v1617_v42  ;;  %v3652_v28 = vmul.f32 -1.442695, %v1638_v17 }
 0xacc   :  { %v1633_v12 = vadd.f32 %v6119_v24, %v1632_v16  ;;  %1788 = vrot.lane.b32.xlu1 %v1630_v10, %s4716_s10  ;;  %v3648_v16 = vmul.f32 -1.442695, %v1622_v43  ;;  %4508 = vpow2.f32 %v3646_v39 }
 0xacd   :  { %4510 = vpow2.f32 %v3647_v5  ;;  %v3653_v42 = vmul.f32 -1.442695, %v1641_v61 }
 0xace   :  { %1790 = vrot.lane.b32.xlu0 %v1633_v12, %s4716_s10  ;;  %4512 = vpow2.f32 %v3648_v16  ;;  %v3651_v7 = vmul.f32 -1.442695, %v1633_v12 }
 0xad0   :  { %v4057_v31 = vpop.f32.mrb[36].mxu1  ;;  %1792 = vrot.lane.b32.xlu1 %v1638_v17, %s4716_s10 }
 0xad1   :  { %v1645_v9 = vpop.f32.mrb[37].mxu1  ;;  %v1654_v3 = vadd.f32 %v4057_v31, %v6119_v24  ;;  %v4501_v31 = vpop.eup %4500 }
 0xad2   :  { %v1646_v11 = vadd.f32 %v6119_v24, %v1645_v9  ;;  %v4058_v29 = vpop.f32.mrb[38].mxu1  ;;  %1794 = vrot.lane.b32.xlu0 %v1641_v61, %s4716_s10  ;;  %v3649_v9 = vmul.f32 -1.442695, %v1625_v0 }
 0xad3   :  { %v1648_v22 = vpop.f32.mrb[39].mxu1  ;;  %v1657_v37 = vadd.f32 %v4058_v29, %v6119_v24  ;;  %v3650_v29 = vmul.f32 -1.442695, %v1630_v10  ;;  %v3656_v17 = vmul.f32 -1.442695, %v1654_v3 }
 0xad4   :  { %v1649_v38 = vadd.f32 %v6119_v24, %v1648_v22  ;;  %1796 = vrot.lane.b32.xlu1 %v1646_v11, %s4716_s10  ;;  %v4503_v24 = vpop.eup %4502  ;;  %v1708_v22 = vadd.f32 1.0, %v4501_v31  ;;  %4514 = vpow2.f32 %v3649_v9  ;;  %v3654_v53 = vmul.f32 -1.442695, %v1646_v11 }
 0xad5   :  { %v4505_v41 = vpop.eup %4504  ;;  %v1709_v32 = vadd.f32 1.0, %v4503_v24  ;;  %4516 = vpow2.f32 %v3650_v29  ;;  %v3657_v61 = vmul.f32 -1.442695, %v1657_v37 }
 0xad6   :  { %1798 = vrot.lane.b32.xlu0 %v1649_v38, %s4716_s10  ;;  %v4507_v46 = vpop.eup %4506  ;;  %v1710_v47 = vadd.f32 1.0, %v4505_v41  ;;  %4518 = vrcp.f32 %v1708_v22  ;;  %v3655_v4 = vmul.f32 -1.442695, %v1649_v38 }
 0xad7   :  { %v4509_v50 = vpop.eup %4508  ;;  %4520 = vpow2.f32 %v3651_v7  ;;  %v1711_v43 = vadd.f32 1.0, %v4507_v46 }
 0xad8   :  { %1800 = vrot.lane.b32.xlu1 %v1654_v3, %s4716_s10  ;;  %4522 = vrcp.f32 %v1709_v32  ;;  %v4511_v0 = vpop.eup %4510  ;;  %v1712_v10 = vadd.f32 1.0, %v4509_v50 }
 0xad9   :  { %4524 = vpow2.f32 %v3652_v28  ;;  %v4513_v30 = vpop.eup %4512  ;;  %v1713_v12 = vadd.f32 1.0, %v4511_v0 }
 0xada   :  { %1802 = vrot.lane.b32.xlu0 %v1657_v37, %s4716_s10  ;;  %4526 = vrcp.f32 %v1710_v47  ;;  %v1714_v41 = vadd.f32 1.0, %v4513_v30 }
 0xadb   :  { %4528 = vpow2.f32 %v3653_v42 }
 0xadc   :  { %4530 = vrcp.f32 %v1711_v43 }
 0xadd   :  { %4532 = vpow2.f32 %v3654_v53 }
 0xade   :  { %v4515_v39 = vpop.eup %4514  ;;  %4534 = vrcp.f32 %v1712_v10 }
 0xadf   :  { %v4517_v5 = vpop.eup %4516  ;;  %4536 = vpow2.f32 %v3655_v4  ;;  %v1715_v31 = vadd.f32 1.0, %v4515_v39 }
 0xae0   :  { %v4519_v16 = vpop.eup %4518  ;;  %4538 = vrcp.f32 %v1713_v12  ;;  %v1716_v38 = vadd.f32 1.0, %v4517_v5 }
 0xae1   :  { %v4521_v11 = vpop.eup %4520  ;;  %4540 = vpow2.f32 %v3656_v17 }
 0xae2   :  { %v4523_v29 = vpop.eup %4522  ;;  %4542 = vrcp.f32 %v1714_v41  ;;  %v1717_v46 = vadd.f32 1.0, %v4521_v11 }
 0xae3   :  { %v4525_v7 = vpop.eup %4524  ;;  %4544 = vpow2.f32 %v3657_v61 }
 0xae4   :  { %v4527_v32 = vpop.eup %4526  ;;  %4546 = vrcp.f32 %v1715_v31  ;;  %v1718_v0 = vadd.f32 1.0, %v4525_v7 }
 0xae5   :  { %v4529_v37 = vpop.eup %4528  ;;  %4548 = vrcp.f32 %v1716_v38 }
 0xae6   :  { %v4531_v43 = vpop.eup %4530  ;;  %v1719_v39 = vadd.f32 1.0, %v4529_v37  ;;  %4550 = vrcp.f32 %v1717_v46 }
 0xae7   :  { %v4533_v10 = vpop.eup %4532  ;;  %4552 = vrcp.f32 %v1718_v0 }
 0xae8   :  { %v4535_v12 = vpop.eup %4534  ;;  %4554 = vrcp.f32 %v1719_v39 }
 0xae9   :  { %v4537_v41 = vpop.eup %4536 }
 0xaea   :  { %v4539_v31 = vpop.eup %4538  ;;  %v1721_v7 = vadd.f32 1.0, %v4537_v41 }
 0xb2e   :  { %v1773_v9 = vpop.permute.xlu1 %1772 }
 0xb2f   :  { %v1820_v24 = vmul.f32 %v4519_v16, %v1773_v9  ;;  %v1720_v9 = vadd.f32 1.0, %v4533_v10 }
 0xb30   :  { %v1775_v22 = vpop.permute.xlu0 %1774 }
 0xb31   :  { %v1821_v3 = vmul.f32 %v4523_v29, %v1775_v22  ;;  %v1836_v47 = vmul.f32 %v1820_v24, %v5347_v36  ;;  %v4541_v24 = vpop.eup %4540  ;;  %4556 = vrcp.f32 %v1720_v9 }
 0xb32   :  { %v1777_v28 = vpop.permute.xlu1 %1776  ;;  %v4543_v22 = vpop.eup %4542  ;;  %4558 = vrcp.f32 %v1721_v7 }
 0xb33   :  { %v1837_v50 = vmul.f32 %v1821_v3, %v5349_v40  ;;  %v1822_v42 = vmul.f32 %v4527_v32, %v1777_v28  ;;  %v4545_v32 = vpop.eup %4544 }
 0xb34   :  { %v1779_v53 = vpop.permute.xlu0 %1778  ;;  %v1723_v10 = vadd.f32 1.0, %v4545_v32 }
 0xb35   :  { %v1823_v30 = vmul.f32 %v4531_v43, %v1779_v53  ;;  %v1852_v4 = vpack.c.bf16 %v1837_v50, %v1836_v47  ;;  %v1838_v5 = vmul.f32 %v1822_v42, %v5351_v21  ;;  %v4547_v47 = vpop.eup %4546  ;;  %v1722_v50 = vadd.f32 1.0, %v4541_v24 }
 0xb36   :  { %v1781_v17 = vpop.permute.xlu1 %1780  ;;  %v4549_v53 = vpop.eup %4548 }
 0xb37   :  { %v1839_v61 = vmul.f32 %v1823_v30, %v5353_v51  ;;  %v1824_v16 = vmul.f32 %v4535_v12, %v1781_v17  ;;  %1868 = vrot.lane.b32.xlu1 %v1852_v4, %s4717_s3  ;;  %v4551_v17 = vpop.eup %4550  ;;  %4560 = vrcp.f32 %v1722_v50 }
 0xb38   :  { %v1783_v11 = vpop.permute.xlu0 %1782  ;;  %4562 = vrcp.f32 %v1723_v10 }
 0xb39   :  { %v1853_v29 = vpack.c.bf16 %v1839_v61, %v1838_v5  ;;  %v1825_v38 = vmul.f32 %v4539_v31, %v1783_v11  ;;  %v1840_v46 = vmul.f32 %v1824_v16, %v5355_v62  ;;  %v4553_v16 = vpop.eup %4552 }
 0xb3a   :  { %v1785_v3 = vpop.permute.xlu1 %1784 }
 0xb3b   :  { %v1841_v28 = vmul.f32 %v1825_v38, %v5357_v8  ;;  %v1826_v37 = vmul.f32 %v4543_v22, %v1785_v3  ;;  %1870 = vrot.lane.b32.xlu0 %v1853_v29, %s4717_s3  ;;  %v4555_v29 = vpop.eup %4554 }
 0xb3c   :  { %v1787_v42 = vpop.permute.xlu0 %1786  ;;  %v4557_v3 = vpop.eup %4556 }
 0xb3d   :  { %v1854_v43 = vpack.c.bf16 %v1841_v28, %v1840_v46  ;;  %v1827_v0 = vmul.f32 %v4547_v47, %v1787_v42  ;;  %v1842_v4 = vmul.f32 %v1826_v37, %v5359_v20  ;;  %v4559_v47 = vpop.eup %4558 }
 0xb3e   :  { %v1789_v30 = vpop.permute.xlu1 %1788 }
 0xb3f   :  { %v1843_v12 = vmul.f32 %v1827_v0, %v5361_v23  ;;  %v1828_v39 = vmul.f32 %v4549_v53, %v1789_v30  ;;  %1872 = vrot.lane.b32.xlu1 %v1854_v43, %s4717_s3 }
 0xb40   :  { %v1791_v41 = vpop.permute.xlu0 %1790 }
 0xb41   :  { %v1855_v5 = vpack.c.bf16 %v1843_v12, %v1842_v4  ;;  %v1829_v61 = vmul.f32 %v4551_v17, %v1791_v41  ;;  %v1844_v9 = vmul.f32 %v1828_v39, %v5363_v44  ;;  %v4561_v0 = vpop.eup %4560 }
 0xb42   :  { %v1793_v31 = vpop.permute.xlu1 %1792  ;;  %v4563_v12 = vpop.eup %4562 }
 0xb43   :  { %v1845_v11 = vmul.f32 %v1829_v61, %v5365_v59  ;;  %v1830_v24 = vmul.f32 %v4553_v16, %v1793_v31  ;;  %1874 = vrot.lane.b32.xlu0 %v1855_v5, %s4717_s3 }
 0xb44   :  { %v1795_v38 = vpop.permute.xlu0 %1794 }
 0xb45   :  { %v1856_v22 = vpack.c.bf16 %v1845_v11, %v1844_v9  ;;  %v1831_v7 = vmul.f32 %v4555_v29, %v1795_v38  ;;  %v1846_v46 = vmul.f32 %v1830_v24, %v5367_v19 }
 0xb46   :  { %v1797_v32 = vpop.permute.xlu1 %1796 }
 0xb47   :  { %v1847_v28 = vmul.f32 %v1831_v7, %v5369_v26  ;;  %v1832_v37 = vmul.f32 %v4557_v3, %v1797_v32  ;;  %1876 = vrot.lane.b32.xlu1 %v1856_v22, %s4717_s3  ;;  %v6120_v3 = vmov 1.0|1.0  }
 0xb48   :  { %v1799_v50 = vpop.permute.xlu0 %1798 }
 0xb49   :  { %v1857_v42 = vpack.c.bf16 %v1847_v28, %v1846_v46  ;;  %v1833_v43 = vmul.f32 %v4559_v47, %v1799_v50  ;;  %v1848_v10 = vmul.f32 %v1832_v37, %v5371_v35 }
 0xb4a   :  { %v1801_v53 = vpop.permute.xlu1 %1800 }
 0xb4b   :  { %v1849_v30 = vmul.f32 %v1833_v43, %v5373_v54  ;;  %v1834_v4 = vmul.f32 %v4561_v0, %v1801_v53  ;;  %1878 = vrot.lane.b32.xlu0 %v1857_v42, %s4717_s3  ;;  %v6121_v43 = vld [vmem:[#allocation17_spill] sm:$0xff] }
 0xb4c   :  { %v1803_v39 = vpop.permute.xlu0 %1802 }
 0xb4d   :  { %v1858_v17 = vpack.c.bf16 %v1849_v30, %v1848_v10  ;;  %v1835_v41 = vmul.f32 %v4563_v12, %v1803_v39  ;;  %v1850_v5 = vmul.f32 %v1834_v4, %v5397_v55 }
 0xb4f   :  { %v1851_v61 = vmul.f32 %v1835_v41, %v5399_v63  ;;  %1880 = vrot.lane.b32.xlu1 %v1858_v17, %s4717_s3 }
 0xb51   :  { %v1859_v16 = vpack.c.bf16 %v1851_v61, %v1850_v5 }
 0xb53   :  { %1882 = vrot.lane.b32.xlu0 %v1859_v16, %s4717_s3 }
 0xba9   :  { %v1869_v31 = vpop.permute.xlu1 %1868 }
 0xbaa   :  { %4060 = vmatpush3.bf16.msra.mxu0 %v1869_v31 }
 0xbab   :  { %4061 = vmatprep.subr.bf16.mxu0 %v6106_v18 }
 0xbad   :  { %v1871_v9 = vpop.permute.xlu0 %1870 }
 0xbae   :  { %4062 = vmatpush3.bf16.msra.mxu0 %v1871_v9 }
 0xbaf   :  { %4063 = vmatprep.subr.bf16.mxu0 %v6106_v18 }
 0xbb1   :  { %v1873_v11 = vpop.permute.xlu1 %1872 }
 0xbb2   :  { %4064 = vmatpush3.bf16.msra.mxu0 %v1873_v11 }
 0xbb3   :  { %4065 = vmatprep.subr.bf16.mxu0 %v6106_v18 }
 0xbb5   :  { %v1875_v24 = vpop.permute.xlu0 %1874 }
 0xbb6   :  { %4066 = vmatpush3.bf16.msra.mxu0 %v1875_v24 }
 0xbb7   :  { %4067 = vmatprep.subr.bf16.mxu0 %v6106_v18 }
 0xbb9   :  { %v1877_v29 = vpop.permute.xlu1 %1876 }
 0xbba   :  { %4068 = vmatpush3.bf16.msra.mxu0 %v1877_v29 }
 0xbbb   :  { %4069 = vmatprep.subr.bf16.mxu0 %v6106_v18 }
 0xbbd   :  { %v1879_v38 = vpop.permute.xlu0 %1878 }
 0xbbe   :  { %4070 = vmatpush3.bf16.msra.mxu0 %v1879_v38 }
 0xbbf   :  { %4071 = vmatprep.subr.bf16.mxu0 %v6106_v18 }
 0xbc1   :  { %v1881_v22 = vpop.permute.xlu1 %1880 }
 0xbc2   :  { %4072 = vmatpush3.bf16.msra.mxu0 %v1881_v22 }
 0xbc3   :  { %4073 = vmatprep.subr.bf16.mxu0 %v6106_v18 }
 0xbc5   :  { %v1883_v7 = vpop.permute.xlu0 %1882 }
 0xbc6   :  { %4074 = vmatpush3.bf16.msra.mxu0 %v1883_v7 }
 0xbc7   :  { %4302 = vmatprep.subr.bf16.mxu0 %v5436_v60 }
 0xbc9   :  { %4076 = vmatmul.mubr.msk.bf16.vlgmr.msra.gmra.mrb[40].mxu0 %vm5444_vm6, %v6120_v3 }
 0xbca   :  { %4304 = vmatpush3.bf16.msra.mxu0 %v5436_v60 }
 0xbcb   :  { %4306 = vmatprep.subr.bf16.mxu0 %v5449_v13 }
 0xbce   :  { %4308 = vmatpush3.bf16.msra.mxu0 %v5449_v13 }
 0xbcf   :  { %4310 = vmatprep.subr.bf16.mxu0 %v5462_v48 }
 0xbd2   :  { %4312 = vmatpush3.bf16.msra.mxu0 %v5462_v48 }
 0xbd3   :  { %4314 = vmatprep.subr.bf16.mxu0 %v5473_v27 }
 0xbd6   :  { %4316 = vmatpush3.bf16.msra.mxu0 %v5473_v27 }
 0xc9c   :  { %v1926_v32 = vpop.f32.mrb[40].mxu0 }
 0xc9d   :  { %v1933_v46 = vsel %vm485_vm8, %v1926_v32, %v5498_v25  ;;  %v4077_v28 = vpop.f32.mrb[41].mxu0 }
 0xc9e   :  { %v1929_v37 = vpop.f32.mrb[42].mxu0  ;;  %4095 = vmatprep.mubr.msk.f32.mxu0 %vm1237_vm9, %v1933_v46 }
 0xc9f   :  { %v1934_v47 = vsel %vm485_vm8, %v1929_v37, %v5496_v57  ;;  %v4078_v50 = vpop.f32.mrb[43].mxu0 }
 0xca0   :  { %4096 = vmatmul.mubr.msk.f32.vlgmr.msra.gmra.mrb[44].mxu0 %vm1237_vm9, %v1934_v47 }
 0xca1   :  { %4108 = vmatprep.mubr.msk.bf16.mxu0 %vm547_vm7, %v5036_v2 }
 0xd73   :  { %v4097_v42 = vpop.f32.mrb[44].mxu0 }
 0xd74   :  { %v2013_v0 = vadd.f32 %v4097_v42, %v6121_v43  ;;  %v2007_v53 = vpop.f32.mrb[45].mxu0 }
 0xd75   :  { %v2008_v10 = vadd.f32 %v6121_v43, %v2007_v53 }
 0xd76   :  { %2032 = vrot.lane.b32.xlu0 %v2013_v0, %s4716_s10  ;;  %v3663_v30 = vmul.f32 -1.442695, %v2013_v0 }
 0xd77   :  { %2030 = vrot.lane.b32.xlu1 %v2008_v10, %s4716_s10  ;;  %v3662_v4 = vmul.f32 -1.442695, %v2008_v10 }
 0xd78   :  { %4564 = vpow2.f32 %v3663_v30 }
 0xd79   :  { %4566 = vpow2.f32 %v3662_v4 }
 0xd82   :  { %v4565_v12 = vpop.eup %4564 }
 0xd83   :  { %v4567_v39 = vpop.eup %4566  ;;  %v2023_v17 = vadd.f32 1.0, %v4565_v12 }
 0xd84   :  { %v2022_v41 = vadd.f32 1.0, %v4567_v39 }
 0xd85   :  { %4568 = vrcp.f32 %v2023_v17 }
 0xd86   :  { %4570 = vrcp.f32 %v2022_v41 }
 0xd8f   :  { %v4569_v2 = vpop.eup %4568 }
 0xd90   :  { %v4571_v61 = vpop.eup %4570  ;;  %v2051_v32 = vsub.f32 1.0, %v4569_v2  ;;  %v2063_v37 = vmul.f32 %v4569_v2, %v5496_v57  ;;  %v4669_v57 = vld [vmem:[%s6095_s8 + $0x18] sm:$0xff]  }
 0xd91   :  { %v2050_v28 = vsub.f32 1.0, %v4571_v61  ;;  %v2062_v42 = vmul.f32 %v4571_v61, %v5498_v25  ;;  %v4670_v25 = vld [vmem:[%s6095_s8 + $0x20] ss:$0 sps:$4 sm:$0xff]  }
 0xde8   :  { %v2033_v5 = vpop.permute.xlu0 %2032 }
 0xde9   :  { %v2037_v16 = vmul.f32 %v4569_v2, %v2033_v5  ;;  %v2031_v31 = vpop.permute.xlu1 %2030  ;;  %v4674_v5 = vld [vmem:[%s6097_s7 + $0x8] sm:$0xff] }
 0xdea   :  { %v2036_v9 = vmul.f32 %v4571_v61, %v2031_v31 }
 0xdeb   :  { %2042 = vrot.lane.b32.xlu0 %v2037_v16, %s4719_s27 }
 0xdec   :  { %2040 = vrot.lane.b32.xlu1 %v2036_v9, %s4719_s27 }
 0xe5d   :  { %v2043_v11 = vpop.permute.xlu0 %2042 }
 0xe5e   :  { %v2047_v24 = vadd.f32 %v2043_v11, %v2013_v0  ;;  %v2041_v29 = vpop.permute.xlu1 %2040 }
 0xe5f   :  { %v2046_v38 = vadd.f32 %v2041_v29, %v2008_v10 }
 0xe60   :  { %4572 = vtanh.f32 %v2047_v24 }
 0xe61   :  { %4574 = vtanh.f32 %v2046_v38 }
 0xe6a   :  { %v4573_v22 = vpop.eup %4572 }
 0xe6b   :  { %v4575_v7 = vpop.eup %4574  ;;  %2056 = vrot.lane.b32.xlu0 %v4573_v22, %s4717_s3  ;;  %v4675_v22 = vld [vmem:[%s6097_s7 + $0x30] sm:$0xff] }
 0xe6c   :  { %2054 = vrot.lane.b32.xlu1 %v4575_v7, %s4717_s3 }
 0xedd   :  { %v2057_v46 = vpop.permute.xlu0 %2056 }
 0xede   :  { %v2061_v47 = vmul.f32 %v2057_v46, %v2051_v32  ;;  %v2055_v50 = vpop.permute.xlu1 %2054  ;;  %v4676_v46 = vld [vmem:[%s6097_s7 + $0x20] sm:$0xff] }
 0xedf   :  { %v2060_v43 = vmul.f32 %v2055_v50, %v2050_v28 }
 0xee0   :  { %v5673_v0 = vadd.f32 %v2063_v37, %v2061_v47  ;;  %v4677_v47 = vld [vmem:[%s6097_s7 + $0x38] sm:$0xff] }
 0xee1   :  { %v5675_v53 = vadd.f32 %v2062_v42, %v2060_v43  ;;  %v4678_v43 = vld [vmem:[%s6097_s7 + $0x28] sm:$0xff] }
 0xee3   :  { %v2066_v10 = vpack.c.bf16 %v5673_v0, %v5675_v53 }
 0xee5   :  { %2068 = vrot.lane.b32.xlu1 %v2066_v10, %s4717_s3 }
 0xf57   :  { %v2069_v30 = vpop.permute.xlu1 %2068 }
 0xf58   :  { %4103 = vmatmul.mubr.msk.bf16.vlgmr.msra.gmra.mrb[40].mxu1 %vm485_vm8, %v2069_v30 }
 0xf59   :  { %4125 = vmatpush3.bf16.msra.mxu1 %v5507_v58 }
 0xf5a   :  { %4126 = vmatprep.subr.bf16.mxu1 %v5513_v49 }
 0xf5d   :  { %4127 = vmatpush3.bf16.msra.mxu1 %v5513_v49 }
 0xf5e   :  { %4128 = vmatprep.subr.bf16.mxu1 %v5520_v52 }
 0xf61   :  { %4129 = vmatpush3.bf16.msra.mxu1 %v5520_v52 }
 0xf62   :  { %4130 = vmatprep.subr.bf16.mxu1 %v4669_v57 }
 0xf65   :  { %4131 = vmatpush3.bf16.msra.mxu1 %v4669_v57 }
 0xf66   :  { %4400 = vmatprep.subr.msk.bf16.mxu1 %vm389_vm0, %v4670_v25 }
 0xf69   :  { %4133 = vmatpush3.bf16.msra.mxu1 %v5178_v45  ;;  %v6122_v45 = vld [vmem:[#allocation7_spill] sm:$0xff] }
0x102b   :  { %v2107_v58 = vpop.f32.mrb[40].mxu1 }
0x102c   :  { %v4104_v49 = vpop.f32.mrb[41].mxu1 }
0x102d   :  { %v2110_v4 = vpop.f32.mrb[42].mxu1 }
0x102e   :  { %v2114_v12 = vpack.c.bf16 %v2110_v4, %v2107_v58  ;;  %v4105_v39 = vpop.f32.mrb[43].mxu1 }
0x102f   :  { %v4679_v39 = vld [vmem:[%s6097_s7 + $0x50] sm:$0xff] }
0x1030   :  { %4106 = vmatprep.subr.bf16.mxu0 %v2114_v12 }
0x1031   :  { %4107 = vmatpush3.bf16.msra.mxu0 %v2114_v12 }
0x1032   :  { %4150 = vmatprep.subr.bf16.mxu0 %v6106_v18 }
0x1034   :  { %4109 = vmatmul.mubr.msk.bf16.vlgmr.msra.gmra.mrb[48].mxu0 %vm547_vm7, %v5095_v56 }
0x1035   :  { %4112 = vmatprep.mubr.msk.bf16.mxu0 %vm547_vm7, %v5106_v1  ;;  %v4671_v1 = vld [vmem:[%s6097_s7 + $0x10] sm:$0xff] }
0x103c   :  { %4113 = vmatmul.mubr.msk.bf16.gmra.mrb[52].mxu0 %vm547_vm7, %v5124_v14 }
0x103d   :  { %4116 = vmatprep.mubr.msk.bf16.mxu0 %vm547_vm7, %v5126_v15  ;;  %v4672_v15 = vld [vmem:[%s6097_s7] sm:$0xff] }
0x1044   :  { %4117 = vmatmul.mubr.msk.bf16.gmra.mrb[56].mxu0 %vm547_vm7, %v5144_v33 }
0x1045   :  { %4120 = vmatprep.mubr.msk.bf16.mxu0 %vm547_vm7, %v5146_v34  ;;  %v4673_v34 = vld [vmem:[%s6097_s7 + $0x18] sm:$0xff] }
0x104c   :  { %4121 = vmatmul.mubr.msk.bf16.gmra.mrb[60].mxu0 %vm547_vm7, %v6122_v45 }
0x104d   :  { %4166 = vmatprep.mubr.msk.bf16.mxu0 %vm4715_vm2, %v6106_v18 }
0x1107   :  { %v4110_v56 = vpop.f32.mrb[48].mxu0 }
0x1108   :  { %v2158_v14 = vadd.f32 %v4671_v1, %v4110_v56  ;;  %v2149_v52 = vpop.f32.mrb[49].mxu0  ;;  %v4680_v1 = vld [vmem:[%s6097_s7 + $0x40] sm:$0xff] }
0x1109   :  { %v2150_v33 = vadd.f32 %v4672_v15, %v2149_v52  ;;  %v4111_v17 = vpop.f32.mrb[50].mxu0  ;;  %v4681_v15 = vld [vmem:[%s6097_s7 + $0x58] sm:$0xff] }
0x110a   :  { %v2161_v41 = vadd.f32 %v4673_v34, %v4111_v17  ;;  %v2152_v2 = vpop.f32.mrb[51].mxu0  ;;  %v2214_v16 = vmax.f32 %v2158_v14, 0.0  ;;  %v4682_v34 = vld [vmem:[%s6097_s7 + $0x48] sm:$0xff] }
0x110b   :  { %v2153_v61 = vadd.f32 %v4674_v5, %v2152_v2  ;;  %v2212_v9 = vmax.f32 %v2150_v33, 0.0 }
0x110c   :  { %v2215_v31 = vmax.f32 %v2161_v41, 0.0 }
0x110d   :  { %v2213_v11 = vmax.f32 %v2153_v61, 0.0 }
0x110e   :  { %v2229_v24 = vpack.c.bf16 %v2215_v31, %v2214_v16 }
0x110f   :  { %v2228_v29 = vpack.c.bf16 %v2213_v11, %v2212_v9  ;;  %v4114_v38 = vpop.f32.mrb[52].mxu0 }
0x1110   :  { %v2174_v7 = vadd.f32 %v4675_v22, %v4114_v38  ;;  %v2165_v32 = vpop.f32.mrb[53].mxu0  ;;  %v4684_v22 = vld [vmem:[%s6097_s7 + $0x60] sm:$0xff] }
0x1111   :  { %v2166_v28 = vadd.f32 %v4676_v46, %v2165_v32  ;;  %v4115_v37 = vpop.f32.mrb[54].mxu0  ;;  %4134 = vmatprep.mubr.msk.bf16.mxu1 %vm735_vm13, %v2228_v29  ;;  %v4685_v46 = vld [vmem:[%s6097_s7 + $0x78] sm:$0xff] }
0x1112   :  { %v2177_v50 = vadd.f32 %v4677_v47, %v4115_v37  ;;  %v2168_v42 = vpop.f32.mrb[55].mxu0  ;;  %4135 = vmatmul.mubr.msk.bf16.vlgmr.msra.gmra.mrb[44].mxu1 %vm735_vm13, %v2229_v24  ;;  %v2218_v30 = vmax.f32 %v2174_v7, 0.0  ;;  %v4683_v24 = vld [vmem:[%s6097_s7 + $0x70] sm:$0xff]  ;;  %v4686_v47 = vld [vmem:[%s6097_s7 + $0x68] sm:$0xff] }
0x1113   :  { %v2169_v10 = vadd.f32 %v4678_v43, %v2168_v42  ;;  %v2216_v25 = vmax.f32 %v2166_v28, 0.0 }
0x1114   :  { %v2219_v57 = vmax.f32 %v2177_v50, 0.0 }
0x1115   :  { %v2217_v58 = vmax.f32 %v2169_v10, 0.0 }
0x1116   :  { %v2231_v49 = vpack.c.bf16 %v2219_v57, %v2218_v30 }
0x1117   :  { %v2230_v4 = vpack.c.bf16 %v2217_v58, %v2216_v25  ;;  %v4118_v12 = vpop.f32.mrb[56].mxu0 }
0x1118   :  { %v2190_v45 = vadd.f32 %v4679_v39, %v4118_v12  ;;  %v2181_v56 = vpop.f32.mrb[57].mxu0 }
0x1119   :  { %v2182_v14 = vadd.f32 %v4680_v1, %v2181_v56  ;;  %v4119_v52 = vpop.f32.mrb[58].mxu0  ;;  %4138 = vmatprep.mubr.msk.bf16.mxu1 %vm735_vm13, %v2230_v4  ;;  %v4687_v4 = vld [vmem:[%s6104_s24] ss:$0 sm:$0xff] }
0x111a   :  { %v2193_v33 = vadd.f32 %v4681_v15, %v4119_v52  ;;  %v2184_v17 = vpop.f32.mrb[59].mxu0  ;;  %4139 = vmatmul.mubr.msk.bf16.gmra.mrb[48].mxu1 %vm735_vm13, %v2231_v49  ;;  %v2222_v2 = vmax.f32 %v2190_v45, 0.0 }
0x111b   :  { %v2185_v41 = vadd.f32 %v4682_v34, %v2184_v17  ;;  %v2220_v61 = vmax.f32 %v2182_v14, 0.0 }
0x111c   :  { %v2223_v5 = vmax.f32 %v2193_v33, 0.0 }
0x111d   :  { %v2221_v16 = vmax.f32 %v2185_v41, 0.0 }
0x111e   :  { %v2233_v31 = vpack.c.bf16 %v2223_v5, %v2222_v2 }
0x111f   :  { %v2232_v9 = vpack.c.bf16 %v2221_v16, %v2220_v61  ;;  %v4122_v11 = vpop.f32.mrb[60].mxu0 }
0x1120   :  { %v2206_v29 = vadd.f32 %v4683_v24, %v4122_v11  ;;  %v2197_v38 = vpop.f32.mrb[61].mxu0 }
0x1121   :  { %v2198_v7 = vadd.f32 %v4684_v22, %v2197_v38  ;;  %v4123_v32 = vpop.f32.mrb[62].mxu0  ;;  %4142 = vmatprep.mubr.msk.bf16.mxu1 %vm735_vm13, %v2232_v9 }
0x1122   :  { %v2209_v28 = vadd.f32 %v4685_v46, %v4123_v32  ;;  %v2200_v37 = vpop.f32.mrb[63].mxu0  ;;  %4143 = vmatmul.mubr.msk.bf16.gmra.mrb[52].mxu1 %vm735_vm13, %v2233_v31  ;;  %v2226_v42 = vmax.f32 %v2206_v29, 0.0 }
0x1123   :  { %v2201_v50 = vadd.f32 %v4686_v47, %v2200_v37  ;;  %v2224_v10 = vmax.f32 %v2198_v7, 0.0 }
0x1124   :  { %v2227_v43 = vmax.f32 %v2209_v28, 0.0 }
0x1125   :  { %v2225_v30 = vmax.f32 %v2201_v50, 0.0 }
0x1126   :  { %v2235_v57 = vpack.c.bf16 %v2227_v43, %v2226_v42 }
0x1127   :  { %v2234_v25 = vpack.c.bf16 %v2225_v30, %v2224_v10 }
0x1129   :  { %4146 = vmatprep.mubr.msk.bf16.mxu1 %vm735_vm13, %v2234_v25 }
0x112a   :  { %4147 = vmatmul.mubr.msk.bf16.gmra.mrb[56].mxu1 %vm735_vm13, %v2235_v57 }
0x112b   :  { %4204 = vmatprep.mubr.msk.f32.mxu1 %vm4715_vm2, %v6106_v18 }
0x11e5   :  { %v4136_v58 = vpop.f32.mrb[44].mxu1 }
0x11e6   :  { %v2294_v49 = vpop.f32.mrb[45].mxu1  ;;  %v2303_v1 = vadd.f32 %v4687_v4, %v4136_v58 }
0x11e7   :  { %v2295_v12 = vadd.f32 %v4687_v4, %v2294_v49  ;;  %v4137_v39 = vpop.f32.mrb[46].mxu1 }
0x11e8   :  { %v2297_v45 = vpop.f32.mrb[47].mxu1  ;;  %v2306_v14 = vadd.f32 %v4687_v4, %v4137_v39  ;;  %v3683_v10 = vmul.f32 -1.442695, %v2303_v1 }
0x11e9   :  { %v2298_v56 = vadd.f32 %v4687_v4, %v2297_v45  ;;  %2469 = vrot.lane.b32.xlu0 %v2295_v12, %s4716_s10  ;;  %v3681_v42 = vmul.f32 -1.442695, %v2295_v12 }
0x11ea   :  { %v3684_v30 = vmul.f32 -1.442695, %v2306_v14 }
0x11eb   :  { %2471 = vrot.lane.b32.xlu1 %v2298_v56, %s4716_s10  ;;  %v3682_v43 = vmul.f32 -1.442695, %v2298_v56  ;;  %4576 = vpow2.f32 %v3681_v42 }
0x11ed   :  { %v4140_v52 = vpop.f32.mrb[48].mxu1  ;;  %2473 = vrot.lane.b32.xlu0 %v2303_v1, %s4716_s10  ;;  %4578 = vpow2.f32 %v3682_v43 }
0x11ee   :  { %v2310_v15 = vpop.f32.mrb[49].mxu1  ;;  %v2319_v2 = vadd.f32 %v4687_v4, %v4140_v52  ;;  %4580 = vpow2.f32 %v3683_v10 }
0x11ef   :  { %v2311_v33 = vadd.f32 %v4687_v4, %v2310_v15  ;;  %v4141_v17 = vpop.f32.mrb[50].mxu1  ;;  %2475 = vrot.lane.b32.xlu1 %v2306_v14, %s4716_s10  ;;  %4582 = vpow2.f32 %v3684_v30 }
0x11f0   :  { %v2313_v34 = vpop.f32.mrb[51].mxu1  ;;  %v2322_v5 = vadd.f32 %v4687_v4, %v4141_v17  ;;  %v3687_v58 = vmul.f32 -1.442695, %v2319_v2 }
0x11f1   :  { %v2314_v41 = vadd.f32 %v4687_v4, %v2313_v34  ;;  %2477 = vrot.lane.b32.xlu0 %v2311_v33, %s4716_s10  ;;  %v3685_v57 = vmul.f32 -1.442695, %v2311_v33 }
0x11f2   :  { %v3688_v39 = vmul.f32 -1.442695, %v2322_v5 }
0x11f3   :  { %2479 = vrot.lane.b32.xlu1 %v2314_v41, %s4716_s10  ;;  %v3686_v25 = vmul.f32 -1.442695, %v2314_v41  ;;  %4584 = vpow2.f32 %v3685_v57 }
0x11f5   :  { %v4144_v61 = vpop.f32.mrb[52].mxu1  ;;  %2481 = vrot.lane.b32.xlu0 %v2319_v2, %s4716_s10  ;;  %v4577_v49 = vpop.eup %4576  ;;  %4586 = vpow2.f32 %v3686_v25 }
0x11f6   :  { %v2326_v16 = vpop.f32.mrb[53].mxu1  ;;  %v2335_v29 = vadd.f32 %v4687_v4, %v4144_v61  ;;  %4588 = vpow2.f32 %v3687_v58  ;;  %v2405_v52 = vadd.f32 1.0, %v4577_v49 }
0x11f7   :  { %v2327_v31 = vadd.f32 %v4687_v4, %v2326_v16  ;;  %v4145_v9 = vpop.f32.mrb[54].mxu1  ;;  %2483 = vrot.lane.b32.xlu1 %v2322_v5, %s4716_s10  ;;  %4590 = vpow2.f32 %v3688_v39 }
0x11f8   :  { %v2329_v11 = vpop.f32.mrb[55].mxu1  ;;  %v2338_v38 = vadd.f32 %v4687_v4, %v4145_v9  ;;  %v3691_v14 = vmul.f32 -1.442695, %v2335_v29 }
0x11f9   :  { %v2330_v24 = vadd.f32 %v4687_v4, %v2329_v11  ;;  %2485 = vrot.lane.b32.xlu0 %v2327_v31, %s4716_s10  ;;  %v3689_v45 = vmul.f32 -1.442695, %v2327_v31 }
0x11fa   :  { %v3692_v34 = vmul.f32 -1.442695, %v2338_v38 }
0x11fb   :  { %2487 = vrot.lane.b32.xlu1 %v2330_v24, %s4716_s10  ;;  %v3690_v12 = vmul.f32 -1.442695, %v2330_v24  ;;  %4592 = vpow2.f32 %v3689_v45 }
0x11fc   :  { %4594 = vrcp.f32 %v2405_v52 }
0x11fd   :  { %v4148_v22 = vpop.f32.mrb[56].mxu1  ;;  %2489 = vrot.lane.b32.xlu0 %v2335_v29, %s4716_s10  ;;  %4596 = vpow2.f32 %v3690_v12 }
0x11fe   :  { %v2342_v7 = vpop.f32.mrb[57].mxu1  ;;  %v2351_v47 = vadd.f32 %v4687_v4, %v4148_v22 }
0x11ff   :  { %v2343_v32 = vadd.f32 %v4687_v4, %v2342_v7  ;;  %v4149_v46 = vpop.f32.mrb[58].mxu1  ;;  %2491 = vrot.lane.b32.xlu1 %v2338_v38, %s4716_s10 }
0x1200   :  { %v2345_v28 = vpop.f32.mrb[59].mxu1  ;;  %v2354_v50 = vadd.f32 %v4687_v4, %v4149_v46  ;;  %v3695_v24 = vmul.f32 -1.442695, %v2351_v47 }
0x1201   :  { %v2346_v37 = vadd.f32 %v4687_v4, %v2345_v28  ;;  %2493 = vrot.lane.b32.xlu0 %v2343_v32, %s4716_s10  ;;  %v4579_v4 = vpop.eup %4578  ;;  %v3693_v5 = vmul.f32 -1.442695, %v2343_v32 }
0x1202   :  { %v4581_v15 = vpop.eup %4580  ;;  %v2406_v56 = vadd.f32 1.0, %v4579_v4  ;;  %v3696_v38 = vmul.f32 -1.442695, %v2354_v50 }
0x1203   :  { %2495 = vrot.lane.b32.xlu1 %v2346_v37, %s4716_s10  ;;  %v4583_v1 = vpop.eup %4582  ;;  %v2407_v17 = vadd.f32 1.0, %v4581_v15  ;;  %v3694_v31 = vmul.f32 -1.442695, %v2346_v37 }
0x1204   :  { %v4585_v33 = vpop.eup %4584  ;;  %v2408_v41 = vadd.f32 1.0, %v4583_v1  ;;  %4598 = vrcp.f32 %v2406_v56 }
0x1205   :  { %2497 = vrot.lane.b32.xlu0 %v2351_v47, %s4716_s10  ;;  %v4587_v2 = vpop.eup %4586  ;;  %4600 = vpow2.f32 %v3691_v14  ;;  %v2409_v61 = vadd.f32 1.0, %v4585_v33 }
0x1206   :  { %4602 = vrcp.f32 %v2407_v17  ;;  %v4589_v16 = vpop.eup %4588  ;;  %v2410_v9 = vadd.f32 1.0, %v4587_v2 }
0x1207   :  { %2499 = vrot.lane.b32.xlu1 %v2354_v50, %s4716_s10  ;;  %4604 = vpow2.f32 %v3692_v34  ;;  %v4591_v11 = vpop.eup %4590  ;;  %v2411_v29 = vadd.f32 1.0, %v4589_v16 }
0x1208   :  { %4606 = vrcp.f32 %v2408_v41  ;;  %v4593_v22 = vpop.eup %4592  ;;  %v2412_v46 = vadd.f32 1.0, %v4591_v11 }
0x1209   :  { %4608 = vpow2.f32 %v3693_v5  ;;  %v4595_v7 = vpop.eup %4594  ;;  %v2413_v37 = vadd.f32 1.0, %v4593_v22 }
0x120a   :  { %4610 = vrcp.f32 %v2409_v61  ;;  %v4597_v32 = vpop.eup %4596 }
0x120b   :  { %4612 = vpow2.f32 %v3694_v31  ;;  %v2414_v25 = vadd.f32 1.0, %v4597_v32 }
0x120c   :  { %4614 = vrcp.f32 %v2410_v9 }
0x120d   :  { %4616 = vpow2.f32 %v3695_v24 }
0x120e   :  { %v4599_v43 = vpop.eup %4598  ;;  %4618 = vrcp.f32 %v2411_v29 }
0x120f   :  { %v4601_v30 = vpop.eup %4600  ;;  %4620 = vpow2.f32 %v3696_v38 }
0x1210   :  { %v4603_v57 = vpop.eup %4602  ;;  %4622 = vrcp.f32 %v2412_v46  ;;  %v2415_v52 = vadd.f32 1.0, %v4601_v30 }
0x1211   :  { %v4605_v50 = vpop.eup %4604  ;;  %4624 = vrcp.f32 %v2413_v37 }
0x1212   :  { %v4607_v45 = vpop.eup %4606  ;;  %v2416_v17 = vadd.f32 1.0, %v4605_v50  ;;  %4626 = vrcp.f32 %v2414_v25 }
0x1213   :  { %v4609_v12 = vpop.eup %4608  ;;  %4628 = vrcp.f32 %v2415_v52 }
0x1214   :  { %v4611_v14 = vpop.eup %4610  ;;  %v2417_v5 = vadd.f32 1.0, %v4609_v12  ;;  %4630 = vrcp.f32 %v2416_v17 }
0x1215   :  { %v4613_v34 = vpop.eup %4612 }
0x1216   :  { %v2418_v24 = vadd.f32 1.0, %v4613_v34  ;;  %4632 = vrcp.f32 %v2417_v5 }
0x1218   :  { %4634 = vrcp.f32 %v2418_v24 }
0x125b   :  { %v2470_v28 = vpop.permute.xlu0 %2469 }
0x125c   :  { %v2517_v42 = vmul.f32 %v4595_v7, %v2470_v28 }
0x125d   :  { %v2472_v10 = vpop.permute.xlu1 %2471 }
0x125e   :  { %v2518_v47 = vmul.f32 %v4599_v43, %v2472_v10  ;;  %v2533_v49 = vmul.f32 %v2517_v42, %v5347_v36 }
0x125f   :  { %v2474_v58 = vpop.permute.xlu0 %2473 }
0x1260   :  { %v2534_v39 = vmul.f32 %v2518_v47, %v5349_v40  ;;  %v2519_v4 = vmul.f32 %v4603_v57, %v2474_v58  ;;  %v4615_v40 = vpop.eup %4614 }
0x1261   :  { %v2476_v15 = vpop.permute.xlu1 %2475  ;;  %v4617_v16 = vpop.eup %4616 }
0x1262   :  { %v2549_v56 = vpack.c.bf16 %v2534_v39, %v2533_v49  ;;  %v2520_v1 = vmul.f32 %v4607_v45, %v2476_v15  ;;  %v2535_v41 = vmul.f32 %v2519_v4, %v5351_v21  ;;  %v4619_v11 = vpop.eup %4618  ;;  %v2419_v46 = vadd.f32 1.0, %v4617_v16 }
0x1263   :  { %v2478_v33 = vpop.permute.xlu0 %2477  ;;  %v4621_v22 = vpop.eup %4620 }
0x1264   :  { %v2536_v2 = vmul.f32 %v2520_v1, %v5353_v51  ;;  %v2521_v36 = vmul.f32 %v4611_v14, %v2478_v33  ;;  %2565 = vrot.lane.b32.xlu0 %v2549_v56, %s4717_s3  ;;  %v4623_v7 = vpop.eup %4622  ;;  %v2420_v37 = vadd.f32 1.0, %v4621_v22  ;;  %4636 = vrcp.f32 %v2419_v46 }
0x1265   :  { %v2480_v61 = vpop.permute.xlu1 %2479  ;;  %v4625_v43 = vpop.eup %4624 }
0x1266   :  { %v2550_v31 = vpack.c.bf16 %v2536_v2, %v2535_v41  ;;  %v2522_v9 = vmul.f32 %v4615_v40, %v2480_v61  ;;  %v2537_v38 = vmul.f32 %v2521_v36, %v5355_v62  ;;  %4638 = vrcp.f32 %v2420_v37 }
0x1267   :  { %v2482_v29 = vpop.permute.xlu0 %2481 }
0x1268   :  { %v2538_v21 = vmul.f32 %v2522_v9, %v5357_v8  ;;  %v2523_v51 = vmul.f32 %v4619_v11, %v2482_v29  ;;  %2567 = vrot.lane.b32.xlu1 %v2550_v31, %s4717_s3  ;;  %v4627_v8 = vpop.eup %4626 }
0x1269   :  { %v2484_v28 = vpop.permute.xlu1 %2483  ;;  %v4629_v50 = vpop.eup %4628 }
0x126a   :  { %v2551_v32 = vpack.c.bf16 %v2538_v21, %v2537_v38  ;;  %v2524_v42 = vmul.f32 %v4623_v7, %v2484_v28  ;;  %v2539_v30 = vmul.f32 %v2523_v51, %v5359_v20  ;;  %v4631_v20 = vpop.eup %4630 }
0x126b   :  { %v2486_v10 = vpop.permute.xlu0 %2485  ;;  %v4633_v12 = vpop.eup %4632 }
0x126c   :  { %v2540_v47 = vmul.f32 %v2524_v42, %v5361_v23  ;;  %v2525_v62 = vmul.f32 %v4625_v43, %v2486_v10  ;;  %2569 = vrot.lane.b32.xlu0 %v2551_v32, %s4717_s3  ;;  %v4635_v33 = vpop.eup %4634 }
0x126d   :  { %v2488_v57 = vpop.permute.xlu1 %2487 }
0x126e   :  { %v2552_v25 = vpack.c.bf16 %v2540_v47, %v2539_v30  ;;  %v2526_v58 = vmul.f32 %v4627_v8, %v2488_v57  ;;  %v2541_v39 = vmul.f32 %v2525_v62, %v5363_v44  ;;  %v4637_v41 = vpop.eup %4636 }
0x126f   :  { %v2490_v49 = vpop.permute.xlu0 %2489 }
0x1270   :  { %v2542_v4 = vmul.f32 %v2526_v58, %v5365_v59  ;;  %v2527_v45 = vmul.f32 %v4629_v50, %v2490_v49  ;;  %2571 = vrot.lane.b32.xlu1 %v2552_v25, %s4717_s3  ;;  %v4639_v61 = vpop.eup %4638 }
0x1271   :  { %v2492_v23 = vpop.permute.xlu1 %2491 }
0x1272   :  { %v2553_v52 = vpack.c.bf16 %v2542_v4, %v2541_v39  ;;  %v2528_v15 = vmul.f32 %v4631_v20, %v2492_v23  ;;  %v2543_v1 = vmul.f32 %v2527_v45, %v5367_v19  ;;  %v3115_v23 = vld [vmem:[%s6123_s1] sm:$0xff] }
0x1273   :  { %v2494_v56 = vpop.permute.xlu0 %2493 }
0x1274   :  { %v2544_v14 = vmul.f32 %v2528_v15, %v5369_v26  ;;  %v2529_v17 = vmul.f32 %v4633_v12, %v2494_v56  ;;  %2573 = vrot.lane.b32.xlu0 %v2553_v52, %s4717_s3  ;;  %v4720_v52 = vmov 0.0|0.0  }
0x1275   :  { %v2496_v44 = vpop.permute.xlu1 %2495  ;;  %4336 = vmatprep.subr.bf16.mxu1 %v4720_v52 }
0x1276   :  { %v2554_v34 = vpack.c.bf16 %v2544_v14, %v2543_v1  ;;  %v2530_v59 = vmul.f32 %v4635_v33, %v2496_v44  ;;  %v2545_v36 = vmul.f32 %v2529_v17, %v5371_v35 }
0x1277   :  { %v2498_v2 = vpop.permute.xlu0 %2497 }
0x1278   :  { %v2546_v40 = vmul.f32 %v2530_v59, %v5373_v54  ;;  %v2531_v5 = vmul.f32 %v4637_v41, %v2498_v2  ;;  %2575 = vrot.lane.b32.xlu1 %v2554_v34, %s4717_s3  ;;  %v3116_v2 = vld [vmem:[%s6123_s1 + $0x8] sm:$0xff] }
0x1279   :  { %v2500_v19 = vpop.permute.xlu1 %2499 }
0x127a   :  { %v2555_v16 = vpack.c.bf16 %v2546_v40, %v2545_v36  ;;  %v2532_v26 = vmul.f32 %v4639_v61, %v2500_v19  ;;  %v2547_v31 = vmul.f32 %v2531_v5, %v5397_v55  ;;  %v2848_v36 = vld [vmem:[%s6031_s13] sm:$0xff]  ;;  %v2851_v5 = vld [vmem:[%s6031_s13 + $0x18] sm:$0xff]  ;;  %v6124_v19 = vld [vmem:[#allocation15_spill] sm:$0xff] }
0x127c   :  { %v2548_v9 = vmul.f32 %v2532_v26, %v5399_v63  ;;  %2577 = vrot.lane.b32.xlu0 %v2555_v16, %s4717_s3  ;;  %v6125_v16 = vmul.u32 8, %v6124_v19 }
0x127e   :  { %v2556_v11 = vpack.c.bf16 %v2548_v9, %v2547_v31  ;;  %v2763_v26 = vadd.s32 7, %v6125_v16 }
0x1280   :  { %2579 = vrot.lane.b32.xlu1 %v2556_v11, %s4717_s3 }
0x12d6   :  { %v2566_v24 = vpop.permute.xlu0 %2565 }
0x12d7   :  { %4151 = vmatpush3.bf16.msra.mxu0 %v2566_v24  ;;  %v6126_v24 = vld [vmem:[#allocation6_spill] sm:$0xff] }
0x12d8   :  { %4152 = vmatprep.subr.bf16.mxu0 %v6106_v18  ;;  %vm2764_vm0 = vcmp.eq.s32.totalorder %v6126_v24, %v2763_v26  ;;  %vm3129_vm10 = vcmp.eq.s32.totalorder %v6126_v24, %v6124_v19 }
0x12da   :  { %v2568_v35 = vpop.permute.xlu1 %2567 }
0x12db   :  { %4153 = vmatpush3.bf16.msra.mxu0 %v2568_v35  ;;  %v2933_v35 = vld [vmem:[%s6033_s15] sm:$0xff] }
0x12dc   :  { %4154 = vmatprep.subr.bf16.mxu0 %v6106_v18 }
0x12de   :  { %v2570_v54 = vpop.permute.xlu0 %2569 }
0x12df   :  { %4155 = vmatpush3.bf16.msra.mxu0 %v2570_v54  ;;  %v2934_v54 = vld [vmem:[%s6033_s15 + $0x8] sm:$0xff] }
0x12e0   :  { %4156 = vmatprep.subr.bf16.mxu0 %v6106_v18 }
0x12e2   :  { %v2572_v55 = vpop.permute.xlu1 %2571 }
0x12e3   :  { %4157 = vmatpush3.bf16.msra.mxu0 %v2572_v55 }
0x12e4   :  { %4158 = vmatprep.subr.bf16.mxu0 %v6106_v18 }
0x12e6   :  { %v2574_v63 = vpop.permute.xlu0 %2573 }
0x12e7   :  { %4159 = vmatpush3.bf16.msra.mxu0 %v2574_v63  ;;  %v3703_v63 = vsel %vm2764_vm0, 1.0, %v6106_v18 }
0x12e8   :  { %4160 = vmatprep.subr.bf16.mxu0 %v6106_v18 }
0x12ea   :  { %v2576_v29 = vpop.permute.xlu1 %2575 }
0x12eb   :  { %4161 = vmatpush3.bf16.msra.mxu0 %v2576_v29  ;;  %v4343_v29 = vpack.c.bf16 %v2934_v54, %v2933_v35 }
0x12ec   :  { %4162 = vmatprep.subr.bf16.mxu0 %v6106_v18 }
0x12ee   :  { %v2578_v22 = vpop.permute.xlu0 %2577 }
0x12ef   :  { %4163 = vmatpush3.bf16.msra.mxu0 %v2578_v22  ;;  %v2935_v22 = vld [vmem:[%s6033_s15 + $0x10] sm:$0xff] }
0x12f0   :  { %4164 = vmatprep.subr.bf16.mxu0 %v6106_v18 }
0x12f2   :  { %v2580_v38 = vpop.permute.xlu1 %2579 }
0x12f3   :  { %4165 = vmatpush3.bf16.msra.mxu0 %v2580_v38  ;;  %v2936_v38 = vld [vmem:[%s6033_s15 + $0x18] sm:$0xff] }
0x12f4   :  { %4318 = vmatprep.subr.bf16.mxu0 %v5436_v60 }
0x12f6   :  { %4167 = vmatmul.mubr.msk.bf16.vlgmr.msra.gmra.mrb[64].mxu0 %vm5444_vm6, %v6120_v3 }
0x12f7   :  { %4320 = vmatpush3.bf16.msra.mxu0 %v5436_v60 }
0x12f8   :  { %4322 = vmatprep.subr.bf16.mxu0 %v5449_v13 }
0x12fb   :  { %4324 = vmatpush3.bf16.msra.mxu0 %v5449_v13 }
0x12fc   :  { %4326 = vmatprep.subr.bf16.mxu0 %v5462_v48 }
0x12ff   :  { %4328 = vmatpush3.bf16.msra.mxu0 %v5462_v48 }
0x1300   :  { %4330 = vmatprep.subr.bf16.mxu0 %v5473_v27 }
0x1303   :  { %4332 = vmatpush3.bf16.msra.mxu0 %v5473_v27  ;;  %v4688_v27 = vld [vmem:[%s6030_s12] ss:$0 sm:$0xff] }
0x1304   :  { %4333 = vmatprep.subr.bf16.mxu0 %v4720_v52 }
0x13c9   :  { %v2623_v21 = vpop.f32.mrb[64].mxu0 }
0x13ca   :  { %v2630_v51 = vsel %vm485_vm8, %v2623_v21, %v5675_v53  ;;  %v4168_v6 = vpop.f32.mrb[65].mxu0  ;;  %v4346_v21 = vpack.c.bf16 %v2936_v38, %v2935_v22  ;;  %v3412_v22 = vld [vmem:[%s6041_s23 + $0x10] sm:$0xff] }
0x13cb   :  { %v2626_v3 = vpop.f32.mrb[66].mxu0  ;;  %4186 = vmatprep.mubr.msk.f32.mxu0 %vm1237_vm9, %v2630_v51 }
0x13cc   :  { %v2631_v60 = vsel %vm485_vm8, %v2626_v3, %v5673_v0  ;;  %v4169_v13 = vpop.f32.mrb[67].mxu0  ;;  %v3018_v3 = vld [vmem:[%s6035_s17] sm:$0xff] }
0x13cd   :  { %4187 = vmatmul.mubr.msk.f32.vlgmr.msra.gmra.mrb[46].mxu0 %vm1237_vm9, %v2631_v60  ;;  %v3019_v60 = vld [vmem:[%s6035_s17 + $0x8] sm:$0xff] }
0x13ce   :  { %4193 = vmatprep.mubr.msk.f32.mxu0 %vm4715_vm2, %v6106_v18  ;;  %v4349_v13 = vpack.c.bf16 %v3019_v60, %v3018_v3  ;;  %v3415_v3 = vld [vmem:[%s6041_s23 + $0x28] sm:$0xff] }
0x14a0   :  { %v4188_v48 = vpop.f32.mrb[46].mxu0 }
0x14a1   :  { %v2710_v7 = vadd.f32 %v4688_v27, %v4188_v48  ;;  %v2704_v46 = vpop.f32.mrb[47].mxu0 }
0x14a2   :  { %v2705_v28 = vadd.f32 %v4688_v27, %v2704_v46  ;;  %v3713_v46 = vsel %vm3129_vm10, 1.0, %v6106_v18 }
0x14a3   :  { %2729 = vrot.lane.b32.xlu1 %v2710_v7, %s4716_s10  ;;  %v3702_v32 = vmul.f32 -1.442695, %v2710_v7 }
0x14a4   :  { %2727 = vrot.lane.b32.xlu0 %v2705_v28, %s4716_s10  ;;  %v3701_v42 = vmul.f32 -1.442695, %v2705_v28 }
0x14a5   :  { %4640 = vpow2.f32 %v3702_v32 }
0x14a6   :  { %4642 = vpow2.f32 %v3701_v42  ;;  %v6127_v42 = vld [vmem:[#allocation16_spill] sm:$0xff] }
0x14af   :  { %v4641_v43 = vpop.eup %4640 }
0x14b0   :  { %v4643_v37 = vpop.eup %4642  ;;  %v2720_v10 = vadd.f32 1.0, %v4641_v43 }
0x14b1   :  { %v2719_v30 = vadd.f32 1.0, %v4643_v37 }
0x14b2   :  { %4644 = vrcp.f32 %v2720_v10 }
0x14b3   :  { %4646 = vrcp.f32 %v2719_v30 }
0x14bc   :  { %v4645_v47 = vpop.eup %4644 }
0x14bd   :  { %v4647_v8 = vpop.eup %4646  ;;  %v2748_v15 = vsub.f32 1.0, %v4645_v47  ;;  %v2760_v1 = vmul.f32 %v4645_v47, %v5673_v0  ;;  %v2849_v0 = vld [vmem:[%s6031_s13 + $0x8] sm:$0xff] }
0x14be   :  { %v2747_v56 = vsub.f32 1.0, %v4647_v8  ;;  %v2759_v33 = vmul.f32 %v4647_v8, %v5675_v53  ;;  %v2850_v53 = vld [vmem:[%s6031_s13 + $0x10] sm:$0xff]  ;;  %v4337_v40 = vpack.c.bf16 %v2849_v0, %v2848_v36 }
0x14bf   :  { %v4340_v61 = vpack.c.bf16 %v2851_v5, %v2850_v53  ;;  %v3318_v0 = vld [vmem:[%s6039_s21 + $0x30] sm:$0xff]  ;;  %v3319_v53 = vld [vmem:[%s6039_s21 + $0x38] sm:$0xff]  ;;  %v3709_v5 = vld [vmem:[%s6036_s18] ss:$0 sm:$0xff] }
0x14c0   :  { %4338 = vmatpush3.bf16.msra.mxu1 %v4337_v40  ;;  %v4378_v40 = vpack.c.bf16 %v3319_v53, %v3318_v0 }
0x14c1   :  { %4339 = vmatprep.subr.bf16.mxu1 %v4720_v52 }
0x14c4   :  { %4341 = vmatpush3.bf16.msra.mxu1 %v4340_v61 }
0x14c5   :  { %4348 = vmatprep.subr.bf16.mxu1 %v4720_v52 }
0x1515   :  { %v2730_v62 = vpop.permute.xlu1 %2729 }
0x1516   :  { %v2734_v57 = vmul.f32 %v4645_v47, %v2730_v62  ;;  %v2728_v25 = vpop.permute.xlu0 %2727 }
0x1517   :  { %v2733_v58 = vmul.f32 %v4647_v8, %v2728_v25  ;;  %v3021_v25 = vld [vmem:[%s6035_s17 + $0x18] sm:$0xff] }
0x1518   :  { %2739 = vrot.lane.b32.xlu1 %v2734_v57, %s4719_s27  ;;  %v3020_v57 = vld [vmem:[%s6035_s17 + $0x10] sm:$0xff] }
0x1519   :  { %2737 = vrot.lane.b32.xlu0 %v2733_v58, %s4719_s27  ;;  %v4352_v58 = vpack.c.bf16 %v3021_v25, %v3020_v57 }
0x158a   :  { %v2740_v50 = vpop.permute.xlu1 %2739 }
0x158b   :  { %v2744_v49 = vadd.f32 %v2740_v50, %v2710_v7  ;;  %v2738_v39 = vpop.permute.xlu0 %2737  ;;  %v3705_v7 = vld [vmem:[%s6032_s14] ss:$0 sm:$0xff]  ;;  %v3219_v50 = vld [vmem:[%s6037_s19 + $0x8] sm:$0xff] }
0x158c   :  { %v2743_v4 = vadd.f32 %v2738_v39, %v2705_v28  ;;  %v3312_v39 = vld [vmem:[%s6039_s21] sm:$0xff] }
0x158d   :  { %4648 = vtanh.f32 %v2744_v49 }
0x158e   :  { %4650 = vtanh.f32 %v2743_v4  ;;  %v3313_v4 = vld [vmem:[%s6039_s21 + $0x8] sm:$0xff] }
0x1597   :  { %v4649_v45 = vpop.eup %4648 }
0x1598   :  { %v4651_v20 = vpop.eup %4650  ;;  %2753 = vrot.lane.b32.xlu1 %v4649_v45, %s4717_s3  ;;  %v4366_v45 = vpack.c.bf16 %v3313_v4, %v3312_v39 }
0x1599   :  { %2751 = vrot.lane.b32.xlu0 %v4651_v20, %s4717_s3  ;;  %v3707_v20 = vld [vmem:[%s6034_s16] ss:$0 sm:$0xff] }
0x159c   :  { %3118 = vperm.xlu1 %4411, %v3115_v23  }
0x160a   :  { %v2754_v12 = vpop.permute.xlu1 %2753 }
0x160b   :  { %v2758_v14 = vmul.f32 %v2754_v12, %v2748_v15  ;;  %v2752_v17 = vpop.permute.xlu0 %2751  ;;  %v3221_v15 = vld [vmem:[%s6037_s19 + $0x18] sm:$0xff] }
0x160c   :  { %v2757_v44 = vmul.f32 %v2752_v17, %v2747_v56 }
0x160d   :  { %v2762_v34 = vadd.f32 %v2760_v1, %v2758_v14 }
0x160e   :  { %v2761_v59 = vadd.f32 %v2759_v33, %v2757_v44  ;;  %v3314_v44 = vld [vmem:[%s6039_s21 + $0x10] sm:$0xff] }
0x1610   :  { %v4412_v41 = vpack.i.bf16 %v2762_v34, %v2761_v59  ;;  %v3315_v34 = vld [vmem:[%s6039_s21 + $0x18] sm:$0xff] }
0x1611   :  { %v4370_v59 = vpack.c.bf16 %v3315_v34, %v3314_v44 }
0x1612   :  { %4413 = vrot.lane.b32.xlu0 %v4412_v41, %s4717_s3  ;;  %v3316_v41 = vld [vmem:[%s6039_s21 + $0x20] sm:$0xff] }
0x1616   :  { %3121 = vperm.xlu0 %4410, %v3116_v2   ;;  %v3317_v2 = vld [vmem:[%s6039_s21 + $0x28] sm:$0xff] }
0x1617   :  { %v4374_v36 = vpack.c.bf16 %v3317_v2, %v3316_v41 }
0x161b   :  { %v3119_v48 = vpop.permute.xlu1 %3118 }
0x161c   :  { %vm3123_vm11 = vcmp.eq.s32.totalorder %v6126_v24, %v3119_v48  ;;  %v3417_v48 = vld [vmem:[%s6041_s23 + $0x38] sm:$0xff] }
0x161d   :  { %v3711_v32 = vsel %vm3123_vm11, 1.0, %v6106_v18 }
0x161e   :  { %v3135_v30 = vsub.f32 %v3711_v32, %v3713_v46 }
0x1684   :  { %v4414_v31 = vpop.permute.xlu0 %4413 }
0x1685   :  { %v4416_v9 = vunpack.i.h.bf16 %v4414_v31  ;;  %v4415_v11 = vunpack.i.l.bf16 %v4414_v31  ;;  %v3717_v31 = vld [vmem:[%s6038_s20] ss:$0 sm:$0xff] }
0x1687   :  { %v4334_v55 = vpack.c.bf16 %v4416_v9, %v4415_v11 }
0x1689   :  { %4335 = vmatpush3.bf16.msra.mxu0 %v4334_v55 }
0x168a   :  { %4342 = vmatprep.subr.bf16.mxu0 %v4720_v52 }
0x168c   :  { %4194 = vmatmul.mubr.msk.f32.vlgmr.msra.gmra.mrb[68].mxu0 %vm547_vm7, %v3703_v63  ;;  %v3410_v63 = vld [vmem:[%s6041_s23] sm:$0xff] }
0x168d   :  { %4344 = vmatpush3.bf16.msra.mxu0 %v4343_v29  ;;  %4215 = vmatprep.mubr.msk.f32.mxu0 %vm4715_vm2, %v6106_v18  ;;  %v3411_v29 = vld [vmem:[%s6041_s23 + $0x8] sm:$0xff] }
0x168e   :  { %4345 = vmatprep.subr.bf16.mxu0 %v4720_v52  ;;  %v4382_v38 = vpack.c.bf16 %v3411_v29, %v3410_v63 }
0x1691   :  { %4347 = vmatpush3.bf16.msra.mxu0 %v4346_v21  ;;  %v3413_v21 = vld [vmem:[%s6041_s23 + $0x18] sm:$0xff] }
0x1692   :  { %4355 = vmatprep.subr.bf16.mxu0 %v4334_v55 }
0x1695   :  { %v3122_v27 = vpop.permute.xlu0 %3121 }
0x1696   :  { %vm3124_vm12 = vcmp.eq.s32.totalorder %v6126_v24, %v3122_v27 }
0x1697   :  { %v3712_v62 = vsel %vm3124_vm12, 1.0, %v6106_v18 }
0x175f   :  { %v2844_v51 = vpop.f32.mrb[68].mxu0 }
0x1760   :  { %v4195_v6 = vpop.f32.mrb[69].mxu0  ;;  %4205 = vmatmul.mubr.msk.f32.vlgmr.msra.gmra.mrb[60].mxu1 %vm485_vm8, %v2844_v51  ;;  %v4386_v51 = vpack.c.bf16 %v3413_v21, %v3412_v22 }
0x1761   :  { %4226 = vmatprep.mubr.msk.f32.mxu1 %vm4715_vm2, %v6106_v18  ;;  %4350 = vmatpush3.bf16.msra.mxu1 %v4349_v13  ;;  %vm3130_vm2 = vcmp.eq.s32.totalorder %v6126_v24, %v6127_v42  ;;  %v3414_v6 = vld [vmem:[%s6041_s23 + $0x20] sm:$0xff]  ;;  %v3416_v13 = vld [vmem:[%s6041_s23 + $0x30] sm:$0xff]  ;;  %s4721_s23 = smov [#allocation3]  }
0x1762   :  { %4351 = vmatprep.subr.bf16.mxu1 %v4720_v52  ;;  %v3714_v47 = vsel %vm3130_vm2, 1.0, %v6106_v18  ;;  %v3218_v18 = vld [vmem:[%s6037_s19] sm:$0xff]  ;;  %v3220_v52 = vld [vmem:[%s6037_s19 + $0x10] sm:$0xff]  ;;  %v4390_v60 = vpack.c.bf16 %v3415_v3, %v3414_v6  ;;  %v4394_v27 = vpack.c.bf16 %v3417_v48, %v3416_v13  ;;  %s3527_s5 = sshll.u32 %s4721_s23, 4  ;;  %s3528_s5 = int_to_ptr.vmem [resolvable:$true] %s3527_s5 }
0x1763   :  { %v3136_v8 = vsub.f32 %v3712_v62, %v3714_v47  ;;  %v4358_v49 = vpack.c.bf16 %v3219_v50, %v3218_v18  ;;  %v4362_v14 = vpack.c.bf16 %v3221_v15, %v3220_v52  ;;  %p4694_p1 = scmp.lt.s32.totalorder %s3528_s5, %s3528_s5 }
0x1765   :  { %4353 = vmatpush3.bf16.msra.mxu1 %v4352_v58 }
0x1766   :  { %4359 = vmatprep.subr.bf16.mxu1 %v4358_v49 }
0x1833   :  { %v2928_v28 = vpop.f32.mrb[60].mxu1 }
0x1834   :  { %v2929_v43 = vadd.f32 %v3705_v7, %v2928_v28  ;;  %v4206_v37 = vpop.f32.mrb[61].mxu1 }
0x1836   :  { %v2932_v10 = vmax.f32 %v2929_v43, 0.0  ;;  %v3720_v43 = vld [vmem:[%s6040_s22] ss:$0 sm:$0xff]  ;;  %s4689_s22 = scalar_lea.vmem %s3528_s5, 32 }
0x1837   :  { %p4690_p0 = scmp.ne.s32.totalorder %s3528_s5, %s4689_s22  ;;  %p4695_p2 = scmp.lt.s32.totalorder %s4689_s22, %s4689_s22 }
0x1838   :  { %4216 = vmatmul.mubr.msk.f32.vlgmr.msra.gmra.mrb[70].mxu0 %vm485_vm8, %v2932_v10 }
0x1839   :  { %4357 = vmatpush3.bf16.msra.mxu0 %v4334_v55  ;;  %4233 = vmatprep.mubr.msk.f32.mxu0 %vm547_vm7, %v3135_v30  ;;  %p4696_p3 = por %p4695_p2, %p4694_p1 }
0x183a   :  { %4367 = vmatprep.subr.bf16.mxu0 %v4366_v45 }
0x183b   :  { %p4697_p4 = pnand %p4696_p3, %p4690_p0 }
0x183c   :  { %4234 = vmatmul.mubr.msk.f32.vlgmr.msra.gmra.mrb[72].mxu0 %vm547_vm7, %v3136_v8  ;;  %vm3102_vm7 = vcmask 25600  }
0x183d   :  { %4369 = vmatpush3.bf16.msra.mxu0 %v4366_v45 }
0x183e   :  { %4371 = vmatprep.subr.bf16.mxu0 %v4370_v59 }
0x1841   :  { %4373 = vmatpush3.bf16.msra.mxu0 %v4370_v59 }
0x1842   :  { %4375 = vmatprep.subr.bf16.mxu0 %v4374_v36 }
0x1845   :  { %4377 = vmatpush3.bf16.msra.mxu0 %v4374_v36 }
0x1846   :  { %4379 = vmatprep.subr.bf16.mxu0 %v4378_v40 }
0x1849   :  { %4381 = vmatpush3.bf16.msra.mxu0 %v4378_v40 }
0x190b   :  { %v3013_v23 = vpop.f32.mrb[70].mxu0 }
0x190c   :  { %v3014_v12 = vadd.f32 %v3707_v20, %v3013_v23  ;;  %v4217_v56 = vpop.f32.mrb[71].mxu0 }
0x190e   :  { %v3017_v1 = vmax.f32 %v3014_v12, 0.0 }
0x190f   :  { %v4235_v17 = vpop.f32.mrb[72].mxu0 }
0x1910   :  { %4227 = vmatmul.mubr.msk.f32.vlgmr.msra.gmra.mrb[62].mxu1 %vm485_vm8, %v3017_v1  ;;  %v3209_v33 = vpop.f32.mrb[73].mxu0 }
0x1911   :  { %4361 = vmatpush3.bf16.msra.mxu1 %v4358_v49  ;;  %4244 = vmatprep.mubr.msk.f32.mxu1 %vm485_vm8, %v3209_v33 }
0x1912   :  { %4363 = vmatprep.subr.bf16.mxu1 %v4362_v14 }
0x1915   :  { %4365 = vmatpush3.bf16.msra.mxu1 %v4362_v14 }
0x1916   :  { %4383 = vmatprep.subr.bf16.mxu1 %v4382_v38 }
0x1918   :  { %4245 = vmatmul.mubr.msk.f32.vlgmr.msra.gmra.mrb[64].mxu1 %vm485_vm8, %v4235_v17 }
0x1919   :  { %4385 = vmatpush3.bf16.msra.mxu1 %v4382_v38 }
0x191a   :  { %4387 = vmatprep.subr.bf16.mxu1 %v4386_v51 }
0x191d   :  { %4389 = vmatpush3.bf16.msra.mxu1 %v4386_v51 }
0x191e   :  { %4391 = vmatprep.subr.bf16.mxu1 %v4390_v60 }
0x1921   :  { %4393 = vmatpush3.bf16.msra.mxu1 %v4390_v60 }
0x1922   :  { %4395 = vmatprep.subr.bf16.mxu1 %v4394_v27 }
0x1925   :  { %4397 = vmatpush3.bf16.msra.mxu1 %v4394_v27 }
0x19e3   :  { %v3098_v61 = vpop.f32.mrb[62].mxu1 }
0x19e4   :  { %v3099_v19 = vadd.f32 %v3709_v5, %v3098_v61  ;;  %v4228_v16 = vpop.f32.mrb[63].mxu1 }
0x19e6   :  { %v3103_v26 = vsel %vm3102_vm7, %v3099_v19, -inf }
0x19e7   :  { %3104 = vmax.xlane.f32.xlu1 %v3103_v26 }
0x19eb   :  { %v4246_v9 = vpop.f32.mrb[64].mxu1 }
0x19ec   :  { %v3307_v11 = vadd.f32 %v4246_v9, %v3717_v31  ;;  %v3301_v24 = vpop.f32.mrb[65].mxu1 }
0x19ed   :  { %v3302_v35 = vadd.f32 %v3717_v31, %v3301_v24 }
0x19ee   :  { %v3311_v55 = vmax.f32 %v3307_v11, 0.0 }
0x19ef   :  { %v3310_v54 = vmax.f32 %v3302_v35, 0.0 }
0x19f1   :  { %4263 = vmatprep.mubr.msk.f32.mxu0 %vm1237_vm9, %v3310_v54 }
0x19f2   :  { %4264 = vmatmul.mubr.msk.f32.vlgmr.msra.gmra.mrb[74].mxu0 %vm1237_vm9, %v3311_v55 }
0x1a74   :  { %v3105_v7 = vpop.xlane.xlu1 %3104 }
0x1a75   :  { %v3106_v46 = vsub.f32 %v3099_v19, %v3105_v7 }
0x1a77   :  { %v3107_v28 = vmul.f32 1.442695, %v3106_v46 }
0x1a79   :  { %4652 = vpow2.f32 %v3107_v28 }
0x1a83   :  { %v4653_v32 = vpop.eup %4652 }
0x1a84   :  { %v3109_v42 = vsel %vm3102_vm7, %v4653_v32, 0.0 }
0x1a85   :  { %3110 = vadd.xlane.f32.xlu0 %v3109_v42 }
0x1ac5   :  { %v4265_v37 = vpop.f32.mrb[74].mxu0 }
0x1ac6   :  { %v3405_v10 = vadd.f32 %v4265_v37, %v3720_v43  ;;  %v3399_v30 = vpop.f32.mrb[75].mxu0 }
0x1ac7   :  { %v3400_v47 = vadd.f32 %v3720_v43, %v3399_v30 }
0x1ac8   :  { %v3409_v8 = vmax.f32 %v3405_v10, 0.0 }
0x1ac9   :  { %v3408_v62 = vmax.f32 %v3400_v47, 0.0 }
0x1acb   :  { %4282 = vmatprep.mubr.msk.f32.mxu1 %vm1237_vm9, %v3408_v62 }
0x1acc   :  { %4283 = vmatmul.mubr.msk.f32.vlgmr.msra.gmra.mrb[66].mxu1 %vm1237_vm9, %v3409_v8 }
0x1b12   :  { %v3111_v57 = vpop.xlane.xlu0 %3110 }
0x1b13   :  { %4654 = vrcp.f32 %v3111_v57 }
0x1b1d   :  { %v4655_v25 = vpop.eup %4654 }
0x1b1e   :  { %v3113_v58 = vmul.f32 %v4655_v25, %v4653_v32 }
0x1b20   :  { %3114 = vst.msk [vmem:[#allocation3] sm:$0x3] %vm3102_vm7, %v3113_v58 }
0x1b21   :  { %4700 = shalt.err (!%p4697_p4)
}
0x1b22   :  { %s4701_s2 = scalar_lea.hbm %s6043_s25, 32 }
0x1b23   :  { %p4702_p5 = scmp.ne.s32.totalorder %s6043_s25, %s4701_s2  ;;  %p4705_p6 = scmp.lt.u32.totalorder %s4701_s2, %s6043_s25 }
0x1b25   :  { %p4707_p7 = pnand %p4705_p6, %p4702_p5 }
0x1b27   :  { %4710 = shalt.err (!%p4707_p7)
}
0x1b28   :  { %3530 = dma.vmem_to_hbm [thread:$0]  %s3528_s5, 32, %s6043_s25, [#allocation4]   ;;  %v3723_v18 = vld [vmem:[#allocation2] ss:$0 sm:$0xff]  ;;  %vm3518_vm8 = vcmask 7168  }
0x1b9f   :  { %v4284_v50 = vpop.f32.mrb[66].mxu1 }
0x1ba0   :  { %v3503_v49 = vadd.f32 %v4284_v50, %v3723_v18  ;;  %v3497_v39 = vpop.f32.mrb[67].mxu1 }
0x1ba1   :  { %v3498_v4 = vadd.f32 %v3723_v18, %v3497_v39 }
0x1ba2   :  { %v3727_v45 = vmul.f32 -1.442695, %v3503_v49 }
0x1ba3   :  { %v3726_v20 = vmul.f32 -1.442695, %v3498_v4 }
0x1ba4   :  { %4656 = vpow2.f32 %v3727_v45 }
0x1ba5   :  { %4658 = vpow2.f32 %v3726_v20 }
0x1bae   :  { %v4657_v23 = vpop.eup %4656 }
0x1baf   :  { %v4659_v52 = vpop.eup %4658  ;;  %v3513_v15 = vadd.f32 1.0, %v4657_v23 }
0x1bb0   :  { %v3512_v12 = vadd.f32 1.0, %v4659_v52 }
0x1bb1   :  { %4660 = vrcp.f32 %v3513_v15 }
0x1bb2   :  { %4662 = vrcp.f32 %v3512_v12 }
0x1bbb   :  { %v4661_v56 = vpop.eup %4660 }
0x1bbc   :  { %v4663_v1 = vpop.eup %4662  ;;  %3520 = vst.msk [vmem:[%s6044_s26 + $0x8] sm:$0xff] %vm3518_vm8, %v4661_v56 }
0x1bbd   :  { %3519 = vst.msk [vmem:[%s6044_s26] sm:$0xff] %vm3518_vm8, %v4663_v1 }
0x1bbe   :  { %4711 = dma.done.wait [#allocation4], 32  }
0x1bbf   :  { %4712 = vsyncadd [#allocation4], 4294967264 }
0x1bc0   :  { %3538 = vsyncpa [#allocation4], 1 }

</bundles_post_ra>
